<compile_context>
chip_gen: v7x
topology: tpu7x:2x2x1
jax: 0.10.0
libtpu: 0.0.40
codegen_flags: <defaults>
</compile_context>

<pallas_src>
import numpy as np
import jax
import jax.numpy as jnp
from jax.experimental import pallas as pl
from jax.experimental.pallas import tpu as pltpu

# ---- hyper-parameters (the "opt" dict of the torch module) ----
B = 2          # batch
S = 8          # sequence length
E = 32         # emb_dim
H = 32         # rnn_hidden  (bidirectional -> 2*H features out of the LSTM)
A = 8          # considered = int(len(ASP_TO_ID) * top_asp)
L = 4          # len(LABEL_TO_ID)
VOCAB = 100
PAD_ID = 0


def asp_kernel(x_ref, msm_ref, mbm_ref,                    # [S*B,E], [S*B,1], [B*S,1]
               wih_ref, whh_f_ref, whh_b_ref, bcat_ref,    # fused LSTM params
               l1w_ref, l1b_ref, aspT_ref, clsw_ref, clsb_ref,
               out_ref,                                    # [B, A, L]
               xw_ref, hall_ref):                          # VMEM scratch
    H4 = 4 * H

    # fused input projection for BOTH directions: [S*B, E] @ [E, 8H] + bias
    xw_ref[...] = (jnp.dot(x_ref[...], wih_ref[...],
                           preferred_element_type=jnp.float32) + bcat_ref[...])

    # hoist recurrent weights out of the unrolled loop (no re-loads per step)
    whh_f = whh_f_ref[...]
    whh_b = whh_b_ref[...]

    def lstm_cell(pre, h, c, whh):
        g = pre + jnp.dot(h, whh, preferred_element_type=jnp.float32)   # [B, 4H]
        i = jax.nn.sigmoid(g[:, 0:H])
        f = jax.nn.sigmoid(g[:, H:2 * H])
        gg = jnp.tanh(g[:, 2 * H:3 * H])
        o = jax.nn.sigmoid(g[:, 3 * H:4 * H])
        c_new = f * c + i * gg
        h_new = o * jnp.tanh(c_new)
        return h_new, c_new

    zeros = jnp.zeros((B, H), jnp.float32)
    hf, cf = zeros, zeros
    hb, cb = zeros, zeros

    # interleaved forward (t) / backward (S-1-t) recurrence, fully unrolled
    for t in range(S):
        tb = S - 1 - t

        # -- forward at t: state always advances; padded outputs forced to 0 --
        pre_f = xw_ref[t * B:(t + 1) * B, 0:H4]                     # [B, 4H]
        hf_c, cf_c = lstm_cell(pre_f, hf, cf, whh_f)
        valid_f = msm_ref[t * B:(t + 1) * B, :] > 0.5               # [B, 1]
        hf_out = jnp.where(valid_f, hf_c, 0.0)

        # -- backward at tb: state frozen (stays 0) until tb < seq_len --------
        pre_b = xw_ref[tb * B:(tb + 1) * B, H4:2 * H4]              # [B, 4H]
        hb_c, cb_c = lstm_cell(pre_b, hb, cb, whh_b)
        valid_b = msm_ref[tb * B:(tb + 1) * B, :] > 0.5
        hb_n = jnp.where(valid_b, hb_c, hb)
        cb_n = jnp.where(valid_b, cb_c, cb)

        # scatter into the batch-major [B*S, 2H] hidden buffer (B tiny & static)
        for b in range(B):
            hall_ref[b * S + t:b * S + t + 1, 0:H] = hf_out[b:b + 1, :]
            hall_ref[b * S + tb:b * S + tb + 1, H:2 * H] = hb_n[b:b + 1, :]

        hf, cf = hf_c, cf_c
        hb, cb = hb_n, cb_n

    # ---- l1 + ReLU, aspect attention, classifier (per batch row) ----
    l1w = l1w_ref[...]
    l1b = l1b_ref[...]
    aspT = aspT_ref[...]
    clsw = clsw_ref[...]
    clsb = clsb_ref[...]
    for b in range(B):
        h_b = hall_ref[b * S:(b + 1) * S, :]                        # [S, 2H]
        r_b = jnp.maximum(
            jnp.dot(h_b, l1w, preferred_element_type=jnp.float32) + l1b, 0.0)  # [S, E]
        att = jnp.dot(r_b, aspT, preferred_element_type=jnp.float32)           # [S, A]
        m_b = mbm_ref[b * S:(b + 1) * S, :]                         # [S, 1]
        att = jnp.where(m_b < 0.5, -1e11, att)                      # robust 0/1 test
        mx = jnp.max(att, axis=0, keepdims=True)
        p = jnp.exp(att - mx)
        w = p / jnp.sum(p, axis=0, keepdims=True)                   # [S, A]
        # c_inputs = att_m^T @ rnn_outputs -> [A, E]
        c_b = jax.lax.dot_general(w, r_b, (((0,), (0,)), ((), ())),
                                  preferred_element_type=jnp.float32)
        out_ref[b] = (jnp.dot(c_b, clsw, preferred_element_type=jnp.float32)
                      + clsb)                                       # [A, L]


def asp_forward(tokens, mask, P):
    x = P["emb"][tokens]                                   # [B, S, E] embedding (glue)
    mask_f = mask.astype(jnp.float32)
    # seq-major flattening (row = s*B + b) feeds the recurrence;
    # batch-major mask feeds the attention stage. Transposes are wrapper glue.
    x_sm = jnp.transpose(x, (1, 0, 2)).reshape(S * B, E)
    mask_sm = jnp.transpose(mask_f, (1, 0)).reshape(S * B, 1)
    mask_bm = mask_f.reshape(B * S, 1)

    full2d = lambda i: (0, 0)
    return pl.pallas_call(
        asp_kernel,
        out_shape=jax.ShapeDtypeStruct((B, A, L), jnp.float32),
        grid=(1,),
        in_specs=[
            pl.BlockSpec((S * B, E), full2d),       # x (seq-major)
            pl.BlockSpec((S * B, 1), full2d),       # mask (seq-major)
            pl.BlockSpec((B * S, 1), full2d),       # mask (batch-major)
            pl.BlockSpec((E, 8 * H), full2d),       # fused W_ih = [fwd | bwd]
            pl.BlockSpec((H, 4 * H), full2d),       # W_hh fwd
            pl.BlockSpec((H, 4 * H), full2d),       # W_hh bwd
            pl.BlockSpec((1, 8 * H), full2d),       # fused bias
            pl.BlockSpec((2 * H, E), full2d),       # l1.weight^T
            pl.BlockSpec((1, E), full2d),           # l1.bias
            pl.BlockSpec((E, A), full2d),           # asp_emb^T
            pl.BlockSpec((E, L), full2d),           # classifier.weight^T
            pl.BlockSpec((1, L), full2d),           # classifier.bias
        ],
        out_specs=pl.BlockSpec((B, A, L), lambda i: (0, 0, 0)),
        scratch_shapes=[
            pltpu.VMEM((S * B, 8 * H), jnp.float32),   # fused x @ W_ih + b
            pltpu.VMEM((B * S, 2 * H), jnp.float32),   # [h_fwd | h_bwd], batch-major
        ],
        compiler_params=pltpu.CompilerParams(dimension_semantics=("arbitrary",)),
    )(x_sm, mask_sm, mask_bm,
      P["wih_cat"], P["whh_f"], P["whh_b"], P["b_cat"],
      P["l1w"], P["l1b"], P["aspT"], P["clsw"], P["clsb"])


def init_params(key):
    ks = jax.random.split(key, 12)

    def u(k, shape, scale=0.1):
        return jax.random.uniform(k, shape, jnp.float32, -1.0, 1.0) * scale

    emb = u(ks[0], (VOCAB, E), 1.0).at[PAD_ID].set(0.0)    # padding_idx row is zero
    asp = u(ks[1], (A, E), 1.0)                            # asp_emb.weight [A, E]
    wih_f = u(ks[2], (E, 4 * H))                           # = weight_ih_l0.T
    whh_f = u(ks[3], (H, 4 * H))                           # = weight_hh_l0.T
    b_f = u(ks[4], (1, 4 * H))                             # = bias_ih_l0 + bias_hh_l0
    wih_b = u(ks[5], (E, 4 * H))
    whh_b = u(ks[6], (H, 4 * H))
    b_b = u(ks[7], (1, 4 * H))
    l1w = u(ks[8], (2 * H, E))                             # = l1.weight.T
    l1b = u(ks[9], (1, E))
    clsw = u(ks[10], (E, L))                               # = classifier.weight.T
    clsb = u(ks[11], (1, L))
    return dict(emb=emb, aspT=asp.T,
                wih_cat=jnp.concatenate([wih_f, wih_b], axis=1),
                whh_f=whh_f, whh_b=whh_b,
                b_cat=jnp.concatenate([b_f, b_b], axis=1),
                l1w=l1w, l1b=l1b, clsw=clsw, clsb=clsb)


def reference(tokens, mask, P):
    """Pure-numpy reference of the torch forward pass (inference mode)."""
    Pn = {k: np.asarray(v, np.float32) for k, v in P.items()}
    tok = np.asarray(tokens)
    msk = np.asarray(mask, np.float32)
    sigmoid = lambda v: 1.0 / (1.0 + np.exp(-v))
    wih_f, wih_b = Pn["wih_cat"][:, :4 * H], Pn["wih_cat"][:, 4 * H:]
    b_f, b_b = Pn["b_cat"][0, :4 * H], Pn["b_cat"][0, 4 * H:]
    out = np.zeros((B, A, L), np.float32)
    for b in range(B):
        x = Pn["emb"][tok[b]]
        n_valid = int(msk[b].sum())
        xwf = x @ wih_f + b_f
        xwb = x @ wih_b + b_b
        hf = np.zeros((S, H), np.float32)
        hb = np.zeros((S, H), np.float32)
        h = np.zeros(H, np.float32); c = np.zeros(H, np.float32)
        for t in range(S):
            g = xwf[t] + h @ Pn["whh_f"]
            i, f = sigmoid(g[:H]), sigmoid(g[H:2 * H])
            gg, o = np.tanh(g[2 * H:3 * H]), sigmoid(g[3 * H:])
            c = f * c + i * gg
            h = o * np.tanh(c)
            if t < n_valid:
                hf[t] = h
        h = np.zeros(H, np.float32); c = np.zeros(H, np.float32)
        for t in range(S - 1, -1, -1):
            if t < n_valid:
                g = xwb[t] + h @ Pn["whh_b"]
                i, f = sigmoid(g[:H]), sigmoid(g[H:2 * H])
                gg, o = np.tanh(g[2 * H:3 * H]), sigmoid(g[3 * H:])
                c = f * c + i * gg
                h = o * np.tanh(c)
                hb[t] = h
        r = np.maximum(np.concatenate([hf, hb], axis=1) @ Pn["l1w"] + Pn["l1b"][0], 0.0)
        att = r @ Pn["aspT"]
        att = np.where(msk[b][:, None] == 0.0, -1e11, att)
        att = att - att.max(axis=0, keepdims=True)
        e = np.exp(att)
        w = e / e.sum(axis=0, keepdims=True)
        out[b] = (w.T @ r) @ Pn["clsw"] + Pn["clsb"][0]
    return out


if __name__ == "__main__":
    key = jax.random.PRNGKey(0)
    kp, kt = jax.random.split(key)
    P = init_params(kp)

    tokens = jax.random.randint(kt, (B, S), 1, VOCAB, dtype=jnp.int32)
    lens = jnp.array([S, S - 3], dtype=jnp.int32)          # descending, as pack_padded needs
    mask = (jnp.arange(S)[None, :] < lens[:, None]).astype(jnp.float32)

    logits = asp_forward(tokens, mask, P)
    logits = jax.block_until_ready(logits)

    ref = reference(tokens, mask, P)
    np.testing.assert_allclose(np.asarray(logits), ref, rtol=2e-2, atol=2e-2)
    print("KERNEL_OK")
</pallas_src>

<mosaic_0001>
module attributes {stable_mosaic.version = 11 : i64} {
  func.func @asp_kernel(%arg0: i32, %arg1: memref<16x32xf32, #tpu.memory_space<vmem>>, %arg2: memref<16x1xf32, #tpu.memory_space<vmem>>, %arg3: memref<16x1xf32, #tpu.memory_space<vmem>>, %arg4: memref<32x256xf32, #tpu.memory_space<vmem>>, %arg5: memref<32x128xf32, #tpu.memory_space<vmem>>, %arg6: memref<32x128xf32, #tpu.memory_space<vmem>>, %arg7: memref<1x256xf32, #tpu.memory_space<vmem>>, %arg8: memref<64x32xf32, #tpu.memory_space<vmem>>, %arg9: memref<1x32xf32, #tpu.memory_space<vmem>>, %arg10: memref<32x8xf32, #tpu.memory_space<vmem>>, %arg11: memref<32x4xf32, #tpu.memory_space<vmem>>, %arg12: memref<1x4xf32, #tpu.memory_space<vmem>>, %arg13: memref<2x8x4xf32, #tpu.memory_space<vmem>>, %arg14: memref<16x256xf32, #tpu.memory_space<vmem>>, %arg15: memref<16x64xf32, #tpu.memory_space<vmem>>) attributes {dimension_semantics = [#tpu.dimension_semantics<arbitrary>], iteration_bounds = array<i64: 1>, scalar_prefetch = 0 : i64, scratch_operands = 2 : i64, tpu.core_type = #tpu.core_type<tc>, window_params = [{pipeline_mode = #tpu.pipeline_mode<synchronous>, transform_indices = @transform_0, window_bounds = array<i64: 16, 32>}, {pipeline_mode = #tpu.pipeline_mode<synchronous>, transform_indices = @transform_1, window_bounds = array<i64: 16, 1>}, {pipeline_mode = #tpu.pipeline_mode<synchronous>, transform_indices = @transform_2, window_bounds = array<i64: 16, 1>}, {pipeline_mode = #tpu.pipeline_mode<synchronous>, transform_indices = @transform_3, window_bounds = array<i64: 32, 256>}, {pipeline_mode = #tpu.pipeline_mode<synchronous>, transform_indices = @transform_4, window_bounds = array<i64: 32, 128>}, {pipeline_mode = #tpu.pipeline_mode<synchronous>, transform_indices = @transform_5, window_bounds = array<i64: 32, 128>}, {pipeline_mode = #tpu.pipeline_mode<synchronous>, transform_indices = @transform_6, window_bounds = array<i64: 1, 256>}, {pipeline_mode = #tpu.pipeline_mode<synchronous>, transform_indices = @transform_7, window_bounds = array<i64: 64, 32>}, {pipeline_mode = #tpu.pipeline_mode<synchronous>, transform_indices = @transform_8, window_bounds = array<i64: 1, 32>}, {pipeline_mode = #tpu.pipeline_mode<synchronous>, transform_indices = @transform_9, window_bounds = array<i64: 32, 8>}, {pipeline_mode = #tpu.pipeline_mode<synchronous>, transform_indices = @transform_10, window_bounds = array<i64: 32, 4>}, {pipeline_mode = #tpu.pipeline_mode<synchronous>, transform_indices = @transform_11, window_bounds = array<i64: 1, 4>}, {pipeline_mode = #tpu.pipeline_mode<synchronous>, transform_indices = @transform_12, window_bounds = array<i64: 2, 8, 4>}]} {
    %c0 = arith.constant 0 : index
    %c0_0 = arith.constant 0 : index
    %0 = vector.load %arg1[%c0, %c0_0] : memref<16x32xf32, #tpu.memory_space<vmem>>, vector<16x32xf32>
    %c0_1 = arith.constant 0 : index
    %c0_2 = arith.constant 0 : index
    %1 = vector.load %arg4[%c0_1, %c0_2] : memref<32x256xf32, #tpu.memory_space<vmem>>, vector<32x256xf32>
    %cst = arith.constant dense<0.000000e+00> : vector<16x256xf32>
    %2 = tpu.matmul %0, %1, %cst {dimension_numbers = #tpu.dot_dimension_numbers<[1], [0], [0], [1], [0, 0, 1, 1], [], []>} : vector<16x32xf32>, vector<32x256xf32>, vector<16x256xf32> -> vector<16x256xf32>
    %c0_3 = arith.constant 0 : index
    %c0_4 = arith.constant 0 : index
    %3 = vector.load %arg7[%c0_3, %c0_4] : memref<1x256xf32, #tpu.memory_space<vmem>>, vector<1x256xf32>
    %4 = vector.broadcast %3 : vector<1x256xf32> to vector<16x256xf32>
    %5 = arith.addf %2, %4 : vector<16x256xf32>
    %c0_5 = arith.constant 0 : index
    %c0_6 = arith.constant 0 : index
    %6 = vector.load %arg14[%c0_5, %c0_6] : memref<16x256xf32, #tpu.memory_space<vmem>>, vector<16x256xf32>
    tpu.vector_store %arg14[%c0_5, %c0_6], %5 {strides = array<i32>} : memref<16x256xf32, #tpu.memory_space<vmem>>, vector<16x256xf32>,
    %c0_7 = arith.constant 0 : index
    %c0_8 = arith.constant 0 : index
    %7 = vector.load %arg5[%c0_7, %c0_8] : memref<32x128xf32, #tpu.memory_space<vmem>>, vector<32x128xf32>
    %c0_9 = arith.constant 0 : index
    %c0_10 = arith.constant 0 : index
    %8 = vector.load %arg6[%c0_9, %c0_10] : memref<32x128xf32, #tpu.memory_space<vmem>>, vector<32x128xf32>
    %cst_11 = arith.constant 0.000000e+00 : f32
    %9 = vector.broadcast %cst_11 : f32 to vector<2x32xf32>
    %c0_12 = arith.constant 0 : index
    %c0_13 = arith.constant 0 : index
    %10 = vector.load %arg14[%c0_12, %c0_13] : memref<16x256xf32, #tpu.memory_space<vmem>>, vector<2x128xf32>
    %cst_14 = arith.constant dense<0.000000e+00> : vector<2x128xf32>
    %11 = tpu.matmul %9, %7, %cst_14 {dimension_numbers = #tpu.dot_dimension_numbers<[1], [0], [0], [1], [0, 0, 1, 1], [], []>} : vector<2x32xf32>, vector<32x128xf32>, vector<2x128xf32> -> vector<2x128xf32>
    %12 = arith.addf %10, %11 : vector<2x128xf32>
    %13 = vector.extract_strided_slice %12 {offsets = [0, 0], sizes = [2, 32], strides = [1, 1]} : vector<2x128xf32> to vector<2x32xf32>
    %14 = arith.negf %13 : vector<2x32xf32>
    %15 = math.exp %14 : vector<2x32xf32>
    %cst_15 = arith.constant 1.000000e+00 : f32
    %16 = vector.broadcast %cst_15 : f32 to vector<2x32xf32>
    %17 = arith.addf %16, %15 : vector<2x32xf32>
    %18 = arith.divf %16, %17 : vector<2x32xf32>
    %19 = vector.extract_strided_slice %12 {offsets = [0, 32], sizes = [2, 32], strides = [1, 1]} : vector<2x128xf32> to vector<2x32xf32>
    %20 = arith.negf %19 : vector<2x32xf32>
    %21 = math.exp %20 : vector<2x32xf32>
    %cst_16 = arith.constant 1.000000e+00 : f32
    %22 = vector.broadcast %cst_16 : f32 to vector<2x32xf32>
    %23 = arith.addf %22, %21 : vector<2x32xf32>
    %24 = arith.divf %22, %23 : vector<2x32xf32>
    %25 = vector.extract_strided_slice %12 {offsets = [0, 64], sizes = [2, 32], strides = [1, 1]} : vector<2x128xf32> to vector<2x32xf32>
    %26 = math.tanh %25 : vector<2x32xf32>
    %27 = vector.extract_strided_slice %12 {offsets = [0, 96], sizes = [2, 32], strides = [1, 1]} : vector<2x128xf32> to vector<2x32xf32>
    %28 = arith.negf %27 : vector<2x32xf32>
    %29 = math.exp %28 : vector<2x32xf32>
    %cst_17 = arith.constant 1.000000e+00 : f32
    %30 = vector.broadcast %cst_17 : f32 to vector<2x32xf32>
    %31 = arith.addf %30, %29 : vector<2x32xf32>
    %32 = arith.divf %30, %31 : vector<2x32xf32>
    %33 = arith.mulf %24, %9 : vector<2x32xf32>
    %34 = arith.mulf %18, %26 : vector<2x32xf32>
    %35 = arith.addf %33, %34 : vector<2x32xf32>
    %36 = math.tanh %35 : vector<2x32xf32>
    %37 = arith.mulf %32, %36 : vector<2x32xf32>
    %c0_18 = arith.constant 0 : index
    %c0_19 = arith.constant 0 : index
    %38 = vector.load %arg2[%c0_18, %c0_19] : memref<16x1xf32, #tpu.memory_space<vmem>>, vector<2x1xf32>
    %cst_20 = arith.constant 5.000000e-01 : f32
    %39 = vector.broadcast %cst_20 : f32 to vector<2x1xf32>
    %40 = arith.cmpf ogt, %38, %39 : vector<2x1xf32>
    %cst_21 = arith.constant 0.000000e+00 : f32
    %41 = vector.shape_cast %40 : vector<2x1xi1> to vector<2x1xi1>
    %42 = vector.broadcast %41 : vector<2x1xi1> to vector<2x32xi1>
    %43 = vector.broadcast %cst_21 : f32 to vector<2x32xf32>
    %44 = arith.select %42, %37, %43 : vector<2x32xi1>, vector<2x32xf32>
    %c14 = arith.constant 14 : index
    %c128 = arith.constant 128 : index
    %45 = vector.load %arg14[%c14, %c128] : memref<16x256xf32, #tpu.memory_space<vmem>>, vector<2x128xf32>
    %cst_22 = arith.constant dense<0.000000e+00> : vector<2x128xf32>
    %46 = tpu.matmul %9, %8, %cst_22 {dimension_numbers = #tpu.dot_dimension_numbers<[1], [0], [0], [1], [0, 0, 1, 1], [], []>} : vector<2x32xf32>, vector<32x128xf32>, vector<2x128xf32> -> vector<2x128xf32>
    %47 = arith.addf %45, %46 : vector<2x128xf32>
    %48 = vector.extract_strided_slice %47 {offsets = [0, 0], sizes = [2, 32], strides = [1, 1]} : vector<2x128xf32> to vector<2x32xf32>
    %49 = arith.negf %48 : vector<2x32xf32>
    %50 = math.exp %49 : vector<2x32xf32>
    %cst_23 = arith.constant 1.000000e+00 : f32
    %51 = vector.broadcast %cst_23 : f32 to vector<2x32xf32>
    %52 = arith.addf %51, %50 : vector<2x32xf32>
    %53 = arith.divf %51, %52 : vector<2x32xf32>
    %54 = vector.extract_strided_slice %47 {offsets = [0, 32], sizes = [2, 32], strides = [1, 1]} : vector<2x128xf32> to vector<2x32xf32>
    %55 = arith.negf %54 : vector<2x32xf32>
    %56 = math.exp %55 : vector<2x32xf32>
    %cst_24 = arith.constant 1.000000e+00 : f32
    %57 = vector.broadcast %cst_24 : f32 to vector<2x32xf32>
    %58 = arith.addf %57, %56 : vector<2x32xf32>
    %59 = arith.divf %57, %58 : vector<2x32xf32>
    %60 = vector.extract_strided_slice %47 {offsets = [0, 64], sizes = [2, 32], strides = [1, 1]} : vector<2x128xf32> to vector<2x32xf32>
    %61 = math.tanh %60 : vector<2x32xf32>
    %62 = vector.extract_strided_slice %47 {offsets = [0, 96], sizes = [2, 32], strides = [1, 1]} : vector<2x128xf32> to vector<2x32xf32>
    %63 = arith.negf %62 : vector<2x32xf32>
    %64 = math.exp %63 : vector<2x32xf32>
    %cst_25 = arith.constant 1.000000e+00 : f32
    %65 = vector.broadcast %cst_25 : f32 to vector<2x32xf32>
    %66 = arith.addf %65, %64 : vector<2x32xf32>
    %67 = arith.divf %65, %66 : vector<2x32xf32>
    %68 = arith.mulf %59, %9 : vector<2x32xf32>
    %69 = arith.mulf %53, %61 : vector<2x32xf32>
    %70 = arith.addf %68, %69 : vector<2x32xf32>
    %71 = math.tanh %70 : vector<2x32xf32>
    %72 = arith.mulf %67, %71 : vector<2x32xf32>
    %c14_26 = arith.constant 14 : index
    %c0_27 = arith.constant 0 : index
    %73 = vector.load %arg2[%c14_26, %c0_27] : memref<16x1xf32, #tpu.memory_space<vmem>>, vector<2x1xf32>
    %cst_28 = arith.constant 5.000000e-01 : f32
    %74 = vector.broadcast %cst_28 : f32 to vector<2x1xf32>
    %75 = arith.cmpf ogt, %73, %74 : vector<2x1xf32>
    %76 = vector.shape_cast %75 : vector<2x1xi1> to vector<2x1xi1>
    %77 = vector.broadcast %76 : vector<2x1xi1> to vector<2x32xi1>
    %78 = arith.select %77, %72, %9 : vector<2x32xi1>, vector<2x32xf32>
    %79 = vector.shape_cast %75 : vector<2x1xi1> to vector<2x1xi1>
    %80 = vector.broadcast %79 : vector<2x1xi1> to vector<2x32xi1>
    %81 = arith.select %80, %70, %9 : vector<2x32xi1>, vector<2x32xf32>
    %82 = vector.extract_strided_slice %44 {offsets = [0, 0], sizes = [1, 32], strides = [1, 1]} : vector<2x32xf32> to vector<1x32xf32>
    %c0_29 = arith.constant 0 : index
    %c0_30 = arith.constant 0 : index
    %83 = vector.load %arg15[%c0_29, %c0_30] : memref<16x64xf32, #tpu.memory_space<vmem>>, vector<1x32xf32>
    tpu.vector_store %arg15[%c0_29, %c0_30], %82 {strides = array<i32>} : memref<16x64xf32, #tpu.memory_space<vmem>>, vector<1x32xf32>,
    %84 = vector.extract_strided_slice %78 {offsets = [0, 0], sizes = [1, 32], strides = [1, 1]} : vector<2x32xf32> to vector<1x32xf32>
    %c7 = arith.constant 7 : index
    %c32 = arith.constant 32 : index
    %85 = vector.load %arg15[%c7, %c32] : memref<16x64xf32, #tpu.memory_space<vmem>>, vector<1x32xf32>
    tpu.vector_store %arg15[%c7, %c32], %84 {strides = array<i32>} : memref<16x64xf32, #tpu.memory_space<vmem>>, vector<1x32xf32>,
    %86 = vector.extract_strided_slice %44 {offsets = [1, 0], sizes = [1, 32], strides = [1, 1]} : vector<2x32xf32> to vector<1x32xf32>
    %c8 = arith.constant 8 : index
    %c0_31 = arith.constant 0 : index
    %87 = vector.load %arg15[%c8, %c0_31] : memref<16x64xf32, #tpu.memory_space<vmem>>, vector<1x32xf32>
    tpu.vector_store %arg15[%c8, %c0_31], %86 {strides = array<i32>} : memref<16x64xf32, #tpu.memory_space<vmem>>, vector<1x32xf32>,
    %88 = vector.extract_strided_slice %78 {offsets = [1, 0], sizes = [1, 32], strides = [1, 1]} : vector<2x32xf32> to vector<1x32xf32>
    %c15 = arith.constant 15 : index
    %c32_32 = arith.constant 32 : index
    %89 = vector.load %arg15[%c15, %c32_32] : memref<16x64xf32, #tpu.memory_space<vmem>>, vector<1x32xf32>
    tpu.vector_store %arg15[%c15, %c32_32], %88 {strides = array<i32>} : memref<16x64xf32, #tpu.memory_space<vmem>>, vector<1x32xf32>,
    %c2 = arith.constant 2 : index
    %c0_33 = arith.constant 0 : index
    %90 = vector.load %arg14[%c2, %c0_33] : memref<16x256xf32, #tpu.memory_space<vmem>>, vector<2x128xf32>
    %cst_34 = arith.constant dense<0.000000e+00> : vector<2x128xf32>
    %91 = tpu.matmul %37, %7, %cst_34 {dimension_numbers = #tpu.dot_dimension_numbers<[1], [0], [0], [1], [0, 0, 1, 1], [], []>} : vector<2x32xf32>, vector<32x128xf32>, vector<2x128xf32> -> vector<2x128xf32>
    %92 = arith.addf %90, %91 : vector<2x128xf32>
    %93 = vector.extract_strided_slice %92 {offsets = [0, 0], sizes = [2, 32], strides = [1, 1]} : vector<2x128xf32> to vector<2x32xf32>
    %94 = arith.negf %93 : vector<2x32xf32>
    %95 = math.exp %94 : vector<2x32xf32>
    %cst_35 = arith.constant 1.000000e+00 : f32
    %96 = vector.broadcast %cst_35 : f32 to vector<2x32xf32>
    %97 = arith.addf %96, %95 : vector<2x32xf32>
    %98 = arith.divf %96, %97 : vector<2x32xf32>
    %99 = vector.extract_strided_slice %92 {offsets = [0, 32], sizes = [2, 32], strides = [1, 1]} : vector<2x128xf32> to vector<2x32xf32>
    %100 = arith.negf %99 : vector<2x32xf32>
    %101 = math.exp %100 : vector<2x32xf32>
    %cst_36 = arith.constant 1.000000e+00 : f32
    %102 = vector.broadcast %cst_36 : f32 to vector<2x32xf32>
    %103 = arith.addf %102, %101 : vector<2x32xf32>
    %104 = arith.divf %102, %103 : vector<2x32xf32>
    %105 = vector.extract_strided_slice %92 {offsets = [0, 64], sizes = [2, 32], strides = [1, 1]} : vector<2x128xf32> to vector<2x32xf32>
    %106 = math.tanh %105 : vector<2x32xf32>
    %107 = vector.extract_strided_slice %92 {offsets = [0, 96], sizes = [2, 32], strides = [1, 1]} : vector<2x128xf32> to vector<2x32xf32>
    %108 = arith.negf %107 : vector<2x32xf32>
    %109 = math.exp %108 : vector<2x32xf32>
    %cst_37 = arith.constant 1.000000e+00 : f32
    %110 = vector.broadcast %cst_37 : f32 to vector<2x32xf32>
    %111 = arith.addf %110, %109 : vector<2x32xf32>
    %112 = arith.divf %110, %111 : vector<2x32xf32>
    %113 = arith.mulf %104, %35 : vector<2x32xf32>
    %114 = arith.mulf %98, %106 : vector<2x32xf32>
    %115 = arith.addf %113, %114 : vector<2x32xf32>
    %116 = math.tanh %115 : vector<2x32xf32>
    %117 = arith.mulf %112, %116 : vector<2x32xf32>
    %c2_38 = arith.constant 2 : index
    %c0_39 = arith.constant 0 : index
    %118 = vector.load %arg2[%c2_38, %c0_39] : memref<16x1xf32, #tpu.memory_space<vmem>>, vector<2x1xf32>
    %cst_40 = arith.constant 5.000000e-01 : f32
    %119 = vector.broadcast %cst_40 : f32 to vector<2x1xf32>
    %120 = arith.cmpf ogt, %118, %119 : vector<2x1xf32>
    %cst_41 = arith.constant 0.000000e+00 : f32
    %121 = vector.shape_cast %120 : vector<2x1xi1> to vector<2x1xi1>
    %122 = vector.broadcast %121 : vector<2x1xi1> to vector<2x32xi1>
    %123 = vector.broadcast %cst_41 : f32 to vector<2x32xf32>
    %124 = arith.select %122, %117, %123 : vector<2x32xi1>, vector<2x32xf32>
    %c12 = arith.constant 12 : index
    %c128_42 = arith.constant 128 : index
    %125 = vector.load %arg14[%c12, %c128_42] : memref<16x256xf32, #tpu.memory_space<vmem>>, vector<2x128xf32>
    %cst_43 = arith.constant dense<0.000000e+00> : vector<2x128xf32>
    %126 = tpu.matmul %78, %8, %cst_43 {dimension_numbers = #tpu.dot_dimension_numbers<[1], [0], [0], [1], [0, 0, 1, 1], [], []>} : vector<2x32xf32>, vector<32x128xf32>, vector<2x128xf32> -> vector<2x128xf32>
    %127 = arith.addf %125, %126 : vector<2x128xf32>
    %128 = vector.extract_strided_slice %127 {offsets = [0, 0], sizes = [2, 32], strides = [1, 1]} : vector<2x128xf32> to vector<2x32xf32>
    %129 = arith.negf %128 : vector<2x32xf32>
    %130 = math.exp %129 : vector<2x32xf32>
    %cst_44 = arith.constant 1.000000e+00 : f32
    %131 = vector.broadcast %cst_44 : f32 to vector<2x32xf32>
    %132 = arith.addf %131, %130 : vector<2x32xf32>
    %133 = arith.divf %131, %132 : vector<2x32xf32>
    %134 = vector.extract_strided_slice %127 {offsets = [0, 32], sizes = [2, 32], strides = [1, 1]} : vector<2x128xf32> to vector<2x32xf32>
    %135 = arith.negf %134 : vector<2x32xf32>
    %136 = math.exp %135 : vector<2x32xf32>
    %cst_45 = arith.constant 1.000000e+00 : f32
    %137 = vector.broadcast %cst_45 : f32 to vector<2x32xf32>
    %138 = arith.addf %137, %136 : vector<2x32xf32>
    %139 = arith.divf %137, %138 : vector<2x32xf32>
    %140 = vector.extract_strided_slice %127 {offsets = [0, 64], sizes = [2, 32], strides = [1, 1]} : vector<2x128xf32> to vector<2x32xf32>
    %141 = math.tanh %140 : vector<2x32xf32>
    %142 = vector.extract_strided_slice %127 {offsets = [0, 96], sizes = [2, 32], strides = [1, 1]} : vector<2x128xf32> to vector<2x32xf32>
    %143 = arith.negf %142 : vector<2x32xf32>
    %144 = math.exp %143 : vector<2x32xf32>
    %cst_46 = arith.constant 1.000000e+00 : f32
    %145 = vector.broadcast %cst_46 : f32 to vector<2x32xf32>
    %146 = arith.addf %145, %144 : vector<2x32xf32>
    %147 = arith.divf %145, %146 : vector<2x32xf32>
    %148 = arith.mulf %139, %81 : vector<2x32xf32>
    %149 = arith.mulf %133, %141 : vector<2x32xf32>
    %150 = arith.addf %148, %149 : vector<2x32xf32>
    %151 = math.tanh %150 : vector<2x32xf32>
    %152 = arith.mulf %147, %151 : vector<2x32xf32>
    %c12_47 = arith.constant 12 : index
    %c0_48 = arith.constant 0 : index
    %153 = vector.load %arg2[%c12_47, %c0_48] : memref<16x1xf32, #tpu.memory_space<vmem>>, vector<2x1xf32>
    %cst_49 = arith.constant 5.000000e-01 : f32
    %154 = vector.broadcast %cst_49 : f32 to vector<2x1xf32>
    %155 = arith.cmpf ogt, %153, %154 : vector<2x1xf32>
    %156 = vector.shape_cast %155 : vector<2x1xi1> to vector<2x1xi1>
    %157 = vector.broadcast %156 : vector<2x1xi1> to vector<2x32xi1>
    %158 = arith.select %157, %152, %78 : vector<2x32xi1>, vector<2x32xf32>
    %159 = vector.shape_cast %155 : vector<2x1xi1> to vector<2x1xi1>
    %160 = vector.broadcast %159 : vector<2x1xi1> to vector<2x32xi1>
    %161 = arith.select %160, %150, %81 : vector<2x32xi1>, vector<2x32xf32>
    %162 = vector.extract_strided_slice %124 {offsets = [0, 0], sizes = [1, 32], strides = [1, 1]} : vector<2x32xf32> to vector<1x32xf32>
    %c1 = arith.constant 1 : index
    %c0_50 = arith.constant 0 : index
    %163 = vector.load %arg15[%c1, %c0_50] : memref<16x64xf32, #tpu.memory_space<vmem>>, vector<1x32xf32>
    tpu.vector_store %arg15[%c1, %c0_50], %162 {strides = array<i32>} : memref<16x64xf32, #tpu.memory_space<vmem>>, vector<1x32xf32>,
    %164 = vector.extract_strided_slice %158 {offsets = [0, 0], sizes = [1, 32], strides = [1, 1]} : vector<2x32xf32> to vector<1x32xf32>
    %c6 = arith.constant 6 : index
    %c32_51 = arith.constant 32 : index
    %165 = vector.load %arg15[%c6, %c32_51] : memref<16x64xf32, #tpu.memory_space<vmem>>, vector<1x32xf32>
    tpu.vector_store %arg15[%c6, %c32_51], %164 {strides = array<i32>} : memref<16x64xf32, #tpu.memory_space<vmem>>, vector<1x32xf32>,
    %166 = vector.extract_strided_slice %124 {offsets = [1, 0], sizes = [1, 32], strides = [1, 1]} : vector<2x32xf32> to vector<1x32xf32>
    %c9 = arith.constant 9 : index
    %c0_52 = arith.constant 0 : index
    %167 = vector.load %arg15[%c9, %c0_52] : memref<16x64xf32, #tpu.memory_space<vmem>>, vector<1x32xf32>
    tpu.vector_store %arg15[%c9, %c0_52], %166 {strides = array<i32>} : memref<16x64xf32, #tpu.memory_space<vmem>>, vector<1x32xf32>,
    %168 = vector.extract_strided_slice %158 {offsets = [1, 0], sizes = [1, 32], strides = [1, 1]} : vector<2x32xf32> to vector<1x32xf32>
    %c14_53 = arith.constant 14 : index
    %c32_54 = arith.constant 32 : index
    %169 = vector.load %arg15[%c14_53, %c32_54] : memref<16x64xf32, #tpu.memory_space<vmem>>, vector<1x32xf32>
    tpu.vector_store %arg15[%c14_53, %c32_54], %168 {strides = array<i32>} : memref<16x64xf32, #tpu.memory_space<vmem>>, vector<1x32xf32>,
    %c4 = arith.constant 4 : index
    %c0_55 = arith.constant 0 : index
    %170 = vector.load %arg14[%c4, %c0_55] : memref<16x256xf32, #tpu.memory_space<vmem>>, vector<2x128xf32>
    %cst_56 = arith.constant dense<0.000000e+00> : vector<2x128xf32>
    %171 = tpu.matmul %117, %7, %cst_56 {dimension_numbers = #tpu.dot_dimension_numbers<[1], [0], [0], [1], [0, 0, 1, 1], [], []>} : vector<2x32xf32>, vector<32x128xf32>, vector<2x128xf32> -> vector<2x128xf32>
    %172 = arith.addf %170, %171 : vector<2x128xf32>
    %173 = vector.extract_strided_slice %172 {offsets = [0, 0], sizes = [2, 32], strides = [1, 1]} : vector<2x128xf32> to vector<2x32xf32>
    %174 = arith.negf %173 : vector<2x32xf32>
    %175 = math.exp %174 : vector<2x32xf32>
    %cst_57 = arith.constant 1.000000e+00 : f32
    %176 = vector.broadcast %cst_57 : f32 to vector<2x32xf32>
    %177 = arith.addf %176, %175 : vector<2x32xf32>
    %178 = arith.divf %176, %177 : vector<2x32xf32>
    %179 = vector.extract_strided_slice %172 {offsets = [0, 32], sizes = [2, 32], strides = [1, 1]} : vector<2x128xf32> to vector<2x32xf32>
    %180 = arith.negf %179 : vector<2x32xf32>
    %181 = math.exp %180 : vector<2x32xf32>
    %cst_58 = arith.constant 1.000000e+00 : f32
    %182 = vector.broadcast %cst_58 : f32 to vector<2x32xf32>
    %183 = arith.addf %182, %181 : vector<2x32xf32>
    %184 = arith.divf %182, %183 : vector<2x32xf32>
    %185 = vector.extract_strided_slice %172 {offsets = [0, 64], sizes = [2, 32], strides = [1, 1]} : vector<2x128xf32> to vector<2x32xf32>
    %186 = math.tanh %185 : vector<2x32xf32>
    %187 = vector.extract_strided_slice %172 {offsets = [0, 96], sizes = [2, 32], strides = [1, 1]} : vector<2x128xf32> to vector<2x32xf32>
    %188 = arith.negf %187 : vector<2x32xf32>
    %189 = math.exp %188 : vector<2x32xf32>
    %cst_59 = arith.constant 1.000000e+00 : f32
    %190 = vector.broadcast %cst_59 : f32 to vector<2x32xf32>
    %191 = arith.addf %190, %189 : vector<2x32xf32>
    %192 = arith.divf %190, %191 : vector<2x32xf32>
    %193 = arith.mulf %184, %115 : vector<2x32xf32>
    %194 = arith.mulf %178, %186 : vector<2x32xf32>
    %195 = arith.addf %193, %194 : vector<2x32xf32>
    %196 = math.tanh %195 : vector<2x32xf32>
    %197 = arith.mulf %192, %196 : vector<2x32xf32>
    %c4_60 = arith.constant 4 : index
    %c0_61 = arith.constant 0 : index
    %198 = vector.load %arg2[%c4_60, %c0_61] : memref<16x1xf32, #tpu.memory_space<vmem>>, vector<2x1xf32>
    %cst_62 = arith.constant 5.000000e-01 : f32
    %199 = vector.broadcast %cst_62 : f32 to vector<2x1xf32>
    %200 = arith.cmpf ogt, %198, %199 : vector<2x1xf32>
    %cst_63 = arith.constant 0.000000e+00 : f32
    %201 = vector.shape_cast %200 : vector<2x1xi1> to vector<2x1xi1>
    %202 = vector.broadcast %201 : vector<2x1xi1> to vector<2x32xi1>
    %203 = vector.broadcast %cst_63 : f32 to vector<2x32xf32>
    %204 = arith.select %202, %197, %203 : vector<2x32xi1>, vector<2x32xf32>
    %c10 = arith.constant 10 : index
    %c128_64 = arith.constant 128 : index
    %205 = vector.load %arg14[%c10, %c128_64] : memref<16x256xf32, #tpu.memory_space<vmem>>, vector<2x128xf32>
    %cst_65 = arith.constant dense<0.000000e+00> : vector<2x128xf32>
    %206 = tpu.matmul %158, %8, %cst_65 {dimension_numbers = #tpu.dot_dimension_numbers<[1], [0], [0], [1], [0, 0, 1, 1], [], []>} : vector<2x32xf32>, vector<32x128xf32>, vector<2x128xf32> -> vector<2x128xf32>
    %207 = arith.addf %205, %206 : vector<2x128xf32>
    %208 = vector.extract_strided_slice %207 {offsets = [0, 0], sizes = [2, 32], strides = [1, 1]} : vector<2x128xf32> to vector<2x32xf32>
    %209 = arith.negf %208 : vector<2x32xf32>
    %210 = math.exp %209 : vector<2x32xf32>
    %cst_66 = arith.constant 1.000000e+00 : f32
    %211 = vector.broadcast %cst_66 : f32 to vector<2x32xf32>
    %212 = arith.addf %211, %210 : vector<2x32xf32>
    %213 = arith.divf %211, %212 : vector<2x32xf32>
    %214 = vector.extract_strided_slice %207 {offsets = [0, 32], sizes = [2, 32], strides = [1, 1]} : vector<2x128xf32> to vector<2x32xf32>
    %215 = arith.negf %214 : vector<2x32xf32>
    %216 = math.exp %215 : vector<2x32xf32>
    %cst_67 = arith.constant 1.000000e+00 : f32
    %217 = vector.broadcast %cst_67 : f32 to vector<2x32xf32>
    %218 = arith.addf %217, %216 : vector<2x32xf32>
    %219 = arith.divf %217, %218 : vector<2x32xf32>
    %220 = vector.extract_strided_slice %207 {offsets = [0, 64], sizes = [2, 32], strides = [1, 1]} : vector<2x128xf32> to vector<2x32xf32>
    %221 = math.tanh %220 : vector<2x32xf32>
    %222 = vector.extract_strided_slice %207 {offsets = [0, 96], sizes = [2, 32], strides = [1, 1]} : vector<2x128xf32> to vector<2x32xf32>
    %223 = arith.negf %222 : vector<2x32xf32>
    %224 = math.exp %223 : vector<2x32xf32>
    %cst_68 = arith.constant 1.000000e+00 : f32
    %225 = vector.broadcast %cst_68 : f32 to vector<2x32xf32>
    %226 = arith.addf %225, %224 : vector<2x32xf32>
    %227 = arith.divf %225, %226 : vector<2x32xf32>
    %228 = arith.mulf %219, %161 : vector<2x32xf32>
    %229 = arith.mulf %213, %221 : vector<2x32xf32>
    %230 = arith.addf %228, %229 : vector<2x32xf32>
    %231 = math.tanh %230 : vector<2x32xf32>
    %232 = arith.mulf %227, %231 : vector<2x32xf32>
    %c10_69 = arith.constant 10 : index
    %c0_70 = arith.constant 0 : index
    %233 = vector.load %arg2[%c10_69, %c0_70] : memref<16x1xf32, #tpu.memory_space<vmem>>, vector<2x1xf32>
    %cst_71 = arith.constant 5.000000e-01 : f32
    %234 = vector.broadcast %cst_71 : f32 to vector<2x1xf32>
    %235 = arith.cmpf ogt, %233, %234 : vector<2x1xf32>
    %236 = vector.shape_cast %235 : vector<2x1xi1> to vector<2x1xi1>
    %237 = vector.broadcast %236 : vector<2x1xi1> to vector<2x32xi1>
    %238 = arith.select %237, %232, %158 : vector<2x32xi1>, vector<2x32xf32>
    %239 = vector.shape_cast %235 : vector<2x1xi1> to vector<2x1xi1>
    %240 = vector.broadcast %239 : vector<2x1xi1> to vector<2x32xi1>
    %241 = arith.select %240, %230, %161 : vector<2x32xi1>, vector<2x32xf32>
    %242 = vector.extract_strided_slice %204 {offsets = [0, 0], sizes = [1, 32], strides = [1, 1]} : vector<2x32xf32> to vector<1x32xf32>
    %c2_72 = arith.constant 2 : index
    %c0_73 = arith.constant 0 : index
    %243 = vector.load %arg15[%c2_72, %c0_73] : memref<16x64xf32, #tpu.memory_space<vmem>>, vector<1x32xf32>
    tpu.vector_store %arg15[%c2_72, %c0_73], %242 {strides = array<i32>} : memref<16x64xf32, #tpu.memory_space<vmem>>, vector<1x32xf32>,
    %244 = vector.extract_strided_slice %238 {offsets = [0, 0], sizes = [1, 32], strides = [1, 1]} : vector<2x32xf32> to vector<1x32xf32>
    %c5 = arith.constant 5 : index
    %c32_74 = arith.constant 32 : index
    %245 = vector.load %arg15[%c5, %c32_74] : memref<16x64xf32, #tpu.memory_space<vmem>>, vector<1x32xf32>
    tpu.vector_store %arg15[%c5, %c32_74], %244 {strides = array<i32>} : memref<16x64xf32, #tpu.memory_space<vmem>>, vector<1x32xf32>,
    %246 = vector.extract_strided_slice %204 {offsets = [1, 0], sizes = [1, 32], strides = [1, 1]} : vector<2x32xf32> to vector<1x32xf32>
    %c10_75 = arith.constant 10 : index
    %c0_76 = arith.constant 0 : index
    %247 = vector.load %arg15[%c10_75, %c0_76] : memref<16x64xf32, #tpu.memory_space<vmem>>, vector<1x32xf32>
    tpu.vector_store %arg15[%c10_75, %c0_76], %246 {strides = array<i32>} : memref<16x64xf32, #tpu.memory_space<vmem>>, vector<1x32xf32>,
    %248 = vector.extract_strided_slice %238 {offsets = [1, 0], sizes = [1, 32], strides = [1, 1]} : vector<2x32xf32> to vector<1x32xf32>
    %c13 = arith.constant 13 : index
    %c32_77 = arith.constant 32 : index
    %249 = vector.load %arg15[%c13, %c32_77] : memref<16x64xf32, #tpu.memory_space<vmem>>, vector<1x32xf32>
    tpu.vector_store %arg15[%c13, %c32_77], %248 {strides = array<i32>} : memref<16x64xf32, #tpu.memory_space<vmem>>, vector<1x32xf32>,
    %c6_78 = arith.constant 6 : index
    %c0_79 = arith.constant 0 : index
    %250 = vector.load %arg14[%c6_78, %c0_79] : memref<16x256xf32, #tpu.memory_space<vmem>>, vector<2x128xf32>
    %cst_80 = arith.constant dense<0.000000e+00> : vector<2x128xf32>
    %251 = tpu.matmul %197, %7, %cst_80 {dimension_numbers = #tpu.dot_dimension_numbers<[1], [0], [0], [1], [0, 0, 1, 1], [], []>} : vector<2x32xf32>, vector<32x128xf32>, vector<2x128xf32> -> vector<2x128xf32>
    %252 = arith.addf %250, %251 : vector<2x128xf32>
    %253 = vector.extract_strided_slice %252 {offsets = [0, 0], sizes = [2, 32], strides = [1, 1]} : vector<2x128xf32> to vector<2x32xf32>
    %254 = arith.negf %253 : vector<2x32xf32>
    %255 = math.exp %254 : vector<2x32xf32>
    %cst_81 = arith.constant 1.000000e+00 : f32
    %256 = vector.broadcast %cst_81 : f32 to vector<2x32xf32>
    %257 = arith.addf %256, %255 : vector<2x32xf32>
    %258 = arith.divf %256, %257 : vector<2x32xf32>
    %259 = vector.extract_strided_slice %252 {offsets = [0, 32], sizes = [2, 32], strides = [1, 1]} : vector<2x128xf32> to vector<2x32xf32>
    %260 = arith.negf %259 : vector<2x32xf32>
    %261 = math.exp %260 : vector<2x32xf32>
    %cst_82 = arith.constant 1.000000e+00 : f32
    %262 = vector.broadcast %cst_82 : f32 to vector<2x32xf32>
    %263 = arith.addf %262, %261 : vector<2x32xf32>
    %264 = arith.divf %262, %263 : vector<2x32xf32>
    %265 = vector.extract_strided_slice %252 {offsets = [0, 64], sizes = [2, 32], strides = [1, 1]} : vector<2x128xf32> to vector<2x32xf32>
    %266 = math.tanh %265 : vector<2x32xf32>
    %267 = vector.extract_strided_slice %252 {offsets = [0, 96], sizes = [2, 32], strides = [1, 1]} : vector<2x128xf32> to vector<2x32xf32>
    %268 = arith.negf %267 : vector<2x32xf32>
    %269 = math.exp %268 : vector<2x32xf32>
    %cst_83 = arith.constant 1.000000e+00 : f32
    %270 = vector.broadcast %cst_83 : f32 to vector<2x32xf32>
    %271 = arith.addf %270, %269 : vector<2x32xf32>
    %272 = arith.divf %270, %271 : vector<2x32xf32>
    %273 = arith.mulf %264, %195 : vector<2x32xf32>
    %274 = arith.mulf %258, %266 : vector<2x32xf32>
    %275 = arith.addf %273, %274 : vector<2x32xf32>
    %276 = math.tanh %275 : vector<2x32xf32>
    %277 = arith.mulf %272, %276 : vector<2x32xf32>
    %c6_84 = arith.constant 6 : index
    %c0_85 = arith.constant 0 : index
    %278 = vector.load %arg2[%c6_84, %c0_85] : memref<16x1xf32, #tpu.memory_space<vmem>>, vector<2x1xf32>
    %cst_86 = arith.constant 5.000000e-01 : f32
    %279 = vector.broadcast %cst_86 : f32 to vector<2x1xf32>
    %280 = arith.cmpf ogt, %278, %279 : vector<2x1xf32>
    %cst_87 = arith.constant 0.000000e+00 : f32
    %281 = vector.shape_cast %280 : vector<2x1xi1> to vector<2x1xi1>
    %282 = vector.broadcast %281 : vector<2x1xi1> to vector<2x32xi1>
    %283 = vector.broadcast %cst_87 : f32 to vector<2x32xf32>
    %284 = arith.select %282, %277, %283 : vector<2x32xi1>, vector<2x32xf32>
    %c8_88 = arith.constant 8 : index
    %c128_89 = arith.constant 128 : index
    %285 = vector.load %arg14[%c8_88, %c128_89] : memref<16x256xf32, #tpu.memory_space<vmem>>, vector<2x128xf32>
    %cst_90 = arith.constant dense<0.000000e+00> : vector<2x128xf32>
    %286 = tpu.matmul %238, %8, %cst_90 {dimension_numbers = #tpu.dot_dimension_numbers<[1], [0], [0], [1], [0, 0, 1, 1], [], []>} : vector<2x32xf32>, vector<32x128xf32>, vector<2x128xf32> -> vector<2x128xf32>
    %287 = arith.addf %285, %286 : vector<2x128xf32>
    %288 = vector.extract_strided_slice %287 {offsets = [0, 0], sizes = [2, 32], strides = [1, 1]} : vector<2x128xf32> to vector<2x32xf32>
    %289 = arith.negf %288 : vector<2x32xf32>
    %290 = math.exp %289 : vector<2x32xf32>
    %cst_91 = arith.constant 1.000000e+00 : f32
    %291 = vector.broadcast %cst_91 : f32 to vector<2x32xf32>
    %292 = arith.addf %291, %290 : vector<2x32xf32>
    %293 = arith.divf %291, %292 : vector<2x32xf32>
    %294 = vector.extract_strided_slice %287 {offsets = [0, 32], sizes = [2, 32], strides = [1, 1]} : vector<2x128xf32> to vector<2x32xf32>
    %295 = arith.negf %294 : vector<2x32xf32>
    %296 = math.exp %295 : vector<2x32xf32>
    %cst_92 = arith.constant 1.000000e+00 : f32
    %297 = vector.broadcast %cst_92 : f32 to vector<2x32xf32>
    %298 = arith.addf %297, %296 : vector<2x32xf32>
    %299 = arith.divf %297, %298 : vector<2x32xf32>
    %300 = vector.extract_strided_slice %287 {offsets = [0, 64], sizes = [2, 32], strides = [1, 1]} : vector<2x128xf32> to vector<2x32xf32>
    %301 = math.tanh %300 : vector<2x32xf32>
    %302 = vector.extract_strided_slice %287 {offsets = [0, 96], sizes = [2, 32], strides = [1, 1]} : vector<2x128xf32> to vector<2x32xf32>
    %303 = arith.negf %302 : vector<2x32xf32>
    %304 = math.exp %303 : vector<2x32xf32>
    %cst_93 = arith.constant 1.000000e+00 : f32
    %305 = vector.broadcast %cst_93 : f32 to vector<2x32xf32>
    %306 = arith.addf %305, %304 : vector<2x32xf32>
    %307 = arith.divf %305, %306 : vector<2x32xf32>
    %308 = arith.mulf %299, %241 : vector<2x32xf32>
    %309 = arith.mulf %293, %301 : vector<2x32xf32>
    %310 = arith.addf %308, %309 : vector<2x32xf32>
    %311 = math.tanh %310 : vector<2x32xf32>
    %312 = arith.mulf %307, %311 : vector<2x32xf32>
    %c8_94 = arith.constant 8 : index
    %c0_95 = arith.constant 0 : index
    %313 = vector.load %arg2[%c8_94, %c0_95] : memref<16x1xf32, #tpu.memory_space<vmem>>, vector<2x1xf32>
    %cst_96 = arith.constant 5.000000e-01 : f32
    %314 = vector.broadcast %cst_96 : f32 to vector<2x1xf32>
    %315 = arith.cmpf ogt, %313, %314 : vector<2x1xf32>
    %316 = vector.shape_cast %315 : vector<2x1xi1> to vector<2x1xi1>
    %317 = vector.broadcast %316 : vector<2x1xi1> to vector<2x32xi1>
    %318 = arith.select %317, %312, %238 : vector<2x32xi1>, vector<2x32xf32>
    %319 = vector.shape_cast %315 : vector<2x1xi1> to vector<2x1xi1>
    %320 = vector.broadcast %319 : vector<2x1xi1> to vector<2x32xi1>
    %321 = arith.select %320, %310, %241 : vector<2x32xi1>, vector<2x32xf32>
    %322 = vector.extract_strided_slice %284 {offsets = [0, 0], sizes = [1, 32], strides = [1, 1]} : vector<2x32xf32> to vector<1x32xf32>
    %c3 = arith.constant 3 : index
    %c0_97 = arith.constant 0 : index
    %323 = vector.load %arg15[%c3, %c0_97] : memref<16x64xf32, #tpu.memory_space<vmem>>, vector<1x32xf32>
    tpu.vector_store %arg15[%c3, %c0_97], %322 {strides = array<i32>} : memref<16x64xf32, #tpu.memory_space<vmem>>, vector<1x32xf32>,
    %324 = vector.extract_strided_slice %318 {offsets = [0, 0], sizes = [1, 32], strides = [1, 1]} : vector<2x32xf32> to vector<1x32xf32>
    %c4_98 = arith.constant 4 : index
    %c32_99 = arith.constant 32 : index
    %325 = vector.load %arg15[%c4_98, %c32_99] : memref<16x64xf32, #tpu.memory_space<vmem>>, vector<1x32xf32>
    tpu.vector_store %arg15[%c4_98, %c32_99], %324 {strides = array<i32>} : memref<16x64xf32, #tpu.memory_space<vmem>>, vector<1x32xf32>,
    %326 = vector.extract_strided_slice %284 {offsets = [1, 0], sizes = [1, 32], strides = [1, 1]} : vector<2x32xf32> to vector<1x32xf32>
    %c11 = arith.constant 11 : index
    %c0_100 = arith.constant 0 : index
    %327 = vector.load %arg15[%c11, %c0_100] : memref<16x64xf32, #tpu.memory_space<vmem>>, vector<1x32xf32>
    tpu.vector_store %arg15[%c11, %c0_100], %326 {strides = array<i32>} : memref<16x64xf32, #tpu.memory_space<vmem>>, vector<1x32xf32>,
    %328 = vector.extract_strided_slice %318 {offsets = [1, 0], sizes = [1, 32], strides = [1, 1]} : vector<2x32xf32> to vector<1x32xf32>
    %c12_101 = arith.constant 12 : index
    %c32_102 = arith.constant 32 : index
    %329 = vector.load %arg15[%c12_101, %c32_102] : memref<16x64xf32, #tpu.memory_space<vmem>>, vector<1x32xf32>
    tpu.vector_store %arg15[%c12_101, %c32_102], %328 {strides = array<i32>} : memref<16x64xf32, #tpu.memory_space<vmem>>, vector<1x32xf32>,
    %c8_103 = arith.constant 8 : index
    %c0_104 = arith.constant 0 : index
    %330 = vector.load %arg14[%c8_103, %c0_104] : memref<16x256xf32, #tpu.memory_space<vmem>>, vector<2x128xf32>
    %cst_105 = arith.constant dense<0.000000e+00> : vector<2x128xf32>
    %331 = tpu.matmul %277, %7, %cst_105 {dimension_numbers = #tpu.dot_dimension_numbers<[1], [0], [0], [1], [0, 0, 1, 1], [], []>} : vector<2x32xf32>, vector<32x128xf32>, vector<2x128xf32> -> vector<2x128xf32>
    %332 = arith.addf %330, %331 : vector<2x128xf32>
    %333 = vector.extract_strided_slice %332 {offsets = [0, 0], sizes = [2, 32], strides = [1, 1]} : vector<2x128xf32> to vector<2x32xf32>
    %334 = arith.negf %333 : vector<2x32xf32>
    %335 = math.exp %334 : vector<2x32xf32>
    %cst_106 = arith.constant 1.000000e+00 : f32
    %336 = vector.broadcast %cst_106 : f32 to vector<2x32xf32>
    %337 = arith.addf %336, %335 : vector<2x32xf32>
    %338 = arith.divf %336, %337 : vector<2x32xf32>
    %339 = vector.extract_strided_slice %332 {offsets = [0, 32], sizes = [2, 32], strides = [1, 1]} : vector<2x128xf32> to vector<2x32xf32>
    %340 = arith.negf %339 : vector<2x32xf32>
    %341 = math.exp %340 : vector<2x32xf32>
    %cst_107 = arith.constant 1.000000e+00 : f32
    %342 = vector.broadcast %cst_107 : f32 to vector<2x32xf32>
    %343 = arith.addf %342, %341 : vector<2x32xf32>
    %344 = arith.divf %342, %343 : vector<2x32xf32>
    %345 = vector.extract_strided_slice %332 {offsets = [0, 64], sizes = [2, 32], strides = [1, 1]} : vector<2x128xf32> to vector<2x32xf32>
    %346 = math.tanh %345 : vector<2x32xf32>
    %347 = vector.extract_strided_slice %332 {offsets = [0, 96], sizes = [2, 32], strides = [1, 1]} : vector<2x128xf32> to vector<2x32xf32>
    %348 = arith.negf %347 : vector<2x32xf32>
    %349 = math.exp %348 : vector<2x32xf32>
    %cst_108 = arith.constant 1.000000e+00 : f32
    %350 = vector.broadcast %cst_108 : f32 to vector<2x32xf32>
    %351 = arith.addf %350, %349 : vector<2x32xf32>
    %352 = arith.divf %350, %351 : vector<2x32xf32>
    %353 = arith.mulf %344, %275 : vector<2x32xf32>
    %354 = arith.mulf %338, %346 : vector<2x32xf32>
    %355 = arith.addf %353, %354 : vector<2x32xf32>
    %356 = math.tanh %355 : vector<2x32xf32>
    %357 = arith.mulf %352, %356 : vector<2x32xf32>
    %c8_109 = arith.constant 8 : index
    %c0_110 = arith.constant 0 : index
    %358 = vector.load %arg2[%c8_109, %c0_110] : memref<16x1xf32, #tpu.memory_space<vmem>>, vector<2x1xf32>
    %cst_111 = arith.constant 5.000000e-01 : f32
    %359 = vector.broadcast %cst_111 : f32 to vector<2x1xf32>
    %360 = arith.cmpf ogt, %358, %359 : vector<2x1xf32>
    %cst_112 = arith.constant 0.000000e+00 : f32
    %361 = vector.shape_cast %360 : vector<2x1xi1> to vector<2x1xi1>
    %362 = vector.broadcast %361 : vector<2x1xi1> to vector<2x32xi1>
    %363 = vector.broadcast %cst_112 : f32 to vector<2x32xf32>
    %364 = arith.select %362, %357, %363 : vector<2x32xi1>, vector<2x32xf32>
    %c6_113 = arith.constant 6 : index
    %c128_114 = arith.constant 128 : index
    %365 = vector.load %arg14[%c6_113, %c128_114] : memref<16x256xf32, #tpu.memory_space<vmem>>, vector<2x128xf32>
    %cst_115 = arith.constant dense<0.000000e+00> : vector<2x128xf32>
    %366 = tpu.matmul %318, %8, %cst_115 {dimension_numbers = #tpu.dot_dimension_numbers<[1], [0], [0], [1], [0, 0, 1, 1], [], []>} : vector<2x32xf32>, vector<32x128xf32>, vector<2x128xf32> -> vector<2x128xf32>
    %367 = arith.addf %365, %366 : vector<2x128xf32>
    %368 = vector.extract_strided_slice %367 {offsets = [0, 0], sizes = [2, 32], strides = [1, 1]} : vector<2x128xf32> to vector<2x32xf32>
    %369 = arith.negf %368 : vector<2x32xf32>
    %370 = math.exp %369 : vector<2x32xf32>
    %cst_116 = arith.constant 1.000000e+00 : f32
    %371 = vector.broadcast %cst_116 : f32 to vector<2x32xf32>
    %372 = arith.addf %371, %370 : vector<2x32xf32>
    %373 = arith.divf %371, %372 : vector<2x32xf32>
    %374 = vector.extract_strided_slice %367 {offsets = [0, 32], sizes = [2, 32], strides = [1, 1]} : vector<2x128xf32> to vector<2x32xf32>
    %375 = arith.negf %374 : vector<2x32xf32>
    %376 = math.exp %375 : vector<2x32xf32>
    %cst_117 = arith.constant 1.000000e+00 : f32
    %377 = vector.broadcast %cst_117 : f32 to vector<2x32xf32>
    %378 = arith.addf %377, %376 : vector<2x32xf32>
    %379 = arith.divf %377, %378 : vector<2x32xf32>
    %380 = vector.extract_strided_slice %367 {offsets = [0, 64], sizes = [2, 32], strides = [1, 1]} : vector<2x128xf32> to vector<2x32xf32>
    %381 = math.tanh %380 : vector<2x32xf32>
    %382 = vector.extract_strided_slice %367 {offsets = [0, 96], sizes = [2, 32], strides = [1, 1]} : vector<2x128xf32> to vector<2x32xf32>
    %383 = arith.negf %382 : vector<2x32xf32>
    %384 = math.exp %383 : vector<2x32xf32>
    %cst_118 = arith.constant 1.000000e+00 : f32
    %385 = vector.broadcast %cst_118 : f32 to vector<2x32xf32>
    %386 = arith.addf %385, %384 : vector<2x32xf32>
    %387 = arith.divf %385, %386 : vector<2x32xf32>
    %388 = arith.mulf %379, %321 : vector<2x32xf32>
    %389 = arith.mulf %373, %381 : vector<2x32xf32>
    %390 = arith.addf %388, %389 : vector<2x32xf32>
    %391 = math.tanh %390 : vector<2x32xf32>
    %392 = arith.mulf %387, %391 : vector<2x32xf32>
    %c6_119 = arith.constant 6 : index
    %c0_120 = arith.constant 0 : index
    %393 = vector.load %arg2[%c6_119, %c0_120] : memref<16x1xf32, #tpu.memory_space<vmem>>, vector<2x1xf32>
    %cst_121 = arith.constant 5.000000e-01 : f32
    %394 = vector.broadcast %cst_121 : f32 to vector<2x1xf32>
    %395 = arith.cmpf ogt, %393, %394 : vector<2x1xf32>
    %396 = vector.shape_cast %395 : vector<2x1xi1> to vector<2x1xi1>
    %397 = vector.broadcast %396 : vector<2x1xi1> to vector<2x32xi1>
    %398 = arith.select %397, %392, %318 : vector<2x32xi1>, vector<2x32xf32>
    %399 = vector.shape_cast %395 : vector<2x1xi1> to vector<2x1xi1>
    %400 = vector.broadcast %399 : vector<2x1xi1> to vector<2x32xi1>
    %401 = arith.select %400, %390, %321 : vector<2x32xi1>, vector<2x32xf32>
    %402 = vector.extract_strided_slice %364 {offsets = [0, 0], sizes = [1, 32], strides = [1, 1]} : vector<2x32xf32> to vector<1x32xf32>
    %c4_122 = arith.constant 4 : index
    %c0_123 = arith.constant 0 : index
    %403 = vector.load %arg15[%c4_122, %c0_123] : memref<16x64xf32, #tpu.memory_space<vmem>>, vector<1x32xf32>
    tpu.vector_store %arg15[%c4_122, %c0_123], %402 {strides = array<i32>} : memref<16x64xf32, #tpu.memory_space<vmem>>, vector<1x32xf32>,
    %404 = vector.extract_strided_slice %398 {offsets = [0, 0], sizes = [1, 32], strides = [1, 1]} : vector<2x32xf32> to vector<1x32xf32>
    %c3_124 = arith.constant 3 : index
    %c32_125 = arith.constant 32 : index
    %405 = vector.load %arg15[%c3_124, %c32_125] : memref<16x64xf32, #tpu.memory_space<vmem>>, vector<1x32xf32>
    tpu.vector_store %arg15[%c3_124, %c32_125], %404 {strides = array<i32>} : memref<16x64xf32, #tpu.memory_space<vmem>>, vector<1x32xf32>,
    %406 = vector.extract_strided_slice %364 {offsets = [1, 0], sizes = [1, 32], strides = [1, 1]} : vector<2x32xf32> to vector<1x32xf32>
    %c12_126 = arith.constant 12 : index
    %c0_127 = arith.constant 0 : index
    %407 = vector.load %arg15[%c12_126, %c0_127] : memref<16x64xf32, #tpu.memory_space<vmem>>, vector<1x32xf32>
    tpu.vector_store %arg15[%c12_126, %c0_127], %406 {strides = array<i32>} : memref<16x64xf32, #tpu.memory_space<vmem>>, vector<1x32xf32>,
    %408 = vector.extract_strided_slice %398 {offsets = [1, 0], sizes = [1, 32], strides = [1, 1]} : vector<2x32xf32> to vector<1x32xf32>
    %c11_128 = arith.constant 11 : index
    %c32_129 = arith.constant 32 : index
    %409 = vector.load %arg15[%c11_128, %c32_129] : memref<16x64xf32, #tpu.memory_space<vmem>>, vector<1x32xf32>
    tpu.vector_store %arg15[%c11_128, %c32_129], %408 {strides = array<i32>} : memref<16x64xf32, #tpu.memory_space<vmem>>, vector<1x32xf32>,
    %c10_130 = arith.constant 10 : index
    %c0_131 = arith.constant 0 : index
    %410 = vector.load %arg14[%c10_130, %c0_131] : memref<16x256xf32, #tpu.memory_space<vmem>>, vector<2x128xf32>
    %cst_132 = arith.constant dense<0.000000e+00> : vector<2x128xf32>
    %411 = tpu.matmul %357, %7, %cst_132 {dimension_numbers = #tpu.dot_dimension_numbers<[1], [0], [0], [1], [0, 0, 1, 1], [], []>} : vector<2x32xf32>, vector<32x128xf32>, vector<2x128xf32> -> vector<2x128xf32>
    %412 = arith.addf %410, %411 : vector<2x128xf32>
    %413 = vector.extract_strided_slice %412 {offsets = [0, 0], sizes = [2, 32], strides = [1, 1]} : vector<2x128xf32> to vector<2x32xf32>
    %414 = arith.negf %413 : vector<2x32xf32>
    %415 = math.exp %414 : vector<2x32xf32>
    %cst_133 = arith.constant 1.000000e+00 : f32
    %416 = vector.broadcast %cst_133 : f32 to vector<2x32xf32>
    %417 = arith.addf %416, %415 : vector<2x32xf32>
    %418 = arith.divf %416, %417 : vector<2x32xf32>
    %419 = vector.extract_strided_slice %412 {offsets = [0, 32], sizes = [2, 32], strides = [1, 1]} : vector<2x128xf32> to vector<2x32xf32>
    %420 = arith.negf %419 : vector<2x32xf32>
    %421 = math.exp %420 : vector<2x32xf32>
    %cst_134 = arith.constant 1.000000e+00 : f32
    %422 = vector.broadcast %cst_134 : f32 to vector<2x32xf32>
    %423 = arith.addf %422, %421 : vector<2x32xf32>
    %424 = arith.divf %422, %423 : vector<2x32xf32>
    %425 = vector.extract_strided_slice %412 {offsets = [0, 64], sizes = [2, 32], strides = [1, 1]} : vector<2x128xf32> to vector<2x32xf32>
    %426 = math.tanh %425 : vector<2x32xf32>
    %427 = vector.extract_strided_slice %412 {offsets = [0, 96], sizes = [2, 32], strides = [1, 1]} : vector<2x128xf32> to vector<2x32xf32>
    %428 = arith.negf %427 : vector<2x32xf32>
    %429 = math.exp %428 : vector<2x32xf32>
    %cst_135 = arith.constant 1.000000e+00 : f32
    %430 = vector.broadcast %cst_135 : f32 to vector<2x32xf32>
    %431 = arith.addf %430, %429 : vector<2x32xf32>
    %432 = arith.divf %430, %431 : vector<2x32xf32>
    %433 = arith.mulf %424, %355 : vector<2x32xf32>
    %434 = arith.mulf %418, %426 : vector<2x32xf32>
    %435 = arith.addf %433, %434 : vector<2x32xf32>
    %436 = math.tanh %435 : vector<2x32xf32>
    %437 = arith.mulf %432, %436 : vector<2x32xf32>
    %c10_136 = arith.constant 10 : index
    %c0_137 = arith.constant 0 : index
    %438 = vector.load %arg2[%c10_136, %c0_137] : memref<16x1xf32, #tpu.memory_space<vmem>>, vector<2x1xf32>
    %cst_138 = arith.constant 5.000000e-01 : f32
    %439 = vector.broadcast %cst_138 : f32 to vector<2x1xf32>
    %440 = arith.cmpf ogt, %438, %439 : vector<2x1xf32>
    %cst_139 = arith.constant 0.000000e+00 : f32
    %441 = vector.shape_cast %440 : vector<2x1xi1> to vector<2x1xi1>
    %442 = vector.broadcast %441 : vector<2x1xi1> to vector<2x32xi1>
    %443 = vector.broadcast %cst_139 : f32 to vector<2x32xf32>
    %444 = arith.select %442, %437, %443 : vector<2x32xi1>, vector<2x32xf32>
    %c4_140 = arith.constant 4 : index
    %c128_141 = arith.constant 128 : index
    %445 = vector.load %arg14[%c4_140, %c128_141] : memref<16x256xf32, #tpu.memory_space<vmem>>, vector<2x128xf32>
    %cst_142 = arith.constant dense<0.000000e+00> : vector<2x128xf32>
    %446 = tpu.matmul %398, %8, %cst_142 {dimension_numbers = #tpu.dot_dimension_numbers<[1], [0], [0], [1], [0, 0, 1, 1], [], []>} : vector<2x32xf32>, vector<32x128xf32>, vector<2x128xf32> -> vector<2x128xf32>
    %447 = arith.addf %445, %446 : vector<2x128xf32>
    %448 = vector.extract_strided_slice %447 {offsets = [0, 0], sizes = [2, 32], strides = [1, 1]} : vector<2x128xf32> to vector<2x32xf32>
    %449 = arith.negf %448 : vector<2x32xf32>
    %450 = math.exp %449 : vector<2x32xf32>
    %cst_143 = arith.constant 1.000000e+00 : f32
    %451 = vector.broadcast %cst_143 : f32 to vector<2x32xf32>
    %452 = arith.addf %451, %450 : vector<2x32xf32>
    %453 = arith.divf %451, %452 : vector<2x32xf32>
    %454 = vector.extract_strided_slice %447 {offsets = [0, 32], sizes = [2, 32], strides = [1, 1]} : vector<2x128xf32> to vector<2x32xf32>
    %455 = arith.negf %454 : vector<2x32xf32>
    %456 = math.exp %455 : vector<2x32xf32>
    %cst_144 = arith.constant 1.000000e+00 : f32
    %457 = vector.broadcast %cst_144 : f32 to vector<2x32xf32>
    %458 = arith.addf %457, %456 : vector<2x32xf32>
    %459 = arith.divf %457, %458 : vector<2x32xf32>
    %460 = vector.extract_strided_slice %447 {offsets = [0, 64], sizes = [2, 32], strides = [1, 1]} : vector<2x128xf32> to vector<2x32xf32>
    %461 = math.tanh %460 : vector<2x32xf32>
    %462 = vector.extract_strided_slice %447 {offsets = [0, 96], sizes = [2, 32], strides = [1, 1]} : vector<2x128xf32> to vector<2x32xf32>
    %463 = arith.negf %462 : vector<2x32xf32>
    %464 = math.exp %463 : vector<2x32xf32>
    %cst_145 = arith.constant 1.000000e+00 : f32
    %465 = vector.broadcast %cst_145 : f32 to vector<2x32xf32>
    %466 = arith.addf %465, %464 : vector<2x32xf32>
    %467 = arith.divf %465, %466 : vector<2x32xf32>
    %468 = arith.mulf %459, %401 : vector<2x32xf32>
    %469 = arith.mulf %453, %461 : vector<2x32xf32>
    %470 = arith.addf %468, %469 : vector<2x32xf32>
    %471 = math.tanh %470 : vector<2x32xf32>
    %472 = arith.mulf %467, %471 : vector<2x32xf32>
    %c4_146 = arith.constant 4 : index
    %c0_147 = arith.constant 0 : index
    %473 = vector.load %arg2[%c4_146, %c0_147] : memref<16x1xf32, #tpu.memory_space<vmem>>, vector<2x1xf32>
    %cst_148 = arith.constant 5.000000e-01 : f32
    %474 = vector.broadcast %cst_148 : f32 to vector<2x1xf32>
    %475 = arith.cmpf ogt, %473, %474 : vector<2x1xf32>
    %476 = vector.shape_cast %475 : vector<2x1xi1> to vector<2x1xi1>
    %477 = vector.broadcast %476 : vector<2x1xi1> to vector<2x32xi1>
    %478 = arith.select %477, %472, %398 : vector<2x32xi1>, vector<2x32xf32>
    %479 = vector.shape_cast %475 : vector<2x1xi1> to vector<2x1xi1>
    %480 = vector.broadcast %479 : vector<2x1xi1> to vector<2x32xi1>
    %481 = arith.select %480, %470, %401 : vector<2x32xi1>, vector<2x32xf32>
    %482 = vector.extract_strided_slice %444 {offsets = [0, 0], sizes = [1, 32], strides = [1, 1]} : vector<2x32xf32> to vector<1x32xf32>
    %c5_149 = arith.constant 5 : index
    %c0_150 = arith.constant 0 : index
    %483 = vector.load %arg15[%c5_149, %c0_150] : memref<16x64xf32, #tpu.memory_space<vmem>>, vector<1x32xf32>
    tpu.vector_store %arg15[%c5_149, %c0_150], %482 {strides = array<i32>} : memref<16x64xf32, #tpu.memory_space<vmem>>, vector<1x32xf32>,
    %484 = vector.extract_strided_slice %478 {offsets = [0, 0], sizes = [1, 32], strides = [1, 1]} : vector<2x32xf32> to vector<1x32xf32>
    %c2_151 = arith.constant 2 : index
    %c32_152 = arith.constant 32 : index
    %485 = vector.load %arg15[%c2_151, %c32_152] : memref<16x64xf32, #tpu.memory_space<vmem>>, vector<1x32xf32>
    tpu.vector_store %arg15[%c2_151, %c32_152], %484 {strides = array<i32>} : memref<16x64xf32, #tpu.memory_space<vmem>>, vector<1x32xf32>,
    %486 = vector.extract_strided_slice %444 {offsets = [1, 0], sizes = [1, 32], strides = [1, 1]} : vector<2x32xf32> to vector<1x32xf32>
    %c13_153 = arith.constant 13 : index
    %c0_154 = arith.constant 0 : index
    %487 = vector.load %arg15[%c13_153, %c0_154] : memref<16x64xf32, #tpu.memory_space<vmem>>, vector<1x32xf32>
    tpu.vector_store %arg15[%c13_153, %c0_154], %486 {strides = array<i32>} : memref<16x64xf32, #tpu.memory_space<vmem>>, vector<1x32xf32>,
    %488 = vector.extract_strided_slice %478 {offsets = [1, 0], sizes = [1, 32], strides = [1, 1]} : vector<2x32xf32> to vector<1x32xf32>
    %c10_155 = arith.constant 10 : index
    %c32_156 = arith.constant 32 : index
    %489 = vector.load %arg15[%c10_155, %c32_156] : memref<16x64xf32, #tpu.memory_space<vmem>>, vector<1x32xf32>
    tpu.vector_store %arg15[%c10_155, %c32_156], %488 {strides = array<i32>} : memref<16x64xf32, #tpu.memory_space<vmem>>, vector<1x32xf32>,
    %c12_157 = arith.constant 12 : index
    %c0_158 = arith.constant 0 : index
    %490 = vector.load %arg14[%c12_157, %c0_158] : memref<16x256xf32, #tpu.memory_space<vmem>>, vector<2x128xf32>
    %cst_159 = arith.constant dense<0.000000e+00> : vector<2x128xf32>
    %491 = tpu.matmul %437, %7, %cst_159 {dimension_numbers = #tpu.dot_dimension_numbers<[1], [0], [0], [1], [0, 0, 1, 1], [], []>} : vector<2x32xf32>, vector<32x128xf32>, vector<2x128xf32> -> vector<2x128xf32>
    %492 = arith.addf %490, %491 : vector<2x128xf32>
    %493 = vector.extract_strided_slice %492 {offsets = [0, 0], sizes = [2, 32], strides = [1, 1]} : vector<2x128xf32> to vector<2x32xf32>
    %494 = arith.negf %493 : vector<2x32xf32>
    %495 = math.exp %494 : vector<2x32xf32>
    %cst_160 = arith.constant 1.000000e+00 : f32
    %496 = vector.broadcast %cst_160 : f32 to vector<2x32xf32>
    %497 = arith.addf %496, %495 : vector<2x32xf32>
    %498 = arith.divf %496, %497 : vector<2x32xf32>
    %499 = vector.extract_strided_slice %492 {offsets = [0, 32], sizes = [2, 32], strides = [1, 1]} : vector<2x128xf32> to vector<2x32xf32>
    %500 = arith.negf %499 : vector<2x32xf32>
    %501 = math.exp %500 : vector<2x32xf32>
    %cst_161 = arith.constant 1.000000e+00 : f32
    %502 = vector.broadcast %cst_161 : f32 to vector<2x32xf32>
    %503 = arith.addf %502, %501 : vector<2x32xf32>
    %504 = arith.divf %502, %503 : vector<2x32xf32>
    %505 = vector.extract_strided_slice %492 {offsets = [0, 64], sizes = [2, 32], strides = [1, 1]} : vector<2x128xf32> to vector<2x32xf32>
    %506 = math.tanh %505 : vector<2x32xf32>
    %507 = vector.extract_strided_slice %492 {offsets = [0, 96], sizes = [2, 32], strides = [1, 1]} : vector<2x128xf32> to vector<2x32xf32>
    %508 = arith.negf %507 : vector<2x32xf32>
    %509 = math.exp %508 : vector<2x32xf32>
    %cst_162 = arith.constant 1.000000e+00 : f32
    %510 = vector.broadcast %cst_162 : f32 to vector<2x32xf32>
    %511 = arith.addf %510, %509 : vector<2x32xf32>
    %512 = arith.divf %510, %511 : vector<2x32xf32>
    %513 = arith.mulf %504, %435 : vector<2x32xf32>
    %514 = arith.mulf %498, %506 : vector<2x32xf32>
    %515 = arith.addf %513, %514 : vector<2x32xf32>
    %516 = math.tanh %515 : vector<2x32xf32>
    %517 = arith.mulf %512, %516 : vector<2x32xf32>
    %c12_163 = arith.constant 12 : index
    %c0_164 = arith.constant 0 : index
    %518 = vector.load %arg2[%c12_163, %c0_164] : memref<16x1xf32, #tpu.memory_space<vmem>>, vector<2x1xf32>
    %cst_165 = arith.constant 5.000000e-01 : f32
    %519 = vector.broadcast %cst_165 : f32 to vector<2x1xf32>
    %520 = arith.cmpf ogt, %518, %519 : vector<2x1xf32>
    %cst_166 = arith.constant 0.000000e+00 : f32
    %521 = vector.shape_cast %520 : vector<2x1xi1> to vector<2x1xi1>
    %522 = vector.broadcast %521 : vector<2x1xi1> to vector<2x32xi1>
    %523 = vector.broadcast %cst_166 : f32 to vector<2x32xf32>
    %524 = arith.select %522, %517, %523 : vector<2x32xi1>, vector<2x32xf32>
    %c2_167 = arith.constant 2 : index
    %c128_168 = arith.constant 128 : index
    %525 = vector.load %arg14[%c2_167, %c128_168] : memref<16x256xf32, #tpu.memory_space<vmem>>, vector<2x128xf32>
    %cst_169 = arith.constant dense<0.000000e+00> : vector<2x128xf32>
    %526 = tpu.matmul %478, %8, %cst_169 {dimension_numbers = #tpu.dot_dimension_numbers<[1], [0], [0], [1], [0, 0, 1, 1], [], []>} : vector<2x32xf32>, vector<32x128xf32>, vector<2x128xf32> -> vector<2x128xf32>
    %527 = arith.addf %525, %526 : vector<2x128xf32>
    %528 = vector.extract_strided_slice %527 {offsets = [0, 0], sizes = [2, 32], strides = [1, 1]} : vector<2x128xf32> to vector<2x32xf32>
    %529 = arith.negf %528 : vector<2x32xf32>
    %530 = math.exp %529 : vector<2x32xf32>
    %cst_170 = arith.constant 1.000000e+00 : f32
    %531 = vector.broadcast %cst_170 : f32 to vector<2x32xf32>
    %532 = arith.addf %531, %530 : vector<2x32xf32>
    %533 = arith.divf %531, %532 : vector<2x32xf32>
    %534 = vector.extract_strided_slice %527 {offsets = [0, 32], sizes = [2, 32], strides = [1, 1]} : vector<2x128xf32> to vector<2x32xf32>
    %535 = arith.negf %534 : vector<2x32xf32>
    %536 = math.exp %535 : vector<2x32xf32>
    %cst_171 = arith.constant 1.000000e+00 : f32
    %537 = vector.broadcast %cst_171 : f32 to vector<2x32xf32>
    %538 = arith.addf %537, %536 : vector<2x32xf32>
    %539 = arith.divf %537, %538 : vector<2x32xf32>
    %540 = vector.extract_strided_slice %527 {offsets = [0, 64], sizes = [2, 32], strides = [1, 1]} : vector<2x128xf32> to vector<2x32xf32>
    %541 = math.tanh %540 : vector<2x32xf32>
    %542 = vector.extract_strided_slice %527 {offsets = [0, 96], sizes = [2, 32], strides = [1, 1]} : vector<2x128xf32> to vector<2x32xf32>
    %543 = arith.negf %542 : vector<2x32xf32>
    %544 = math.exp %543 : vector<2x32xf32>
    %cst_172 = arith.constant 1.000000e+00 : f32
    %545 = vector.broadcast %cst_172 : f32 to vector<2x32xf32>
    %546 = arith.addf %545, %544 : vector<2x32xf32>
    %547 = arith.divf %545, %546 : vector<2x32xf32>
    %548 = arith.mulf %539, %481 : vector<2x32xf32>
    %549 = arith.mulf %533, %541 : vector<2x32xf32>
    %550 = arith.addf %548, %549 : vector<2x32xf32>
    %551 = math.tanh %550 : vector<2x32xf32>
    %552 = arith.mulf %547, %551 : vector<2x32xf32>
    %c2_173 = arith.constant 2 : index
    %c0_174 = arith.constant 0 : index
    %553 = vector.load %arg2[%c2_173, %c0_174] : memref<16x1xf32, #tpu.memory_space<vmem>>, vector<2x1xf32>
    %cst_175 = arith.constant 5.000000e-01 : f32
    %554 = vector.broadcast %cst_175 : f32 to vector<2x1xf32>
    %555 = arith.cmpf ogt, %553, %554 : vector<2x1xf32>
    %556 = vector.shape_cast %555 : vector<2x1xi1> to vector<2x1xi1>
    %557 = vector.broadcast %556 : vector<2x1xi1> to vector<2x32xi1>
    %558 = arith.select %557, %552, %478 : vector<2x32xi1>, vector<2x32xf32>
    %559 = vector.shape_cast %555 : vector<2x1xi1> to vector<2x1xi1>
    %560 = vector.broadcast %559 : vector<2x1xi1> to vector<2x32xi1>
    %561 = arith.select %560, %550, %481 : vector<2x32xi1>, vector<2x32xf32>
    %562 = vector.extract_strided_slice %524 {offsets = [0, 0], sizes = [1, 32], strides = [1, 1]} : vector<2x32xf32> to vector<1x32xf32>
    %c6_176 = arith.constant 6 : index
    %c0_177 = arith.constant 0 : index
    %563 = vector.load %arg15[%c6_176, %c0_177] : memref<16x64xf32, #tpu.memory_space<vmem>>, vector<1x32xf32>
    tpu.vector_store %arg15[%c6_176, %c0_177], %562 {strides = array<i32>} : memref<16x64xf32, #tpu.memory_space<vmem>>, vector<1x32xf32>,
    %564 = vector.extract_strided_slice %558 {offsets = [0, 0], sizes = [1, 32], strides = [1, 1]} : vector<2x32xf32> to vector<1x32xf32>
    %c1_178 = arith.constant 1 : index
    %c32_179 = arith.constant 32 : index
    %565 = vector.load %arg15[%c1_178, %c32_179] : memref<16x64xf32, #tpu.memory_space<vmem>>, vector<1x32xf32>
    tpu.vector_store %arg15[%c1_178, %c32_179], %564 {strides = array<i32>} : memref<16x64xf32, #tpu.memory_space<vmem>>, vector<1x32xf32>,
    %566 = vector.extract_strided_slice %524 {offsets = [1, 0], sizes = [1, 32], strides = [1, 1]} : vector<2x32xf32> to vector<1x32xf32>
    %c14_180 = arith.constant 14 : index
    %c0_181 = arith.constant 0 : index
    %567 = vector.load %arg15[%c14_180, %c0_181] : memref<16x64xf32, #tpu.memory_space<vmem>>, vector<1x32xf32>
    tpu.vector_store %arg15[%c14_180, %c0_181], %566 {strides = array<i32>} : memref<16x64xf32, #tpu.memory_space<vmem>>, vector<1x32xf32>,
    %568 = vector.extract_strided_slice %558 {offsets = [1, 0], sizes = [1, 32], strides = [1, 1]} : vector<2x32xf32> to vector<1x32xf32>
    %c9_182 = arith.constant 9 : index
    %c32_183 = arith.constant 32 : index
    %569 = vector.load %arg15[%c9_182, %c32_183] : memref<16x64xf32, #tpu.memory_space<vmem>>, vector<1x32xf32>
    tpu.vector_store %arg15[%c9_182, %c32_183], %568 {strides = array<i32>} : memref<16x64xf32, #tpu.memory_space<vmem>>, vector<1x32xf32>,
    %c14_184 = arith.constant 14 : index
    %c0_185 = arith.constant 0 : index
    %570 = vector.load %arg14[%c14_184, %c0_185] : memref<16x256xf32, #tpu.memory_space<vmem>>, vector<2x128xf32>
    %cst_186 = arith.constant dense<0.000000e+00> : vector<2x128xf32>
    %571 = tpu.matmul %517, %7, %cst_186 {dimension_numbers = #tpu.dot_dimension_numbers<[1], [0], [0], [1], [0, 0, 1, 1], [], []>} : vector<2x32xf32>, vector<32x128xf32>, vector<2x128xf32> -> vector<2x128xf32>
    %572 = arith.addf %570, %571 : vector<2x128xf32>
    %573 = vector.extract_strided_slice %572 {offsets = [0, 0], sizes = [2, 32], strides = [1, 1]} : vector<2x128xf32> to vector<2x32xf32>
    %574 = arith.negf %573 : vector<2x32xf32>
    %575 = math.exp %574 : vector<2x32xf32>
    %cst_187 = arith.constant 1.000000e+00 : f32
    %576 = vector.broadcast %cst_187 : f32 to vector<2x32xf32>
    %577 = arith.addf %576, %575 : vector<2x32xf32>
    %578 = arith.divf %576, %577 : vector<2x32xf32>
    %579 = vector.extract_strided_slice %572 {offsets = [0, 32], sizes = [2, 32], strides = [1, 1]} : vector<2x128xf32> to vector<2x32xf32>
    %580 = arith.negf %579 : vector<2x32xf32>
    %581 = math.exp %580 : vector<2x32xf32>
    %cst_188 = arith.constant 1.000000e+00 : f32
    %582 = vector.broadcast %cst_188 : f32 to vector<2x32xf32>
    %583 = arith.addf %582, %581 : vector<2x32xf32>
    %584 = arith.divf %582, %583 : vector<2x32xf32>
    %585 = vector.extract_strided_slice %572 {offsets = [0, 64], sizes = [2, 32], strides = [1, 1]} : vector<2x128xf32> to vector<2x32xf32>
    %586 = math.tanh %585 : vector<2x32xf32>
    %587 = vector.extract_strided_slice %572 {offsets = [0, 96], sizes = [2, 32], strides = [1, 1]} : vector<2x128xf32> to vector<2x32xf32>
    %588 = arith.negf %587 : vector<2x32xf32>
    %589 = math.exp %588 : vector<2x32xf32>
    %cst_189 = arith.constant 1.000000e+00 : f32
    %590 = vector.broadcast %cst_189 : f32 to vector<2x32xf32>
    %591 = arith.addf %590, %589 : vector<2x32xf32>
    %592 = arith.divf %590, %591 : vector<2x32xf32>
    %593 = arith.mulf %584, %515 : vector<2x32xf32>
    %594 = arith.mulf %578, %586 : vector<2x32xf32>
    %595 = arith.addf %593, %594 : vector<2x32xf32>
    %596 = math.tanh %595 : vector<2x32xf32>
    %597 = arith.mulf %592, %596 : vector<2x32xf32>
    %c14_190 = arith.constant 14 : index
    %c0_191 = arith.constant 0 : index
    %598 = vector.load %arg2[%c14_190, %c0_191] : memref<16x1xf32, #tpu.memory_space<vmem>>, vector<2x1xf32>
    %cst_192 = arith.constant 5.000000e-01 : f32
    %599 = vector.broadcast %cst_192 : f32 to vector<2x1xf32>
    %600 = arith.cmpf ogt, %598, %599 : vector<2x1xf32>
    %cst_193 = arith.constant 0.000000e+00 : f32
    %601 = vector.shape_cast %600 : vector<2x1xi1> to vector<2x1xi1>
    %602 = vector.broadcast %601 : vector<2x1xi1> to vector<2x32xi1>
    %603 = vector.broadcast %cst_193 : f32 to vector<2x32xf32>
    %604 = arith.select %602, %597, %603 : vector<2x32xi1>, vector<2x32xf32>
    %c0_194 = arith.constant 0 : index
    %c128_195 = arith.constant 128 : index
    %605 = vector.load %arg14[%c0_194, %c128_195] : memref<16x256xf32, #tpu.memory_space<vmem>>, vector<2x128xf32>
    %cst_196 = arith.constant dense<0.000000e+00> : vector<2x128xf32>
    %606 = tpu.matmul %558, %8, %cst_196 {dimension_numbers = #tpu.dot_dimension_numbers<[1], [0], [0], [1], [0, 0, 1, 1], [], []>} : vector<2x32xf32>, vector<32x128xf32>, vector<2x128xf32> -> vector<2x128xf32>
    %607 = arith.addf %605, %606 : vector<2x128xf32>
    %608 = vector.extract_strided_slice %607 {offsets = [0, 0], sizes = [2, 32], strides = [1, 1]} : vector<2x128xf32> to vector<2x32xf32>
    %609 = arith.negf %608 : vector<2x32xf32>
    %610 = math.exp %609 : vector<2x32xf32>
    %cst_197 = arith.constant 1.000000e+00 : f32
    %611 = vector.broadcast %cst_197 : f32 to vector<2x32xf32>
    %612 = arith.addf %611, %610 : vector<2x32xf32>
    %613 = arith.divf %611, %612 : vector<2x32xf32>
    %614 = vector.extract_strided_slice %607 {offsets = [0, 32], sizes = [2, 32], strides = [1, 1]} : vector<2x128xf32> to vector<2x32xf32>
    %615 = arith.negf %614 : vector<2x32xf32>
    %616 = math.exp %615 : vector<2x32xf32>
    %cst_198 = arith.constant 1.000000e+00 : f32
    %617 = vector.broadcast %cst_198 : f32 to vector<2x32xf32>
    %618 = arith.addf %617, %616 : vector<2x32xf32>
    %619 = arith.divf %617, %618 : vector<2x32xf32>
    %620 = vector.extract_strided_slice %607 {offsets = [0, 64], sizes = [2, 32], strides = [1, 1]} : vector<2x128xf32> to vector<2x32xf32>
    %621 = math.tanh %620 : vector<2x32xf32>
    %622 = vector.extract_strided_slice %607 {offsets = [0, 96], sizes = [2, 32], strides = [1, 1]} : vector<2x128xf32> to vector<2x32xf32>
    %623 = arith.negf %622 : vector<2x32xf32>
    %624 = math.exp %623 : vector<2x32xf32>
    %cst_199 = arith.constant 1.000000e+00 : f32
    %625 = vector.broadcast %cst_199 : f32 to vector<2x32xf32>
    %626 = arith.addf %625, %624 : vector<2x32xf32>
    %627 = arith.divf %625, %626 : vector<2x32xf32>
    %628 = arith.mulf %619, %561 : vector<2x32xf32>
    %629 = arith.mulf %613, %621 : vector<2x32xf32>
    %630 = arith.addf %628, %629 : vector<2x32xf32>
    %631 = math.tanh %630 : vector<2x32xf32>
    %632 = arith.mulf %627, %631 : vector<2x32xf32>
    %c0_200 = arith.constant 0 : index
    %c0_201 = arith.constant 0 : index
    %633 = vector.load %arg2[%c0_200, %c0_201] : memref<16x1xf32, #tpu.memory_space<vmem>>, vector<2x1xf32>
    %cst_202 = arith.constant 5.000000e-01 : f32
    %634 = vector.broadcast %cst_202 : f32 to vector<2x1xf32>
    %635 = arith.cmpf ogt, %633, %634 : vector<2x1xf32>
    %636 = vector.shape_cast %635 : vector<2x1xi1> to vector<2x1xi1>
    %637 = vector.broadcast %636 : vector<2x1xi1> to vector<2x32xi1>
    %638 = arith.select %637, %632, %558 : vector<2x32xi1>, vector<2x32xf32>
    %639 = vector.extract_strided_slice %604 {offsets = [0, 0], sizes = [1, 32], strides = [1, 1]} : vector<2x32xf32> to vector<1x32xf32>
    %c7_203 = arith.constant 7 : index
    %c0_204 = arith.constant 0 : index
    %640 = vector.load %arg15[%c7_203, %c0_204] : memref<16x64xf32, #tpu.memory_space<vmem>>, vector<1x32xf32>
    tpu.vector_store %arg15[%c7_203, %c0_204], %639 {strides = array<i32>} : memref<16x64xf32, #tpu.memory_space<vmem>>, vector<1x32xf32>,
    %641 = vector.extract_strided_slice %638 {offsets = [0, 0], sizes = [1, 32], strides = [1, 1]} : vector<2x32xf32> to vector<1x32xf32>
    %c0_205 = arith.constant 0 : index
    %c32_206 = arith.constant 32 : index
    %642 = vector.load %arg15[%c0_205, %c32_206] : memref<16x64xf32, #tpu.memory_space<vmem>>, vector<1x32xf32>
    tpu.vector_store %arg15[%c0_205, %c32_206], %641 {strides = array<i32>} : memref<16x64xf32, #tpu.memory_space<vmem>>, vector<1x32xf32>,
    %643 = vector.extract_strided_slice %604 {offsets = [1, 0], sizes = [1, 32], strides = [1, 1]} : vector<2x32xf32> to vector<1x32xf32>
    %c15_207 = arith.constant 15 : index
    %c0_208 = arith.constant 0 : index
    %644 = vector.load %arg15[%c15_207, %c0_208] : memref<16x64xf32, #tpu.memory_space<vmem>>, vector<1x32xf32>
    tpu.vector_store %arg15[%c15_207, %c0_208], %643 {strides = array<i32>} : memref<16x64xf32, #tpu.memory_space<vmem>>, vector<1x32xf32>,
    %645 = vector.extract_strided_slice %638 {offsets = [1, 0], sizes = [1, 32], strides = [1, 1]} : vector<2x32xf32> to vector<1x32xf32>
    %c8_209 = arith.constant 8 : index
    %c32_210 = arith.constant 32 : index
    %646 = vector.load %arg15[%c8_209, %c32_210] : memref<16x64xf32, #tpu.memory_space<vmem>>, vector<1x32xf32>
    tpu.vector_store %arg15[%c8_209, %c32_210], %645 {strides = array<i32>} : memref<16x64xf32, #tpu.memory_space<vmem>>, vector<1x32xf32>,
    %c0_211 = arith.constant 0 : index
    %c0_212 = arith.constant 0 : index
    %647 = vector.load %arg8[%c0_211, %c0_212] : memref<64x32xf32, #tpu.memory_space<vmem>>, vector<64x32xf32>
    %c0_213 = arith.constant 0 : index
    %c0_214 = arith.constant 0 : index
    %648 = vector.load %arg9[%c0_213, %c0_214] : memref<1x32xf32, #tpu.memory_space<vmem>>, vector<1x32xf32>
    %c0_215 = arith.constant 0 : index
    %c0_216 = arith.constant 0 : index
    %649 = vector.load %arg10[%c0_215, %c0_216] : memref<32x8xf32, #tpu.memory_space<vmem>>, vector<32x8xf32>
    %c0_217 = arith.constant 0 : index
    %c0_218 = arith.constant 0 : index
    %650 = vector.load %arg11[%c0_217, %c0_218] : memref<32x4xf32, #tpu.memory_space<vmem>>, vector<32x4xf32>
    %c0_219 = arith.constant 0 : index
    %c0_220 = arith.constant 0 : index
    %651 = vector.load %arg12[%c0_219, %c0_220] : memref<1x4xf32, #tpu.memory_space<vmem>>, vector<1x4xf32>
    %c0_221 = arith.constant 0 : index
    %c0_222 = arith.constant 0 : index
    %652 = vector.load %arg15[%c0_221, %c0_222] : memref<16x64xf32, #tpu.memory_space<vmem>>, vector<8x64xf32>
    %cst_223 = arith.constant dense<0.000000e+00> : vector<8x32xf32>
    %653 = tpu.matmul %652, %647, %cst_223 {dimension_numbers = #tpu.dot_dimension_numbers<[1], [0], [0], [1], [0, 0, 1, 1], [], []>} : vector<8x64xf32>, vector<64x32xf32>, vector<8x32xf32> -> vector<8x32xf32>
    %654 = vector.broadcast %648 : vector<1x32xf32> to vector<8x32xf32>
    %655 = arith.addf %653, %654 : vector<8x32xf32>
    %cst_224 = arith.constant 0.000000e+00 : f32
    %656 = vector.broadcast %cst_224 : f32 to vector<8x32xf32>
    %657 = arith.maximumf %655, %656 : vector<8x32xf32>
    %cst_225 = arith.constant dense<0.000000e+00> : vector<8x8xf32>
    %658 = tpu.matmul %657, %649, %cst_225 {dimension_numbers = #tpu.dot_dimension_numbers<[1], [0], [0], [1], [0, 0, 1, 1], [], []>} : vector<8x32xf32>, vector<32x8xf32>, vector<8x8xf32> -> vector<8x8xf32>
    %c0_226 = arith.constant 0 : index
    %c0_227 = arith.constant 0 : index
    %659 = vector.load %arg3[%c0_226, %c0_227] : memref<16x1xf32, #tpu.memory_space<vmem>>, vector<8x1xf32>
    %cst_228 = arith.constant 5.000000e-01 : f32
    %660 = vector.broadcast %cst_228 : f32 to vector<8x1xf32>
    %661 = arith.cmpf olt, %659, %660 : vector<8x1xf32>
    %cst_229 = arith.constant -9.99999979E+10 : f32
    %662 = vector.shape_cast %661 : vector<8x1xi1> to vector<8x1xi1>
    %663 = vector.broadcast %662 : vector<8x1xi1> to vector<8x8xi1>
    %664 = vector.broadcast %cst_229 : f32 to vector<8x8xf32>
    %665 = arith.select %663, %664, %658 : vector<8x8xi1>, vector<8x8xf32>
    %cst_230 = arith.constant dense<0xFF800000> : vector<8xf32>
    %666 = vector.multi_reduction <maximumf>, %665, %cst_230 [0] : vector<8x8xf32> to vector<8xf32>
    %667 = vector.shape_cast %666 : vector<8xf32> to vector<1x8xf32>
    %668 = vector.broadcast %667 : vector<1x8xf32> to vector<8x8xf32>
    %669 = arith.subf %665, %668 : vector<8x8xf32>
    %670 = math.exp %669 : vector<8x8xf32>
    %cst_231 = arith.constant dense<0.000000e+00> : vector<8xf32>
    %671 = vector.multi_reduction <add>, %670, %cst_231 [0] : vector<8x8xf32> to vector<8xf32>
    %672 = vector.shape_cast %671 : vector<8xf32> to vector<1x8xf32>
    %673 = vector.broadcast %672 : vector<1x8xf32> to vector<8x8xf32>
    %674 = arith.divf %670, %673 : vector<8x8xf32>
    %cst_232 = arith.constant dense<0.000000e+00> : vector<8x32xf32>
    %675 = tpu.matmul %674, %657, %cst_232 {dimension_numbers = #tpu.dot_dimension_numbers<[0], [0], [1], [1], [0, 1, 1, 1], [], []>} : vector<8x8xf32>, vector<8x32xf32>, vector<8x32xf32> -> vector<8x32xf32>
    %cst_233 = arith.constant dense<0.000000e+00> : vector<8x4xf32>
    %676 = tpu.matmul %675, %650, %cst_233 {dimension_numbers = #tpu.dot_dimension_numbers<[1], [0], [0], [1], [0, 0, 1, 1], [], []>} : vector<8x32xf32>, vector<32x4xf32>, vector<8x4xf32> -> vector<8x4xf32>
    %677 = vector.broadcast %651 : vector<1x4xf32> to vector<8x4xf32>
    %678 = arith.addf %676, %677 : vector<8x4xf32>
    %c0_234 = arith.constant 0 : index
    %c0_235 = arith.constant 0 : index
    %c0_236 = arith.constant 0 : index
    %679 = vector.load %arg13[%c0_234, %c0_235, %c0_236] : memref<2x8x4xf32, #tpu.memory_space<vmem>>, vector<1x8x4xf32>
    %680 = vector.shape_cast %679 : vector<1x8x4xf32> to vector<8x4xf32>
    %681 = vector.shape_cast %678 : vector<8x4xf32> to vector<1x8x4xf32>
    tpu.vector_store %arg13[%c0_234, %c0_235, %c0_236], %681 {strides = array<i32>} : memref<2x8x4xf32, #tpu.memory_space<vmem>>, vector<1x8x4xf32>,
    %c8_237 = arith.constant 8 : index
    %c0_238 = arith.constant 0 : index
    %682 = vector.load %arg15[%c8_237, %c0_238] : memref<16x64xf32, #tpu.memory_space<vmem>>, vector<8x64xf32>
    %cst_239 = arith.constant dense<0.000000e+00> : vector<8x32xf32>
    %683 = tpu.matmul %682, %647, %cst_239 {dimension_numbers = #tpu.dot_dimension_numbers<[1], [0], [0], [1], [0, 0, 1, 1], [], []>} : vector<8x64xf32>, vector<64x32xf32>, vector<8x32xf32> -> vector<8x32xf32>
    %684 = vector.broadcast %648 : vector<1x32xf32> to vector<8x32xf32>
    %685 = arith.addf %683, %684 : vector<8x32xf32>
    %cst_240 = arith.constant 0.000000e+00 : f32
    %686 = vector.broadcast %cst_240 : f32 to vector<8x32xf32>
    %687 = arith.maximumf %685, %686 : vector<8x32xf32>
    %cst_241 = arith.constant dense<0.000000e+00> : vector<8x8xf32>
    %688 = tpu.matmul %687, %649, %cst_241 {dimension_numbers = #tpu.dot_dimension_numbers<[1], [0], [0], [1], [0, 0, 1, 1], [], []>} : vector<8x32xf32>, vector<32x8xf32>, vector<8x8xf32> -> vector<8x8xf32>
    %c8_242 = arith.constant 8 : index
    %c0_243 = arith.constant 0 : index
    %689 = vector.load %arg3[%c8_242, %c0_243] : memref<16x1xf32, #tpu.memory_space<vmem>>, vector<8x1xf32>
    %cst_244 = arith.constant 5.000000e-01 : f32
    %690 = vector.broadcast %cst_244 : f32 to vector<8x1xf32>
    %691 = arith.cmpf olt, %689, %690 : vector<8x1xf32>
    %cst_245 = arith.constant -9.99999979E+10 : f32
    %692 = vector.shape_cast %691 : vector<8x1xi1> to vector<8x1xi1>
    %693 = vector.broadcast %692 : vector<8x1xi1> to vector<8x8xi1>
    %694 = vector.broadcast %cst_245 : f32 to vector<8x8xf32>
    %695 = arith.select %693, %694, %688 : vector<8x8xi1>, vector<8x8xf32>
    %cst_246 = arith.constant dense<0xFF800000> : vector<8xf32>
    %696 = vector.multi_reduction <maximumf>, %695, %cst_246 [0] : vector<8x8xf32> to vector<8xf32>
    %697 = vector.shape_cast %696 : vector<8xf32> to vector<1x8xf32>
    %698 = vector.broadcast %697 : vector<1x8xf32> to vector<8x8xf32>
    %699 = arith.subf %695, %698 : vector<8x8xf32>
    %700 = math.exp %699 : vector<8x8xf32>
    %cst_247 = arith.constant dense<0.000000e+00> : vector<8xf32>
    %701 = vector.multi_reduction <add>, %700, %cst_247 [0] : vector<8x8xf32> to vector<8xf32>
    %702 = vector.shape_cast %701 : vector<8xf32> to vector<1x8xf32>
    %703 = vector.broadcast %702 : vector<1x8xf32> to vector<8x8xf32>
    %704 = arith.divf %700, %703 : vector<8x8xf32>
    %cst_248 = arith.constant dense<0.000000e+00> : vector<8x32xf32>
    %705 = tpu.matmul %704, %687, %cst_248 {dimension_numbers = #tpu.dot_dimension_numbers<[0], [0], [1], [1], [0, 1, 1, 1], [], []>} : vector<8x8xf32>, vector<8x32xf32>, vector<8x32xf32> -> vector<8x32xf32>
    %cst_249 = arith.constant dense<0.000000e+00> : vector<8x4xf32>
    %706 = tpu.matmul %705, %650, %cst_249 {dimension_numbers = #tpu.dot_dimension_numbers<[1], [0], [0], [1], [0, 0, 1, 1], [], []>} : vector<8x32xf32>, vector<32x4xf32>, vector<8x4xf32> -> vector<8x4xf32>
    %707 = vector.broadcast %651 : vector<1x4xf32> to vector<8x4xf32>
    %708 = arith.addf %706, %707 : vector<8x4xf32>
    %c1_250 = arith.constant 1 : index
    %c0_251 = arith.constant 0 : index
    %c0_252 = arith.constant 0 : index
    %709 = vector.load %arg13[%c1_250, %c0_251, %c0_252] : memref<2x8x4xf32, #tpu.memory_space<vmem>>, vector<1x8x4xf32>
    %710 = vector.shape_cast %709 : vector<1x8x4xf32> to vector<8x4xf32>
    %711 = vector.shape_cast %708 : vector<8x4xf32> to vector<1x8x4xf32>
    tpu.vector_store %arg13[%c1_250, %c0_251, %c0_252], %711 {strides = array<i32>} : memref<2x8x4xf32, #tpu.memory_space<vmem>>, vector<1x8x4xf32>,
    return
  }
  func.func @transform_0(%arg0: i32) -> (i32, i32) {
    %c0_i32 = arith.constant 0 : i32
    %c0_i32_0 = arith.constant 0 : i32
    %c0_i32_1 = arith.constant 0 : i32
    return %c0_i32, %c0_i32_0 : i32, i32
  }
  func.func @transform_1(%arg0: i32) -> (i32, i32) {
    %c0_i32 = arith.constant 0 : i32
    %c0_i32_0 = arith.constant 0 : i32
    %c0_i32_1 = arith.constant 0 : i32
    return %c0_i32, %c0_i32_0 : i32, i32
  }
  func.func @transform_2(%arg0: i32) -> (i32, i32) {
    %c0_i32 = arith.constant 0 : i32
    %c0_i32_0 = arith.constant 0 : i32
    %c0_i32_1 = arith.constant 0 : i32
    return %c0_i32, %c0_i32_0 : i32, i32
  }
  func.func @transform_3(%arg0: i32) -> (i32, i32) {
    %c0_i32 = arith.constant 0 : i32
    %c0_i32_0 = arith.constant 0 : i32
    %c0_i32_1 = arith.constant 0 : i32
    return %c0_i32, %c0_i32_0 : i32, i32
  }
  func.func @transform_4(%arg0: i32) -> (i32, i32) {
    %c0_i32 = arith.constant 0 : i32
    %c0_i32_0 = arith.constant 0 : i32
    %c0_i32_1 = arith.constant 0 : i32
    return %c0_i32, %c0_i32_0 : i32, i32
  }
  func.func @transform_5(%arg0: i32) -> (i32, i32) {
    %c0_i32 = arith.constant 0 : i32
    %c0_i32_0 = arith.constant 0 : i32
    %c0_i32_1 = arith.constant 0 : i32
    return %c0_i32, %c0_i32_0 : i32, i32
  }
  func.func @transform_6(%arg0: i32) -> (i32, i32) {
    %c0_i32 = arith.constant 0 : i32
    %c0_i32_0 = arith.constant 0 : i32
    %c0_i32_1 = arith.constant 0 : i32
    return %c0_i32, %c0_i32_0 : i32, i32
  }
  func.func @transform_7(%arg0: i32) -> (i32, i32) {
    %c0_i32 = arith.constant 0 : i32
    %c0_i32_0 = arith.constant 0 : i32
    %c0_i32_1 = arith.constant 0 : i32
    return %c0_i32, %c0_i32_0 : i32, i32
  }
  func.func @transform_8(%arg0: i32) -> (i32, i32) {
    %c0_i32 = arith.constant 0 : i32
    %c0_i32_0 = arith.constant 0 : i32
    %c0_i32_1 = arith.constant 0 : i32
    return %c0_i32, %c0_i32_0 : i32, i32
  }
  func.func @transform_9(%arg0: i32) -> (i32, i32) {
    %c0_i32 = arith.constant 0 : i32
    %c0_i32_0 = arith.constant 0 : i32
    %c0_i32_1 = arith.constant 0 : i32
    return %c0_i32, %c0_i32_0 : i32, i32
  }
  func.func @transform_10(%arg0: i32) -> (i32, i32) {
    %c0_i32 = arith.constant 0 : i32
    %c0_i32_0 = arith.constant 0 : i32
    %c0_i32_1 = arith.constant 0 : i32
    return %c0_i32, %c0_i32_0 : i32, i32
  }
  func.func @transform_11(%arg0: i32) -> (i32, i32) {
    %c0_i32 = arith.constant 0 : i32
    %c0_i32_0 = arith.constant 0 : i32
    %c0_i32_1 = arith.constant 0 : i32
    return %c0_i32, %c0_i32_0 : i32, i32
  }
  func.func @transform_12(%arg0: i32) -> (i32, i32, i32) {
    %c0_i32 = arith.constant 0 : i32
    %c0_i32_0 = arith.constant 0 : i32
    %c0_i32_1 = arith.constant 0 : i32
    %c0_i32_2 = arith.constant 0 : i32
    return %c0_i32, %c0_i32_0, %c0_i32_1 : i32, i32, i32
  }
}

</mosaic_0001>

<bundles_post_ra>
// kernel: tpu_custom_call.1
= control target key start
LH: loop header
LB: loop body
LE: loop exit
PB: predicated region body
PF: predicated region fallthrough
CT: control target
= control target key end

     0   :  { %v3609_v3 = vmov 0.0   ;;  %v3610_v4 = vmov 0.0|0.0   ;;  %vm3611_vm0 = vmmov 0   ;;  %vm63_vm1 = vcmask 261120   ;;  %s3613_s19 = smov 32   ;;  %s3615_s22 = smov 96   ;;  %s4334_s3 = inlined_call_operand.vmem [shape: f32[32,256], index: 3, kind: input, shape index: {}]   ;;  %s4335_s4 = inlined_call_operand.vmem [shape: f32[32,128], index: 4, kind: input, shape index: {}]   ;;  %s4336_s5 = inlined_call_operand.vmem [shape: f32[32,128], index: 5, kind: input, shape index: {}]   ;;  %s4337_s0 = inlined_call_operand.vmem [shape: f32[16,32], index: 0, kind: input, shape index: {}]   ;;  %s4338_s6 = inlined_call_operand.vmem [shape: f32[1,256], index: 6, kind: input, shape index: {}]   ;;  %s4339_s1 = inlined_call_operand.vmem [shape: f32[16,1], index: 1, kind: input, shape index: {}]   ;;  %s4340_s7 = inlined_call_operand.vmem [shape: f32[64,32], index: 7, kind: input, shape index: {}]   ;;  %s4341_s2 = inlined_call_operand.vmem [shape: f32[16,1], index: 2, kind: input, shape index: {}]   ;;  %s4342_s9 = inlined_call_operand.vmem [shape: f32[32,8], index: 9, kind: input, shape index: {}]   ;;  %s4343_s8 = inlined_call_operand.vmem [shape: f32[1,32], index: 8, kind: input, shape index: {}]   ;;  %s4344_s10 = inlined_call_operand.vmem [shape: f32[32,4], index: 10, kind: input, shape index: {}]   ;;  %s4345_s11 = inlined_call_operand.vmem [shape: f32[1,4], index: 11, kind: input, shape index: {}]   ;;  %s4346_s12 = inlined_call_operand.vmem [shape: f32[2,8,4], index: 12, kind: output, shape index: {}]  }
   0x1   :  { %v44_v0 = vld [vmem:[%s4334_s3 + $0x8] sm:$0xff]  ;;  %v46_v1 = vld [vmem:[%s4334_s3 + $0x18] sm:$0xff]  ;;  %v43_v2 = vld [vmem:[%s4334_s3] sm:$0xff]  ;;  %134 = vmatprep.mubr.f32.mxu0 %v3609_v3  ;;  %3320 = vmatprep.subr.bf16.mxu1 %v3610_v4  ;;  %v53_v28 = vlaneseq }
   0x2   :  { %v3312_v5 = vpack.c.bf16 %v46_v1, %v44_v0  ;;  %v45_v6 = vld [vmem:[%s4334_s3 + $0x10] sm:$0xff]  ;;  %v48_v7 = vld [vmem:[%s4334_s3 + $0x28] sm:$0xff]  ;;  %v50_v8 = vld [vmem:[%s4334_s3 + $0x38] sm:$0xff]  ;;  %3052 = vmatprep.mubr.msk.f32.mxu1 %vm3611_vm0, %v3609_v3  ;;  %v3614_v1 = vmov 0  }
   0x3   :  { %v3314_v9 = vpack.c.bf16 %v45_v6, %v43_v2  ;;  %v3316_v10 = vpack.c.bf16 %v50_v8, %v48_v7  ;;  %v47_v11 = vld [vmem:[%s4334_s3 + $0x20] sm:$0xff]  ;;  %v49_v12 = vld [vmem:[%s4334_s3 + $0x30] sm:$0xff]  ;;  %v152_v14 = vld [vmem:[%s4335_s4 + $0x8] sm:$0xff]  ;;  %v54_v29 = vshrl.u32 %v53_v28, 7  ;;  %3471 = vset.pattern.permute.xlu0 %v3614_v1  ;;  %3472 = vset.pattern.permute.xlu1 %v3614_v1 }
   0x4   :  { %3313 = vmatprep.subr.bf16.mxu0 %v3312_v5  ;;  %v151_v13 = vld [vmem:[%s4335_s4] sm:$0xff]  ;;  %v3318_v15 = vpack.c.bf16 %v49_v12, %v47_v11  ;;  %v153_v17 = vld [vmem:[%s4335_s4 + $0x10] sm:$0xff]  ;;  %v156_v19 = vld [vmem:[%s4336_s5 + $0x8] sm:$0xff] }
   0x5   :  { %3315 = vmatpush1.bf16.msra.mxu0 %v3314_v9  ;;  %v3715_v16 = vpack.c.bf16 %v152_v14, %v151_v13  ;;  %v155_v18 = vld [vmem:[%s4336_s5] sm:$0xff]  ;;  %v154_v20 = vld [vmem:[%s4335_s4 + $0x18] sm:$0xff]  ;;  %v157_v24 = vld [vmem:[%s4336_s5 + $0x10] sm:$0xff]  ;;  %v55_v30 = vsub.s32 0, %v54_v29  ;;  %v59_v32 = vsub.s32 1, %v54_v29 }
   0x6   :  { %3317 = vmatprep.subr.bf16.mxu0 %v3316_v10  ;;  %v3730_v21 = vpack.c.bf16 %v154_v20, %v153_v17  ;;  %v41_v22 = vld [vmem:[%s4337_s0] sm:$0xff]  ;;  %v3736_v23 = vpack.c.bf16 %v156_v19, %v155_v18  ;;  %v158_v25 = vld [vmem:[%s4336_s5 + $0x18] sm:$0xff]  ;;  %v42_v26 = vld [vmem:[%s4337_s0 + $0x8] sm:$0xff] }
   0x7   :  { %3322 = vmatpush3.bf16.msra.mxu1 %v3715_v16  ;;  %v3753_v27 = vpack.c.bf16 %v158_v25, %v157_v24  ;;  %v51_v31 = vld [vmem:[%s4338_s6] sm:$0x3]  ;;  %s3612_s6 = smov 64   ;;  %v365_v11 = vld [vmem:[%s4339_s1 + $0xe] sm:$0x3] }
   0x8   :  { %3323 = vmatprep.subr.bf16.mxu1 %v3610_v4  ;;  %v56_v33 = vrot.slane %v51_v31, %v55_v30  ;;  %v60_v34 = vrot.slane %v51_v31, %v59_v32  ;;  %vm366_vm2 = vcmp.gt.f32.partialorder %v365_v11, 0.5 }
   0x9   :  { %3319 = vmatpush1.bf16.msra.mxu0 %v3318_v15  ;;  %v367_v13 = vsel %vm366_vm2, 1, %v3614_v1 }
   0xa   :  { %3326 = vmatprep.subr.bf16.mxu0 %v3610_v4 }
   0xb   :  { %3325 = vmatpush3.bf16.msra.mxu1 %v3730_v21 }
   0xc   :  { %2879 = vmatmul.mubr.msk.f32.vlgmr.msra.gmra.mrb[0].mxu0 %vm63_vm1, %v41_v22  ;;  %3332 = vmatprep.subr.bf16.mxu1 %v3610_v4 }
   0xd   :  { %140 = vmatprep.mubr.f32.mxu0 %v3609_v3  ;;  %3328 = vmatpush3.bf16.msra.mxu0 %v3736_v23 }
   0xe   :  { %3329 = vmatprep.subr.bf16.mxu0 %v3610_v4  ;;  %3053 = vmatmul.mubr.f32.vlgmr.msra.gmra.mrb[0].mxu1 %v3609_v3 }
   0xf   :  { %3334 = vmatpush3.bf16.msra.mxu1 %v3715_v16  ;;  %3074 = vmatprep.mubr.msk.f32.mxu1 %vm3611_vm0, %v3609_v3 }
  0x10   :  { %2880 = vmatmul.mubr.msk.f32.gmra.mrb[2].mxu0 %vm63_vm1, %v42_v26  ;;  %3335 = vmatprep.subr.bf16.mxu1 %v3610_v4 }
  0x11   :  { %3331 = vmatpush3.bf16.msra.mxu0 %v3753_v27  ;;  %3063 = vmatprep.mubr.msk.f32.mxu0 %vm3611_vm0, %v3609_v3 }
  0x12   :  { %3338 = vmatprep.subr.bf16.mxu0 %v3610_v4 }
  0x13   :  { %3337 = vmatpush3.bf16.msra.mxu1 %v3730_v21 }
  0x14   :  { %3064 = vmatmul.mubr.f32.vlgmr.msra.gmra.mrb[4].mxu0 %v3609_v3  ;;  %3344 = vmatprep.subr.bf16.mxu1 %v3610_v4 }
  0x15   :  { %3340 = vmatpush3.bf16.msra.mxu0 %v3736_v23  ;;  %3085 = vmatprep.mubr.msk.f32.mxu0 %vm3611_vm0, %v3609_v3 }
  0x16   :  { %3341 = vmatprep.subr.bf16.mxu0 %v3610_v4 }
  0x19   :  { %3343 = vmatpush3.bf16.msra.mxu0 %v3753_v27 }
  0x1a   :  { %3350 = vmatprep.subr.bf16.mxu0 %v3610_v4 }
  0xdf   :  { %v136_v35 = vpop.f32.mrb[0].mxu0 }
  0xe0   :  { %v137_v36 = vadd.f32 %v136_v35, %v56_v33  ;;  %v138_v37 = vpop.f32.mrb[1].mxu0 }
  0xe1   :  { %v139_v38 = vadd.f32 %v138_v37, %v60_v34  ;;  %v229_v39 = vpop.f32.mrb[0].mxu1 }
  0xe2   :  { %147 = vst [vmem:[#allocation2] sm:$0xff] %v137_v36  ;;  %v3054_v40 = vpop.f32.mrb[1].mxu1 }
  0xe3   :  { %148 = vst [vmem:[#allocation2 + $0x8] sm:$0xff] %v139_v38  ;;  %v142_v41 = vpop.f32.mrb[2].mxu0 }
  0xe4   :  { %v143_v42 = vadd.f32 %v142_v41, %v56_v33  ;;  %v144_v43 = vpop.f32.mrb[3].mxu0 }
  0xe5   :  { %v145_v44 = vadd.f32 %v144_v43, %v60_v34 }
  0xe6   :  { %149 = vst [vmem:[#allocation2 + $0x10] sm:$0xff] %v143_v42 }
  0xe7   :  { %150 = vst [vmem:[#allocation2 + $0x18] sm:$0xff] %v145_v44  ;;  %v333_v45 = vpop.f32.mrb[4].mxu0 }
  0xe8   :  { %v3065_v46 = vpop.f32.mrb[5].mxu0  ;;  %v338_v47 = vrot.slane %v333_v45, 2 }
  0xe9   :  { %v159_v48 = vld [vmem:[#allocation2] sm:$0x3]  ;;  %v400_v37 = vld [vmem:[#allocation2] sm:$0xc] }
  0xea   :  { %v233_v51 = vadd.f32 %v229_v39, %v159_v48 }
  0xec   :  { %v2881_v55 = vmul.f32 -1.442695, %v233_v51 }
  0xee   :  { %v266_v49 = vld [vmem:[#allocation2 + $0x18] sm:$0xc0]  ;;  %v520_v32 = vld [vmem:[#allocation2 + $0x18] sm:$0x30] }
  0xef   :  { %v340_v50 = vadd.f32 %v338_v47, %v266_v49 }
  0xf1   :  { %3473 = vtanh.f32 %v340_v50  ;;  %v2882_v54 = vmul.f32 -1.442695, %v340_v50 }
  0xf2   :  { %3475 = vtanh.f32 %v233_v51 }
  0xf3   :  { %3477 = vpow2.f32 %v2882_v54 }
  0xf4   :  { %3479 = vpow2.f32 %v2881_v55 }
  0xfb   :  { %v3474_v52 = vpop.eup %3473 }
  0xfc   :  { %350 = vrot.lane.b32.xlu0 %v3474_v52, %s3612_s6  ;;  %v3476_v53 = vpop.eup %3475 }
  0xfd   :  { %v3478_v56 = vpop.eup %3477 }
  0xfe   :  { %v344_v57 = vadd.f32 1.0, %v3478_v56  ;;  %v3480_v58 = vpop.eup %3479 }
  0xff   :  { %v237_v59 = vadd.f32 1.0, %v3480_v58 }
 0x100   :  { %243 = vrot.lane.b32.xlu0 %v3476_v53, %s3612_s6  ;;  %3481 = vrcp.f32 %v344_v57 }
 0x101   :  { %3483 = vrcp.f32 %v237_v59 }
 0x10a   :  { %v3482_v60 = vpop.eup %3481 }
 0x10b   :  { %v3484_v63 = vpop.eup %3483  ;;  %v348_v5 = vmul.f32 0.0, %v3482_v60 }
 0x10c   :  { %v241_v8 = vmul.f32 0.0, %v3484_v63 }
 0x16e   :  { %v351_v61 = vpop.permute.xlu0 %350 }
 0x16f   :  { %v353_v62 = vmul.f32 %v3482_v60, %v351_v61 }
 0x171   :  { %355 = vrot.lane.b32.xlu1 %v353_v62, %s3613_s19 }
 0x172   :  { %v244_v0 = vpop.permute.xlu0 %243 }
 0x173   :  { %v246_v2 = vmul.f32 %v3484_v63, %v244_v0  ;;  %v626_v0 = vld [vmem:[%s4339_s1 + $0xc] sm:$0x3] }
 0x174   :  { %vm627_vm4 = vcmp.gt.f32.partialorder %v626_v0, 0.5 }
 0x175   :  { %248 = vrot.lane.b32.xlu1 %v246_v2, %s3613_s19 }
 0x1e3   :  { %v356_v6 = vpop.permute.xlu1 %355 }
 0x1e4   :  { %v358_v7 = vadd.f32 %v356_v6, %v348_v5  ;;  %v628_v5 = vsel %vm627_vm4, 1, %v3614_v1 }
 0x1e6   :  { %3485 = vtanh.f32 %v358_v7  ;;  %v379_v15 = vrot.slane %v358_v7, 6 }
 0x1e7   :  { %v249_v9 = vpop.permute.xlu1 %248 }
 0x1e8   :  { %v3784_v10 = vadd.f32 %v249_v9, %v241_v8 }
 0x1ea   :  { %3487 = vtanh.f32 %v3784_v10  ;;  %v488_v58 = vrot.slane %v3784_v10, 6 }
 0x1f0   :  { %v3486_v12 = vpop.eup %3485 }
 0x1f1   :  { %361 = vrot.lane.b32.xlu0 %v3486_v12, %s3612_s6 }
 0x1f4   :  { %v3488_v14 = vpop.eup %3487 }
 0x1f5   :  { %369 = vperm.xlu0 %3471, %v367_v13   ;;  %254 = vrot.lane.b32.xlu1 %v3488_v14, %s3612_s6 }
 0x1f9   :  { %380 = vrot.lane.b32.xlu0 %v379_v15, %s3615_s22 }
 0x263   :  { %v362_v17 = vpop.permute.xlu0 %361 }
 0x264   :  { %v364_v18 = vmul.f32 %v3482_v60, %v362_v17 }
 0x266   :  { %v373_v19 = vrot.slane %v364_v18, 6 }
 0x267   :  { %v255_v20 = vpop.permute.xlu1 %254 }
 0x268   :  { %374 = vrot.lane.b32.xlu1 %v373_v19, %s3613_s19  ;;  %v3795_v22 = vmul.f32 %v3484_v63, %v255_v20 }
 0x26c   :  { %402 = vrot.lane.b32.xlu1 %v3795_v22, %s3613_s19 }
 0x274   :  { %v370_v24 = vpop.permute.xlu0 %369 }
 0x275   :  { %vm371_vm3 = vcmp.eq.s32.totalorder %v370_v24, 1 }
 0x278   :  { %v381_v39 = vpop.permute.xlu0 %380 }
 0x279   :  { %v3818_v41 = vsel %vm371_vm3, %v381_v39, 0.0 }
 0x27a   :  { %v605_v43 = vrot.slane %v3818_v41, 4 }
 0x2da   :  { %v375_v25 = vpop.permute.xlu1 %374 }
 0x2db   :  { %v3800_v26 = vsel %vm371_vm3, %v375_v25, 0.0  ;;  %v770_v25 = vld [vmem:[#allocation2 + $0x18] sm:$0xc] }
 0x2dc   :  { %3086 = vmatmul.mubr.msk.f32.vlgmr.msra.gmra.mrb[6].mxu0 %vm63_vm1, %v3800_v26 }
 0x2dd   :  { %3352 = vmatpush3.bf16.msra.mxu0 %v3736_v23  ;;  %3107 = vmatprep.mubr.msk.f32.mxu0 %vm3611_vm0, %v3609_v3 }
 0x2de   :  { %v403_v28 = vpop.permute.xlu1 %402  ;;  %3353 = vmatprep.subr.bf16.mxu0 %v3610_v4 }
 0x2df   :  { %3075 = vmatmul.mubr.msk.f32.vlgmr.msra.gmra.mrb[2].mxu1 %vm63_vm1, %v403_v28 }
 0x2e0   :  { %3346 = vmatpush3.bf16.msra.mxu1 %v3715_v16  ;;  %3096 = vmatprep.mubr.msk.f32.mxu1 %vm3611_vm0, %v3609_v3 }
 0x2e1   :  { %3355 = vmatpush3.bf16.msra.mxu0 %v3753_v27  ;;  %3347 = vmatprep.subr.bf16.mxu1 %v3610_v4 }
 0x2e2   :  { %3362 = vmatprep.subr.bf16.mxu0 %v3610_v4 }
 0x2e4   :  { %3349 = vmatpush3.bf16.msra.mxu1 %v3730_v21 }
 0x2e5   :  { %3356 = vmatprep.subr.bf16.mxu1 %v3610_v4 }
 0x3af   :  { %v589_v29 = vpop.f32.mrb[6].mxu0 }
 0x3b0   :  { %v594_v30 = vrot.slane %v589_v29, 4  ;;  %v3087_v31 = vpop.f32.mrb[7].mxu0 }
 0x3b2   :  { %v596_v33 = vadd.f32 %v594_v30, %v520_v32  ;;  %v472_v34 = vpop.f32.mrb[2].mxu1  ;;  %v653_v32 = vld [vmem:[#allocation2] sm:$0x30] }
 0x3b3   :  { %v477_v35 = vrot.slane %v472_v34, 6  ;;  %v3076_v36 = vpop.f32.mrb[3].mxu1 }
 0x3b4   :  { %3489 = vtanh.f32 %v596_v33  ;;  %v2886_v44 = vmul.f32 -1.442695, %v596_v33 }
 0x3b5   :  { %v479_v38 = vadd.f32 %v477_v35, %v400_v37 }
 0x3b7   :  { %3491 = vtanh.f32 %v479_v38  ;;  %v2884_v45 = vmul.f32 -1.442695, %v479_v38 }
 0x3b8   :  { %3493 = vpow2.f32 %v2886_v44 }
 0x3b9   :  { %3495 = vpow2.f32 %v2884_v45 }
 0x3be   :  { %v3490_v40 = vpop.eup %3489 }
 0x3bf   :  { %611 = vrot.lane.b32.xlu1 %v3490_v40, %s3612_s6 }
 0x3c1   :  { %v3492_v42 = vpop.eup %3491 }
 0x3c2   :  { %492 = vrot.lane.b32.xlu0 %v3492_v42, %s3612_s6  ;;  %v3494_v46 = vpop.eup %3493 }
 0x3c3   :  { %606 = vrot.lane.b32.xlu1 %v605_v43, %s3613_s19  ;;  %v3496_v47 = vpop.eup %3495  ;;  %v600_v48 = vadd.f32 1.0, %v3494_v46 }
 0x3c4   :  { %v483_v49 = vadd.f32 1.0, %v3496_v47 }
 0x3c5   :  { %3497 = vrcp.f32 %v600_v48 }
 0x3c6   :  { %3499 = vrcp.f32 %v483_v49 }
 0x3cf   :  { %v3498_v50 = vpop.eup %3497 }
 0x3d0   :  { %v3500_v53 = vpop.eup %3499 }
 0x3d1   :  { %v490_v61 = vmul.f32 %v3500_v53, %v488_v58 }
 0x431   :  { %v612_v51 = vpop.permute.xlu1 %611 }
 0x432   :  { %v614_v52 = vmul.f32 %v3498_v50, %v612_v51 }
 0x434   :  { %v493_v54 = vpop.permute.xlu0 %492  ;;  %616 = vrot.lane.b32.xlu0 %v614_v52, %s3613_s19 }
 0x435   :  { %v495_v55 = vmul.f32 %v3500_v53, %v493_v54  ;;  %v607_v56 = vpop.permute.xlu1 %606 }
 0x436   :  { %v609_v57 = vmul.f32 %v3498_v50, %v607_v56 }
 0x437   :  { %497 = vrot.lane.b32.xlu1 %v495_v55, %s3613_s19 }
 0x4a6   :  { %v617_v59 = vpop.permute.xlu0 %616 }
 0x4a7   :  { %v619_v60 = vadd.f32 %v617_v59, %v609_v57  ;;  %v876_v59 = vld [vmem:[%s4339_s1 + $0xa] sm:$0x3] }
 0x4a8   :  { %vm877_vm6 = vcmp.gt.f32.partialorder %v876_v59, 0.5 }
 0x4a9   :  { %3501 = vtanh.f32 %v619_v60  ;;  %v498_v62 = vpop.permute.xlu1 %497  ;;  %v640_v13 = vrot.slane %v619_v60, 4 }
 0x4aa   :  { %v3827_v63 = vadd.f32 %v498_v62, %v490_v61  ;;  %v878_v61 = vsel %vm877_vm6, 1, %v3614_v1 }
 0x4ac   :  { %3503 = vtanh.f32 %v3827_v63 }
 0x4b3   :  { %v3502_v2 = vpop.eup %3501 }
 0x4b4   :  { %622 = vrot.lane.b32.xlu0 %v3502_v2, %s3612_s6 }
 0x4b6   :  { %v3504_v6 = vpop.eup %3503 }
 0x4b7   :  { %503 = vrot.lane.b32.xlu1 %v3504_v6, %s3612_s6 }
 0x4b8   :  { %630 = vperm.xlu0 %3471, %v628_v5  }
 0x526   :  { %v623_v7 = vpop.permute.xlu0 %622 }
 0x527   :  { %v625_v8 = vmul.f32 %v3498_v50, %v623_v7 }
 0x529   :  { %v634_v9 = vrot.slane %v625_v8, 4  ;;  %v504_v10 = vpop.permute.xlu1 %503 }
 0x52a   :  { %v506_v11 = vmul.f32 %v3500_v53, %v504_v10  ;;  %v738_v53 = vrot.slane %v3827_v63, 6 }
 0x52b   :  { %635 = vrot.lane.b32.xlu1 %v634_v9, %s3613_s19 }
 0x52c   :  { %v515_v12 = vrot.slane %v506_v11, 2 }
 0x52e   :  { %516 = vrot.lane.b32.xlu0 %v515_v12, %s3613_s19 }
 0x52f   :  { %641 = vrot.lane.b32.xlu1 %v640_v13, %s3615_s22  ;;  %v1020_v13 = vld [vmem:[#allocation2 + $0x18] sm:$0x3] }
 0x537   :  { %v631_v14 = vpop.permute.xlu0 %630 }
 0x538   :  { %vm632_vm5 = vcmp.eq.s32.totalorder %v631_v14, 1 }
 0x59d   :  { %v636_v15 = vpop.permute.xlu1 %635 }
 0x59e   :  { %v3841_v17 = vsel %vm632_vm5, %v636_v15, %v3800_v26 }
 0x59f   :  { %3108 = vmatmul.mubr.msk.f32.vlgmr.msra.gmra.mrb[8].mxu0 %vm63_vm1, %v3841_v17 }
 0x5a0   :  { %v3845_v18 = vpop.permute.xlu0 %516  ;;  %3364 = vmatpush3.bf16.msra.mxu0 %v3736_v23  ;;  %3129 = vmatprep.mubr.msk.f32.mxu0 %vm3611_vm0, %v3609_v3 }
 0x5a1   :  { %3097 = vmatmul.mubr.msk.f32.vlgmr.msra.gmra.mrb[4].mxu1 %vm63_vm1, %v3845_v18  ;;  %3365 = vmatprep.subr.bf16.mxu0 %v3610_v4  ;;  %v642_v34 = vpop.permute.xlu1 %641 }
 0x5a2   :  { %3358 = vmatpush3.bf16.msra.mxu1 %v3715_v16  ;;  %3118 = vmatprep.mubr.msk.f32.mxu1 %vm3611_vm0, %v3609_v3  ;;  %v3863_v36 = vsel %vm632_vm5, %v642_v34, %v3818_v41 }
 0x5a3   :  { %3359 = vmatprep.subr.bf16.mxu1 %v3610_v4  ;;  %v855_v38 = vrot.slane %v3863_v36, 6 }
 0x5a4   :  { %3367 = vmatpush3.bf16.msra.mxu0 %v3753_v27 }
 0x5a5   :  { %3374 = vmatprep.subr.bf16.mxu0 %v3610_v4 }
 0x5a6   :  { %3361 = vmatpush3.bf16.msra.mxu1 %v3730_v21 }
 0x5a7   :  { %3368 = vmatprep.subr.bf16.mxu1 %v3610_v4 }
 0x672   :  { %v839_v19 = vpop.f32.mrb[8].mxu0 }
 0x673   :  { %v844_v20 = vrot.slane %v839_v19, 6  ;;  %v3109_v24 = vpop.f32.mrb[9].mxu0 }
 0x674   :  { %v722_v28 = vpop.f32.mrb[4].mxu1 }
 0x675   :  { %v846_v29 = vadd.f32 %v844_v20, %v770_v25  ;;  %v727_v30 = vrot.slane %v722_v28, 4  ;;  %v3098_v31 = vpop.f32.mrb[5].mxu1  ;;  %v903_v28 = vld [vmem:[#allocation2] sm:$0xc0] }
 0x677   :  { %3505 = vtanh.f32 %v846_v29  ;;  %v729_v33 = vadd.f32 %v727_v30, %v653_v32  ;;  %v2890_v39 = vmul.f32 -1.442695, %v846_v29 }
 0x679   :  { %3507 = vtanh.f32 %v729_v33  ;;  %v2888_v40 = vmul.f32 -1.442695, %v729_v33 }
 0x67a   :  { %3509 = vpow2.f32 %v2890_v39 }
 0x67b   :  { %3511 = vpow2.f32 %v2888_v40 }
 0x681   :  { %v3506_v35 = vpop.eup %3505 }
 0x682   :  { %861 = vrot.lane.b32.xlu0 %v3506_v35, %s3612_s6 }
 0x683   :  { %v3508_v37 = vpop.eup %3507 }
 0x684   :  { %742 = vrot.lane.b32.xlu1 %v3508_v37, %s3612_s6  ;;  %v3510_v42 = vpop.eup %3509 }
 0x685   :  { %v3512_v43 = vpop.eup %3511  ;;  %v850_v44 = vadd.f32 1.0, %v3510_v42  ;;  %v1122_v42 = vld [vmem:[%s4339_s1 + $0x8] sm:$0x3] }
 0x686   :  { %856 = vrot.lane.b32.xlu0 %v855_v38, %s3613_s19  ;;  %v733_v45 = vadd.f32 1.0, %v3512_v43  ;;  %vm1123_vm8 = vcmp.gt.f32.partialorder %v1122_v42, 0.5 }
 0x687   :  { %3513 = vrcp.f32 %v850_v44 }
 0x688   :  { %3515 = vrcp.f32 %v733_v45 }
 0x691   :  { %v3514_v41 = vpop.eup %3513 }
 0x692   :  { %v3516_v48 = vpop.eup %3515 }
 0x693   :  { %v740_v56 = vmul.f32 %v3516_v48, %v738_v53 }
 0x6f4   :  { %v862_v46 = vpop.permute.xlu0 %861 }
 0x6f5   :  { %v864_v47 = vmul.f32 %v3514_v41, %v862_v46  ;;  %v1124_v46 = vsel %vm1123_vm8, 1, %v3614_v1 }
 0x6f6   :  { %v743_v49 = vpop.permute.xlu1 %742 }
 0x6f7   :  { %866 = vrot.lane.b32.xlu1 %v864_v47, %s3613_s19  ;;  %v745_v50 = vmul.f32 %v3516_v48, %v743_v49 }
 0x6f8   :  { %v857_v51 = vpop.permute.xlu0 %856 }
 0x6f9   :  { %747 = vrot.lane.b32.xlu0 %v745_v50, %s3613_s19  ;;  %v859_v52 = vmul.f32 %v3514_v41, %v857_v51 }
 0x769   :  { %v867_v54 = vpop.permute.xlu1 %866 }
 0x76a   :  { %v869_v55 = vadd.f32 %v867_v54, %v859_v52 }
 0x76b   :  { %v748_v57 = vpop.permute.xlu0 %747 }
 0x76c   :  { %3517 = vtanh.f32 %v869_v55  ;;  %v3872_v58 = vadd.f32 %v748_v57, %v740_v56  ;;  %v890_v8 = vrot.slane %v869_v55, 2 }
 0x76e   :  { %3519 = vtanh.f32 %v3872_v58  ;;  %v988_v51 = vrot.slane %v3872_v58, 6 }
 0x776   :  { %v3518_v60 = vpop.eup %3517 }
 0x777   :  { %872 = vrot.lane.b32.xlu1 %v3518_v60, %s3612_s6 }
 0x778   :  { %v3520_v62 = vpop.eup %3519 }
 0x779   :  { %753 = vrot.lane.b32.xlu0 %v3520_v62, %s3612_s6 }
 0x77b   :  { %880 = vperm.xlu1 %3472, %v878_v61  }
 0x7e9   :  { %v873_v63 = vpop.permute.xlu1 %872 }
 0x7ea   :  { %v875_v0 = vmul.f32 %v3514_v41, %v873_v63 }
 0x7eb   :  { %v754_v5 = vpop.permute.xlu0 %753 }
 0x7ec   :  { %v884_v2 = vrot.slane %v875_v0, 2  ;;  %v756_v6 = vmul.f32 %v3516_v48, %v754_v5 }
 0x7ee   :  { %885 = vrot.lane.b32.xlu0 %v884_v2, %s3613_s19  ;;  %v765_v7 = vrot.slane %v756_v6, 4 }
 0x7f0   :  { %766 = vrot.lane.b32.xlu1 %v765_v7, %s3613_s19 }
 0x7f2   :  { %891 = vrot.lane.b32.xlu0 %v890_v8, %s3615_s22 }
 0x7fa   :  { %v881_v9 = vpop.permute.xlu1 %880 }
 0x7fb   :  { %vm882_vm7 = vcmp.eq.s32.totalorder %v881_v9, 1 }
 0x860   :  { %v886_v10 = vpop.permute.xlu0 %885 }
 0x861   :  { %v3886_v11 = vsel %vm882_vm7, %v886_v10, %v3841_v17  ;;  %v1251_v10 = vld [vmem:[#allocation2 + $0x8] sm:$0xc0] }
 0x862   :  { %3130 = vmatmul.mubr.msk.f32.vlgmr.msra.gmra.mrb[10].mxu0 %vm63_vm1, %v3886_v11  ;;  %v3890_v12 = vpop.permute.xlu1 %766 }
 0x863   :  { %3376 = vmatpush3.bf16.msra.mxu0 %v3736_v23  ;;  %3151 = vmatprep.mubr.msk.f32.mxu0 %vm3611_vm0, %v3609_v3 }
 0x864   :  { %3119 = vmatmul.mubr.msk.f32.vlgmr.msra.gmra.mrb[6].mxu1 %vm63_vm1, %v3890_v12  ;;  %3377 = vmatprep.subr.bf16.mxu0 %v3610_v4  ;;  %v892_v31 = vpop.permute.xlu0 %891 }
 0x865   :  { %3370 = vmatpush3.bf16.msra.mxu1 %v3715_v16  ;;  %3140 = vmatprep.mubr.msk.f32.mxu1 %vm3611_vm0, %v3609_v3  ;;  %v894_v33 = vsel %vm882_vm7, %v892_v31, %v3863_v36 }
 0x866   :  { %3371 = vmatprep.subr.bf16.mxu1 %v3610_v4 }
 0x867   :  { %3379 = vmatpush3.bf16.msra.mxu0 %v3753_v27 }
 0x868   :  { %3386 = vmatprep.subr.bf16.mxu0 %v3610_v4 }
 0x869   :  { %3373 = vmatpush3.bf16.msra.mxu1 %v3730_v21 }
 0x86a   :  { %3380 = vmatprep.subr.bf16.mxu1 %v3610_v4 }
 0x935   :  { %v1089_v14 = vpop.f32.mrb[10].mxu0 }
 0x936   :  { %v1093_v15 = vadd.f32 %v1089_v14, %v1020_v13  ;;  %v3131_v19 = vpop.f32.mrb[11].mxu0  ;;  %v1142_v14 = vld [vmem:[#allocation2 + $0x10] sm:$0x3] }
 0x937   :  { %v972_v20 = vpop.f32.mrb[6].mxu1 }
 0x938   :  { %3521 = vtanh.f32 %v1093_v15  ;;  %v977_v24 = vrot.slane %v972_v20, 2  ;;  %v3120_v25 = vpop.f32.mrb[7].mxu1  ;;  %v2894_v34 = vmul.f32 -1.442695, %v1093_v15 }
 0x93a   :  { %v979_v29 = vadd.f32 %v977_v24, %v903_v28 }
 0x93c   :  { %3523 = vtanh.f32 %v979_v29  ;;  %v2892_v35 = vmul.f32 -1.442695, %v979_v29 }
 0x93d   :  { %3525 = vpow2.f32 %v2894_v34 }
 0x93e   :  { %3527 = vpow2.f32 %v2892_v35 }
 0x942   :  { %v3522_v30 = vpop.eup %3521 }
 0x943   :  { %1107 = vrot.lane.b32.xlu1 %v3522_v30, %s3612_s6 }
 0x946   :  { %v3524_v32 = vpop.eup %3523 }
 0x947   :  { %992 = vrot.lane.b32.xlu0 %v3524_v32, %s3612_s6  ;;  %1102 = vrot.lane.b32.xlu1 %v894_v33, %s3613_s19  ;;  %v3526_v37 = vpop.eup %3525 }
 0x948   :  { %v1097_v38 = vadd.f32 1.0, %v3526_v37  ;;  %v3528_v39 = vpop.eup %3527 }
 0x949   :  { %v983_v40 = vadd.f32 1.0, %v3528_v39 }
 0x94a   :  { %3529 = vrcp.f32 %v1097_v38 }
 0x94b   :  { %3531 = vrcp.f32 %v983_v40 }
 0x954   :  { %v3530_v43 = vpop.eup %3529 }
 0x955   :  { %v3532_v45 = vpop.eup %3531 }
 0x956   :  { %v990_v53 = vmul.f32 %v3532_v45, %v988_v51 }
 0x9b5   :  { %v1108_v36 = vpop.permute.xlu1 %1107 }
 0x9b6   :  { %v1110_v44 = vmul.f32 %v3530_v43, %v1108_v36 }
 0x9b8   :  { %1112 = vrot.lane.b32.xlu0 %v1110_v44, %s3613_s19 }
 0x9b9   :  { %v993_v41 = vpop.permute.xlu0 %992  ;;  %v3917_v48 = vpop.permute.xlu1 %1102 }
 0x9ba   :  { %v995_v47 = vmul.f32 %v3532_v45, %v993_v41  ;;  %v1105_v49 = vmul.f32 %v3530_v43, %v3917_v48 }
 0x9bc   :  { %997 = vrot.lane.b32.xlu1 %v995_v47, %s3613_s19  ;;  %1126 = vperm.xlu0 %3471, %v1124_v46  }
 0xa2a   :  { %v1113_v50 = vpop.permute.xlu0 %1112 }
 0xa2b   :  { %v3921_v52 = vadd.f32 %v1113_v50, %v1105_v49  ;;  %v1357_v50 = vld [vmem:[%s4339_s1 + $0x6] sm:$0x3] }
 0xa2c   :  { %vm1358_vm10 = vcmp.gt.f32.partialorder %v1357_v50, 0.5 }
 0xa2d   :  { %3533 = vtanh.f32 %v3921_v52 }
 0xa2e   :  { %v998_v54 = vpop.permute.xlu1 %997 }
 0xa2f   :  { %v3924_v55 = vadd.f32 %v998_v54, %v990_v53 }
 0xa31   :  { %3535 = vtanh.f32 %v3924_v55  ;;  %v1224_v36 = vrot.slane %v3924_v55, 6 }
 0xa37   :  { %v3534_v56 = vpop.eup %3533 }
 0xa38   :  { %1118 = vrot.lane.b32.xlu1 %v3534_v56, %s3612_s6 }
 0xa3b   :  { %v3536_v57 = vpop.eup %3535  ;;  %v1127_v58 = vpop.permute.xlu0 %1126 }
 0xa3c   :  { %1003 = vrot.lane.b32.xlu0 %v3536_v57, %s3612_s6  ;;  %1129 = vrot.lane.b32.xlu1 %v3886_v11, %s3615_s22  ;;  %vm1128_vm9 = vcmp.eq.s32.totalorder %v1127_v58, 1 }
 0xa3d   :  { %v1133_v42 = vsel %vm1128_vm9, %v3921_v52, %v3917_v48  ;;  %v1359_v52 = vsel %vm1358_vm10, 1, %v3614_v1 }
 0xaaa   :  { %v1119_v59 = vpop.permute.xlu1 %1118 }
 0xaab   :  { %v1121_v60 = vmul.f32 %v3530_v43, %v1119_v59  ;;  %v1338_v43 = vrot.slane %v1133_v42, 2 }
 0xaae   :  { %v1004_v61 = vpop.permute.xlu0 %1003  ;;  %v1130_v62 = vpop.permute.xlu1 %1129 }
 0xaaf   :  { %v1006_v63 = vmul.f32 %v3532_v45, %v1004_v61  ;;  %v3932_v0 = vsel %vm1128_vm9, %v1121_v60, %v1130_v62 }
 0xab0   :  { %1252 = vrot.lane.b32.xlu0 %v3932_v0, %s3613_s19 }
 0xab1   :  { %v1015_v2 = vrot.slane %v1006_v63, 6 }
 0xab3   :  { %1016 = vrot.lane.b32.xlu1 %v1015_v2, %s3613_s19 }
 0xb22   :  { %v3937_v5 = vpop.permute.xlu0 %1252 }
 0xb23   :  { %3152 = vmatmul.mubr.msk.f32.vlgmr.msra.gmra.mrb[12].mxu0 %vm63_vm1, %v3937_v5 }
 0xb24   :  { %3388 = vmatpush3.bf16.msra.mxu0 %v3736_v23  ;;  %3173 = vmatprep.mubr.msk.f32.mxu0 %vm3611_vm0, %v3609_v3 }
 0xb25   :  { %v3944_v6 = vpop.permute.xlu1 %1016  ;;  %3389 = vmatprep.subr.bf16.mxu0 %v3610_v4 }
 0xb26   :  { %3141 = vmatmul.mubr.msk.f32.vlgmr.msra.gmra.mrb[8].mxu1 %vm63_vm1, %v3944_v6 }
 0xb27   :  { %3382 = vmatpush3.bf16.msra.mxu1 %v3715_v16  ;;  %3162 = vmatprep.mubr.msk.f32.mxu1 %vm3611_vm0, %v3609_v3 }
 0xb28   :  { %3383 = vmatprep.subr.bf16.mxu1 %v3610_v4  ;;  %3391 = vmatpush3.bf16.msra.mxu0 %v3753_v27 }
 0xb29   :  { %3398 = vmatprep.subr.bf16.mxu0 %v3610_v4 }
 0xb2b   :  { %3385 = vmatpush3.bf16.msra.mxu1 %v3730_v21 }
 0xb2c   :  { %3392 = vmatprep.subr.bf16.mxu1 %v3610_v4 }
 0xbf6   :  { %v1322_v7 = vpop.f32.mrb[12].mxu0 }
 0xbf7   :  { %v1327_v8 = vrot.slane %v1322_v7, 2  ;;  %v3153_v9 = vpop.f32.mrb[13].mxu0  ;;  %v1392_v7 = vld [vmem:[#allocation2 + $0x10] sm:$0xc] }
 0xbf9   :  { %v1329_v13 = vadd.f32 %v1327_v8, %v1251_v10  ;;  %v1211_v15 = vpop.f32.mrb[8].mxu1 }
 0xbfa   :  { %v1215_v19 = vadd.f32 %v1211_v15, %v1142_v14  ;;  %v3142_v20 = vpop.f32.mrb[9].mxu1  ;;  %v1512_v14 = vld [vmem:[#allocation2 + $0x8] sm:$0x30] }
 0xbfb   :  { %3537 = vtanh.f32 %v1329_v13  ;;  %v2898_v28 = vmul.f32 -1.442695, %v1329_v13 }
 0xbfc   :  { %3539 = vtanh.f32 %v1215_v19  ;;  %v2896_v29 = vmul.f32 -1.442695, %v1215_v19 }
 0xbfd   :  { %3541 = vpow2.f32 %v2898_v28 }
 0xbfe   :  { %3543 = vpow2.f32 %v2896_v29 }
 0xc05   :  { %v3538_v24 = vpop.eup %3537 }
 0xc06   :  { %v3540_v25 = vpop.eup %3539  ;;  %1342 = vrot.lane.b32.xlu0 %v3538_v24, %s3612_s6 }
 0xc07   :  { %1228 = vrot.lane.b32.xlu1 %v3540_v25, %s3612_s6  ;;  %v3542_v30 = vpop.eup %3541 }
 0xc08   :  { %v3544_v31 = vpop.eup %3543  ;;  %v1333_v32 = vadd.f32 1.0, %v3542_v30 }
 0xc09   :  { %v1219_v33 = vadd.f32 1.0, %v3544_v31 }
 0xc0a   :  { %3545 = vrcp.f32 %v1333_v32 }
 0xc0b   :  { %3547 = vrcp.f32 %v1219_v33 }
 0xc14   :  { %v3546_v34 = vpop.eup %3545 }
 0xc15   :  { %v3548_v37 = vpop.eup %3547  ;;  %v1340_v44 = vmul.f32 %v3546_v34, %v1338_v43 }
 0xc16   :  { %v1226_v41 = vmul.f32 %v3548_v37, %v1224_v36 }
 0xc78   :  { %v1343_v35 = vpop.permute.xlu0 %1342 }
 0xc79   :  { %v1345_v38 = vmul.f32 %v3546_v34, %v1343_v35  ;;  %v1229_v39 = vpop.permute.xlu1 %1228 }
 0xc7a   :  { %v1231_v40 = vmul.f32 %v3548_v37, %v1229_v39 }
 0xc7b   :  { %1347 = vrot.lane.b32.xlu0 %v1345_v38, %s3613_s19 }
 0xc7c   :  { %1233 = vrot.lane.b32.xlu1 %v1231_v40, %s3613_s19 }
 0xced   :  { %v1348_v45 = vpop.permute.xlu0 %1347 }
 0xcee   :  { %v1350_v46 = vadd.f32 %v1348_v45, %v1340_v44  ;;  %v1234_v47 = vpop.permute.xlu1 %1233 }
 0xcef   :  { %v3965_v49 = vadd.f32 %v1234_v47, %v1226_v41 }
 0xcf0   :  { %3549 = vtanh.f32 %v1350_v46  ;;  %v1372_v58 = vrot.slane %v1350_v46, 6 }
 0xcf1   :  { %3551 = vtanh.f32 %v3965_v49  ;;  %v1480_v36 = vrot.slane %v3965_v49, 6 }
 0xcfa   :  { %v3550_v51 = vpop.eup %3549 }
 0xcfb   :  { %v3552_v48 = vpop.eup %3551  ;;  %1353 = vrot.lane.b32.xlu0 %v3550_v51, %s3612_s6 }
 0xcfc   :  { %1239 = vrot.lane.b32.xlu1 %v3552_v48, %s3612_s6  ;;  %v1618_v48 = vld [vmem:[%s4339_s1 + $0x4] sm:$0x3] }
 0xcfd   :  { %vm1619_vm12 = vcmp.gt.f32.partialorder %v1618_v48, 0.5  ;;  %v1868_v48 = vld [vmem:[%s4339_s1 + $0x2] sm:$0x3] }
 0xcfe   :  { %v1620_v49 = vsel %vm1619_vm12, 1, %v3614_v1  ;;  %vm1869_vm14 = vcmp.gt.f32.partialorder %v1868_v48, 0.5 }
 0xcff   :  { %1361 = vperm.xlu0 %3471, %v1359_v52  }
 0xd6d   :  { %v1354_v53 = vpop.permute.xlu0 %1353 }
 0xd6e   :  { %v1356_v54 = vmul.f32 %v3546_v34, %v1354_v53  ;;  %v1240_v55 = vpop.permute.xlu1 %1239 }
 0xd6f   :  { %v3974_v56 = vmul.f32 %v3548_v37, %v1240_v55 }
 0xd70   :  { %v1365_v57 = vrot.slane %v1356_v54, 6 }
 0xd71   :  { %1394 = vrot.lane.b32.xlu1 %v3974_v56, %s3613_s19 }
 0xd72   :  { %1366 = vrot.lane.b32.xlu0 %v1365_v57, %s3613_s19 }
 0xd75   :  { %1373 = vrot.lane.b32.xlu1 %v1372_v58, %s3615_s22 }
 0xd76   :  { %1376 = vrot.lane.b32.xlu0 %v1133_v42, %s3615_s22 }
 0xd7e   :  { %v1362_v59 = vpop.permute.xlu0 %1361 }
 0xd7f   :  { %vm1363_vm11 = vcmp.eq.s32.totalorder %v1362_v59, 1 }
 0xde3   :  { %v1395_v60 = vpop.permute.xlu1 %1394 }
 0xde4   :  { %3163 = vmatmul.mubr.msk.f32.vlgmr.msra.gmra.mrb[10].mxu1 %vm63_vm1, %v1395_v60  ;;  %v1367_v61 = vpop.permute.xlu0 %1366 }
 0xde5   :  { %v3984_v62 = vsel %vm1363_vm11, %v1367_v61, %v3937_v5  ;;  %3394 = vmatpush3.bf16.msra.mxu1 %v3715_v16  ;;  %3184 = vmatprep.mubr.msk.f32.mxu1 %vm3611_vm0, %v3609_v3 }
 0xde6   :  { %3174 = vmatmul.mubr.msk.f32.vlgmr.msra.gmra.mrb[14].mxu0 %vm63_vm1, %v3984_v62  ;;  %3395 = vmatprep.subr.bf16.mxu1 %v3610_v4 }
 0xde7   :  { %3400 = vmatpush3.bf16.msra.mxu0 %v3736_v23  ;;  %3195 = vmatprep.mubr.msk.f32.mxu0 %vm3611_vm0, %v3609_v3  ;;  %v1374_v24 = vpop.permute.xlu1 %1373 }
 0xde8   :  { %3401 = vmatprep.subr.bf16.mxu0 %v3610_v4  ;;  %v1377_v20 = vpop.permute.xlu0 %1376 }
 0xde9   :  { %3397 = vmatpush3.bf16.msra.mxu1 %v3730_v21  ;;  %v4002_v28 = vsel %vm1363_vm11, %v1374_v24, %v1377_v20 }
 0xdea   :  { %3404 = vmatprep.subr.bf16.mxu1 %v3610_v4  ;;  %v1597_v29 = vrot.slane %v4002_v28, 4 }
 0xdeb   :  { %3403 = vmatpush3.bf16.msra.mxu0 %v3753_v27 }
 0xdec   :  { %3410 = vmatprep.subr.bf16.mxu0 %v3610_v4 }
 0xeb7   :  { %v1464_v63 = vpop.f32.mrb[10].mxu1 }
 0xeb8   :  { %v1469_v2 = vrot.slane %v1464_v63, 6  ;;  %v3164_v5 = vpop.f32.mrb[11].mxu1 }
 0xeb9   :  { %v1581_v8 = vpop.f32.mrb[14].mxu0 }
 0xeba   :  { %v1471_v9 = vadd.f32 %v1469_v2, %v1392_v7  ;;  %v1586_v10 = vrot.slane %v1581_v8, 4  ;;  %v3175_v13 = vpop.f32.mrb[15].mxu0 }
 0xebc   :  { %3553 = vtanh.f32 %v1471_v9  ;;  %v1588_v15 = vadd.f32 %v1586_v10, %v1512_v14  ;;  %v2900_v30 = vmul.f32 -1.442695, %v1471_v9  ;;  %v1645_v10 = vld [vmem:[#allocation2 + $0x10] sm:$0x30] }
 0xebe   :  { %3555 = vtanh.f32 %v1588_v15  ;;  %v2902_v31 = vmul.f32 -1.442695, %v1588_v15  ;;  %v1762_v15 = vld [vmem:[#allocation2 + $0x8] sm:$0xc] }
 0xebf   :  { %3557 = vpow2.f32 %v2900_v30 }
 0xec0   :  { %3559 = vpow2.f32 %v2902_v31 }
 0xec6   :  { %v3554_v19 = vpop.eup %3553 }
 0xec7   :  { %1484 = vrot.lane.b32.xlu1 %v3554_v19, %s3612_s6 }
 0xec8   :  { %v3556_v25 = vpop.eup %3555 }
 0xec9   :  { %1603 = vrot.lane.b32.xlu0 %v3556_v25, %s3612_s6  ;;  %v3558_v32 = vpop.eup %3557 }
 0xeca   :  { %v3560_v33 = vpop.eup %3559  ;;  %v1475_v34 = vadd.f32 1.0, %v3558_v32 }
 0xecb   :  { %v1592_v35 = vadd.f32 1.0, %v3560_v33 }
 0xecc   :  { %3561 = vrcp.f32 %v1475_v34 }
 0xecd   :  { %1598 = vrot.lane.b32.xlu0 %v1597_v29, %s3613_s19  ;;  %3563 = vrcp.f32 %v1592_v35 }
 0xed6   :  { %v3562_v37 = vpop.eup %3561 }
 0xed7   :  { %v3564_v40 = vpop.eup %3563  ;;  %v1482_v44 = vmul.f32 %v3562_v37, %v1480_v36 }
 0xf39   :  { %v1485_v38 = vpop.permute.xlu1 %1484 }
 0xf3a   :  { %v1487_v39 = vmul.f32 %v3562_v37, %v1485_v38 }
 0xf3b   :  { %v1604_v42 = vpop.permute.xlu0 %1603 }
 0xf3c   :  { %1489 = vrot.lane.b32.xlu1 %v1487_v39, %s3613_s19  ;;  %v1606_v43 = vmul.f32 %v3564_v40, %v1604_v42 }
 0xf3f   :  { %v1599_v45 = vpop.permute.xlu0 %1598 }
 0xf40   :  { %1608 = vrot.lane.b32.xlu1 %v1606_v43, %s3613_s19  ;;  %v1601_v47 = vmul.f32 %v3564_v40, %v1599_v45 }
 0xfae   :  { %v1490_v41 = vpop.permute.xlu1 %1489 }
 0xfaf   :  { %v4010_v46 = vadd.f32 %v1490_v41, %v1482_v44 }
 0xfb1   :  { %3565 = vtanh.f32 %v4010_v46  ;;  %v1730_v43 = vrot.slane %v4010_v46, 6  ;;  %v1870_v46 = vsel %vm1869_vm14, 1, %v3614_v1 }
 0xfb2   :  { %v1609_v50 = vpop.permute.xlu1 %1608 }
 0xfb3   :  { %v1611_v51 = vadd.f32 %v1609_v50, %v1601_v47 }
 0xfb5   :  { %3567 = vtanh.f32 %v1611_v51  ;;  %v1632_v60 = vrot.slane %v1611_v51, 4 }
 0xfbb   :  { %v3566_v52 = vpop.eup %3565 }
 0xfbc   :  { %1495 = vrot.lane.b32.xlu0 %v3566_v52, %s3612_s6 }
 0xfbf   :  { %v3568_v53 = vpop.eup %3567 }
 0xfc0   :  { %1614 = vrot.lane.b32.xlu1 %v3568_v53, %s3612_s6  ;;  %1622 = vperm.xlu0 %3471, %v1620_v49  }
0x102e   :  { %v1496_v54 = vpop.permute.xlu0 %1495 }
0x102f   :  { %v1498_v55 = vmul.f32 %v3562_v37, %v1496_v54 }
0x1031   :  { %v1507_v57 = vrot.slane %v1498_v55, 2 }
0x1032   :  { %v1615_v58 = vpop.permute.xlu1 %1614 }
0x1033   :  { %v1617_v59 = vmul.f32 %v3564_v40, %v1615_v58  ;;  %1508 = vrot.lane.b32.xlu1 %v1507_v57, %s3613_s19 }
0x1035   :  { %v1626_v61 = vrot.slane %v1617_v59, 4 }
0x1037   :  { %1627 = vrot.lane.b32.xlu0 %v1626_v61, %s3613_s19  ;;  %1633 = vrot.lane.b32.xlu1 %v1632_v60, %s3615_s22 }
0x103f   :  { %v1623_v63 = vpop.permute.xlu0 %1622 }
0x1040   :  { %vm1624_vm13 = vcmp.eq.s32.totalorder %v1623_v63, 1 }
0x10a5   :  { %v4022_v2 = vpop.permute.xlu1 %1508 }
0x10a6   :  { %3185 = vmatmul.mubr.msk.f32.vlgmr.msra.gmra.mrb[12].mxu1 %vm63_vm1, %v4022_v2 }
0x10a7   :  { %3406 = vmatpush3.bf16.msra.mxu1 %v3715_v16  ;;  %3206 = vmatprep.mubr.msk.f32.mxu1 %vm3611_vm0, %v3609_v3 }
0x10a8   :  { %3407 = vmatprep.subr.bf16.mxu1 %v3610_v4 }
0x10a9   :  { %v1628_v5 = vpop.permute.xlu0 %1627  ;;  %v1634_v24 = vpop.permute.xlu1 %1633 }
0x10aa   :  { %v4032_v7 = vsel %vm1624_vm13, %v1628_v5, %v3984_v62 }
0x10ab   :  { %3196 = vmatmul.mubr.msk.f32.vlgmr.msra.gmra.mrb[16].mxu0 %vm63_vm1, %v4032_v7  ;;  %3409 = vmatpush3.bf16.msra.mxu1 %v3730_v21 }
0x10ac   :  { %3412 = vmatpush3.bf16.msra.mxu0 %v3736_v23  ;;  %3217 = vmatprep.mubr.msk.f32.mxu0 %vm3611_vm0, %v3609_v3 }
0x10ad   :  { %3413 = vmatprep.subr.bf16.mxu0 %v3610_v4  ;;  %3416 = vmatprep.subr.bf16.mxu1 %v3610_v4 }
0x10b0   :  { %3415 = vmatpush3.bf16.msra.mxu0 %v3753_v27  ;;  %v4047_v27 = vsel %vm1624_vm13, %v1634_v24, %v4002_v28 }
0x10b1   :  { %3428 = vmatprep.subr.bf16.mxu0 %v3610_v4  ;;  %v1847_v29 = vrot.slane %v4047_v27, 6 }
0x1179   :  { %v1714_v16 = vpop.f32.mrb[12].mxu1 }
0x117a   :  { %v1719_v8 = vrot.slane %v1714_v16, 4  ;;  %v3186_v9 = vpop.f32.mrb[13].mxu1 }
0x117c   :  { %v1721_v13 = vadd.f32 %v1719_v8, %v1645_v10 }
0x117e   :  { %3569 = vtanh.f32 %v1721_v13  ;;  %v1831_v21 = vpop.f32.mrb[16].mxu0  ;;  %v2904_v30 = vmul.f32 -1.442695, %v1721_v13  ;;  %v1895_v13 = vld [vmem:[#allocation2 + $0x10] sm:$0xc0] }
0x117f   :  { %v1836_v14 = vrot.slane %v1831_v21, 6  ;;  %v3197_v23 = vpop.f32.mrb[17].mxu0 }
0x1181   :  { %v1838_v19 = vadd.f32 %v1836_v14, %v1762_v15  ;;  %v2012_v14 = vld [vmem:[#allocation2 + $0x8] sm:$0x3] }
0x1183   :  { %3571 = vtanh.f32 %v1838_v19  ;;  %v2906_v31 = vmul.f32 -1.442695, %v1838_v19 }
0x1184   :  { %3573 = vpow2.f32 %v2904_v30 }
0x1185   :  { %3575 = vpow2.f32 %v2906_v31  ;;  %v2114_v31 = vld [vmem:[%s4339_s1] sm:$0x3] }
0x1186   :  { %vm2115_vm3 = vcmp.gt.f32.partialorder %v2114_v31, 0.5 }
0x1188   :  { %v3570_v20 = vpop.eup %3569 }
0x1189   :  { %1734 = vrot.lane.b32.xlu0 %v3570_v20, %s3612_s6 }
0x118d   :  { %v3572_v25 = vpop.eup %3571 }
0x118e   :  { %1853 = vrot.lane.b32.xlu1 %v3572_v25, %s3612_s6  ;;  %v3574_v32 = vpop.eup %3573  ;;  %v258_v25 = vld [vmem:[%s4339_s1] sm:$0x3] }
0x118f   :  { %v1725_v33 = vadd.f32 1.0, %v3574_v32  ;;  %v3576_v34 = vpop.eup %3575  ;;  %vm259_vm2 = vcmp.gt.f32.partialorder %v258_v25, 0.5  ;;  %v2139_v25 = vld [vmem:[%s4340_s7 + $0x30] sm:$0xff] }
0x1190   :  { %v1842_v35 = vadd.f32 1.0, %v3576_v34  ;;  %v260_v32 = vsel %vm259_vm2, 1, %v3614_v1  ;;  %vm388_vm2 = vcmask 253952  }
0x1191   :  { %3577 = vrcp.f32 %v1725_v33  ;;  %v2116_v33 = vsel %vm2115_vm3, 1, %v3614_v1  ;;  %vm396_vm3 = vcmask 254977  }
0x1192   :  { %1848 = vrot.lane.b32.xlu1 %v1847_v29, %s3613_s19  ;;  %3579 = vrcp.f32 %v1842_v35 }
0x119b   :  { %v3578_v37 = vpop.eup %3577 }
0x119c   :  { %v3580_v39 = vpop.eup %3579  ;;  %v1732_v36 = vmul.f32 %v3578_v37, %v1730_v43  ;;  %v1243_v43 = vld [vmem:[%s4339_s1 + $0x8] sm:$0x3] }
0x119d   :  { %vm1244_vm4 = vcmp.gt.f32.partialorder %v1243_v43, 0.5  ;;  %v2142_v43 = vld [vmem:[%s4342_s9] sm:$0xff] }
0x11fb   :  { %v1735_v38 = vpop.permute.xlu0 %1734 }
0x11fc   :  { %v1737_v28 = vmul.f32 %v3578_v37, %v1735_v38 }
0x11fe   :  { %1739 = vrot.lane.b32.xlu0 %v1737_v28, %s3613_s19 }
0x1200   :  { %v1854_v40 = vpop.permute.xlu1 %1853 }
0x1201   :  { %v1856_v42 = vmul.f32 %v3580_v39, %v1854_v40 }
0x1203   :  { %1858 = vrot.lane.b32.xlu0 %v1856_v42, %s3613_s19 }
0x1204   :  { %v1849_v45 = vpop.permute.xlu1 %1848 }
0x1205   :  { %v1851_v47 = vmul.f32 %v3580_v39, %v1849_v45 }
0x1270   :  { %v1740_v44 = vpop.permute.xlu0 %1739 }
0x1271   :  { %v4055_v41 = vadd.f32 %v1740_v44, %v1732_v36 }
0x1273   :  { %3581 = vtanh.f32 %v4055_v41 }
0x1275   :  { %v1859_v50 = vpop.permute.xlu0 %1858 }
0x1276   :  { %v1861_v51 = vadd.f32 %v1859_v50, %v1851_v47  ;;  %v1245_v47 = vsel %vm1244_vm4, 1, %v3614_v1  ;;  %v1980_v50 = vrot.slane %v4055_v41, 6  ;;  %v757_v41 = vld [vmem:[%s4339_s1 + $0x4] sm:$0x3] }
0x1277   :  { %vm758_vm6 = vcmp.gt.f32.partialorder %v757_v41, 0.5 }
0x1278   :  { %3583 = vtanh.f32 %v1861_v51  ;;  %v1882_v60 = vrot.slane %v1861_v51, 2 }
0x127d   :  { %v3582_v52 = vpop.eup %3581 }
0x127e   :  { %1745 = vrot.lane.b32.xlu1 %v3582_v52, %s3612_s6 }
0x1282   :  { %v3584_v49 = vpop.eup %3583  ;;  %1872 = vperm.xlu1 %3472, %v1870_v46  }
0x1283   :  { %1864 = vrot.lane.b32.xlu0 %v3584_v49, %s3612_s6 }
0x12f0   :  { %v1746_v53 = vpop.permute.xlu1 %1745 }
0x12f1   :  { %v1748_v54 = vmul.f32 %v3578_v37, %v1746_v53 }
0x12f3   :  { %v1757_v55 = vrot.slane %v1748_v54, 4 }
0x12f5   :  { %v1865_v57 = vpop.permute.xlu0 %1864  ;;  %1758 = vrot.lane.b32.xlu0 %v1757_v55, %s3613_s19 }
0x12f6   :  { %v1867_v58 = vmul.f32 %v3580_v39, %v1865_v57  ;;  %v507_v57 = vld [vmem:[%s4339_s1 + $0x2] sm:$0x3] }
0x12f7   :  { %vm508_vm5 = vcmp.gt.f32.partialorder %v507_v57, 0.5 }
0x12f8   :  { %v1876_v59 = vrot.slane %v1867_v58, 2 }
0x12fa   :  { %1877 = vrot.lane.b32.xlu1 %v1876_v59, %s3613_s19  ;;  %v1007_v59 = vld [vmem:[%s4339_s1 + $0x6] sm:$0x3] }
0x12fb   :  { %vm1008_vm7 = vcmp.gt.f32.partialorder %v1007_v59, 0.5 }
0x12fe   :  { %1883 = vrot.lane.b32.xlu1 %v1882_v60, %s3615_s22  ;;  %v1499_v60 = vld [vmem:[%s4339_s1 + $0xa] sm:$0x3] }
0x12ff   :  { %vm1500_vm8 = vcmp.gt.f32.partialorder %v1499_v60, 0.5 }
0x1301   :  { %v1873_v63 = vpop.permute.xlu1 %1872 }
0x1302   :  { %vm1874_vm15 = vcmp.eq.s32.totalorder %v1873_v63, 1  ;;  %v509_v63 = vsel %vm508_vm5, 1, %v3614_v1 }
0x1367   :  { %v4067_v61 = vpop.permute.xlu0 %1758 }
0x1368   :  { %3207 = vmatmul.mubr.msk.f32.vlgmr.msra.gmra.mrb[14].mxu1 %vm63_vm1, %v4067_v61 }
0x1369   :  { %3236 = vmatprep.mubr.msk.f32.mxu1 %vm3611_vm0, %v3609_v3 }
0x136c   :  { %v1878_v5 = vpop.permute.xlu1 %1877 }
0x136d   :  { %v4075_v16 = vsel %vm1874_vm15, %v1878_v5, %v4032_v7  ;;  %v759_v5 = vsel %vm758_vm6, 1, %v3614_v1 }
0x136e   :  { %3218 = vmatmul.mubr.msk.f32.vlgmr.msra.gmra.mrb[18].mxu0 %vm63_vm1, %v4075_v16 }
0x136f   :  { %3247 = vmatprep.mubr.msk.f32.mxu0 %vm3611_vm0, %v3609_v3 }
0x1370   :  { %v1884_v29 = vpop.permute.xlu1 %1883 }
0x1371   :  { %v1886_v30 = vsel %vm1874_vm15, %v1884_v29, %v4047_v27  ;;  %v2140_v29 = vld [vmem:[%s4340_s7 + $0x38] sm:$0xff] }
0x143b   :  { %v1964_v8 = vpop.f32.mrb[14].mxu1 }
0x143c   :  { %v1969_v9 = vrot.slane %v1964_v8, 2  ;;  %v3208_v10 = vpop.f32.mrb[15].mxu1  ;;  %v1749_v8 = vld [vmem:[%s4339_s1 + $0xc] sm:$0x3] }
0x143d   :  { %v1009_v10 = vsel %vm1008_vm7, 1, %v3614_v1  ;;  %vm1750_vm9 = vcmp.gt.f32.partialorder %v1749_v8, 0.5  ;;  %vm394_vm7 = vcmask 516352   ;;  %v2145_v8 = vld [vmem:[%s4342_s9 + $0x18] sm:$0xff] }
0x143e   :  { %v1971_v21 = vadd.f32 %v1969_v9, %v1895_v13  ;;  %v1999_v9 = vld [vmem:[%s4339_s1 + $0xe] sm:$0x3]  ;;  %v1501_v13 = vsel %vm1500_vm8, 1, %v3614_v1  ;;  %vm398_vm8 = vcmask 517377  }
0x143f   :  { %vm2000_vm10 = vcmp.gt.f32.partialorder %v1999_v9, 0.5 }
0x1440   :  { %3585 = vtanh.f32 %v1971_v21  ;;  %v2908_v34 = vmul.f32 -1.442695, %v1971_v21 }
0x1441   :  { %v2081_v23 = vpop.f32.mrb[18].mxu0 }
0x1442   :  { %v2085_v15 = vadd.f32 %v2081_v23, %v2012_v14  ;;  %v3219_v19 = vpop.f32.mrb[19].mxu0  ;;  %v1751_v14 = vsel %vm1750_vm9, 1, %v3614_v1  ;;  %v2001_v23 = vsel %vm2000_vm10, 1, %v3614_v1 }
0x1444   :  { %3587 = vtanh.f32 %v2085_v15  ;;  %v2910_v35 = vmul.f32 -1.442695, %v2085_v15 }
0x1445   :  { %3589 = vpow2.f32 %v2908_v34 }
0x1446   :  { %3591 = vpow2.f32 %v2910_v35 }
0x144a   :  { %v3586_v20 = vpop.eup %3585 }
0x144b   :  { %1984 = vrot.lane.b32.xlu0 %v3586_v20, %s3612_s6  ;;  %v2138_v20 = vld [vmem:[%s4340_s7 + $0x28] sm:$0xff] }
0x144e   :  { %v3588_v24 = vpop.eup %3587 }
0x144f   :  { %2099 = vrot.lane.b32.xlu0 %v3588_v24, %s3612_s6  ;;  %v3590_v37 = vpop.eup %3589 }
0x1450   :  { %v1975_v38 = vadd.f32 1.0, %v3590_v37  ;;  %v3592_v27 = vpop.eup %3591  ;;  %v2306_v37 = vld [vmem:[%s4341_s2] sm:$0xff] }
0x1451   :  { %v2089_v28 = vadd.f32 1.0, %v3592_v27  ;;  %vm2307_vm14 = vcmp.lt.f32.partialorder %v2306_v37, 0.5 }
0x1452   :  { %3593 = vrcp.f32 %v1975_v38 }
0x1453   :  { %2094 = vrot.lane.b32.xlu0 %v1886_v30, %s3613_s19  ;;  %3595 = vrcp.f32 %v2089_v28  ;;  %v4188_v30 = vpack.c.bf16 %v2140_v29, %v2139_v25 }
0x1457   :  { %262 = vperm.xlu0 %3471, %v260_v32  }
0x145b   :  { %2118 = vperm.xlu0 %3471, %v2116_v33  }
0x145c   :  { %v4094_v39 = vpop.eup %3593 }
0x145d   :  { %v4101_v36 = vpop.eup %3595  ;;  %v1982_v51 = vmul.f32 %v4094_v39, %v1980_v50 }
0x14bd   :  { %v1985_v40 = vpop.permute.xlu0 %1984 }
0x14be   :  { %v1987_v42 = vmul.f32 %v4094_v39, %v1985_v40  ;;  %v2308_v40 = vsel %vm2307_vm14, 1, %v3614_v1 }
0x14c0   :  { %1989 = vrot.lane.b32.xlu1 %v1987_v42, %s3613_s19 }
0x14c1   :  { %v2100_v44 = vpop.permute.xlu0 %2099 }
0x14c2   :  { %v2102_v45 = vmul.f32 %v4101_v36, %v2100_v44 }
0x14c4   :  { %2104 = vrot.lane.b32.xlu1 %v2102_v45, %s3613_s19 }
0x14c5   :  { %v2095_v48 = vpop.permute.xlu0 %2094 }
0x14c6   :  { %v2097_v49 = vmul.f32 %v4101_v36, %v2095_v48 }
0x14c8   :  { %1247 = vperm.xlu1 %3472, %v1245_v47  }
0x14d6   :  { %v263_v21 = vpop.permute.xlu0 %262 }
0x14d7   :  { %vm264_vm11 = vcmp.eq.s32.totalorder %v263_v21, 1 }
0x14d8   :  { %v265_v15 = vsel %vm264_vm11, %v3795_v22, 0.0 }
0x14da   :  { %v2119_v31 = vpop.permute.xlu0 %2118 }
0x14db   :  { %vm2120_vm13 = vcmp.eq.s32.totalorder %v2119_v31, 1 }
0x1532   :  { %v1990_v52 = vpop.permute.xlu1 %1989 }
0x1533   :  { %v1992_v46 = vadd.f32 %v1990_v52, %v1982_v51 }
0x1535   :  { %3597 = vtanh.f32 %v1992_v46 }
0x1536   :  { %v2105_v53 = vpop.permute.xlu1 %2104 }
0x1537   :  { %v2107_v54 = vadd.f32 %v2105_v53, %v2097_v49 }
0x1539   :  { %3599 = vtanh.f32 %v2107_v54 }
0x153f   :  { %v3598_v55 = vpop.eup %3597 }
0x1540   :  { %1995 = vrot.lane.b32.xlu1 %v3598_v55, %s3612_s6 }
0x1543   :  { %v3600_v58 = vpop.eup %3599 }
0x1544   :  { %2110 = vrot.lane.b32.xlu0 %v3600_v58, %s3612_s6  ;;  %2121 = vrot.lane.b32.xlu1 %v4075_v16, %s3615_s22 }
0x1547   :  { %v1248_v19 = vpop.permute.xlu1 %1247 }
0x1548   :  { %511 = vperm.xlu0 %3471, %v509_v63   ;;  %761 = vperm.xlu1 %3472, %v759_v5   ;;  %vm1249_vm12 = vcmp.eq.s32.totalorder %v1248_v19, 1  ;;  %v2144_v5 = vld [vmem:[%s4342_s9 + $0x10] sm:$0xff] }
0x1549   :  { %v1250_v22 = vsel %vm1249_vm12, %v3974_v56, 0.0  ;;  %v2136_v56 = vld [vmem:[%s4340_s7 + $0x18] sm:$0xff]  ;;  %vm2158_vm12 = vcmask 523264   ;;  %v4263_v9 = vpack.c.bf16 %v2145_v8, %v2144_v5 }
0x154c   :  { %1011 = vperm.xlu0 %3471, %v1009_v10   ;;  %1503 = vperm.xlu1 %3472, %v1501_v13   ;;  %v4270_v10 = vld [vmem:[%s4343_s8] ss:$0 sm:$0xff] }
0x1550   :  { %1753 = vperm.xlu0 %3471, %v1751_v14   ;;  %2003 = vperm.xlu1 %3472, %v2001_v23  }
0x1554   :  { %385 = vrot.lane.b32.xlu0 %v265_v15, %s3613_s19  ;;  %391 = vrot.lane.b32.xlu1 %v3800_v26, %s3613_s19  ;;  %v2133_v26 = vld [vmem:[%s4340_s7] sm:$0xff] }
0x1558   :  { %647 = vrot.lane.b32.xlu0 %v3841_v17, %s3613_s19  ;;  %897 = vrot.lane.b32.xlu1 %v3886_v11, %s3613_s19  ;;  %v2134_v17 = vld [vmem:[%s4340_s7 + $0x8] sm:$0xff] }
0x1559   :  { %v4159_v11 = vpack.c.bf16 %v2134_v17, %v2133_v26 }
0x155b   :  { %3418 = vmatpush3.bf16.msra.mxu1 %v4159_v11 }
0x155c   :  { %1136 = vrot.lane.b32.xlu0 %v3932_v0, %s3612_s6  ;;  %1386 = vrot.lane.b32.xlu1 %v3984_v62, %s3613_s19  ;;  %v2135_v0 = vld [vmem:[%s4340_s7 + $0x10] sm:$0xff] }
0x155d   :  { %3419 = vmatprep.subr.bf16.mxu1 %v3610_v4  ;;  %v4169_v62 = vpack.c.bf16 %v2136_v56, %v2135_v0 }
0x155f   :  { %3421 = vmatpush3.bf16.msra.mxu1 %v4169_v62 }
0x1560   :  { %1381 = vrot.lane.b32.xlu0 %v1250_v22, %s3613_s19  ;;  %3422 = vmatprep.subr.bf16.mxu1 %v3610_v4 }
0x1564   :  { %1639 = vrot.lane.b32.xlu0 %v4032_v7, %s3613_s19  ;;  %v2137_v7 = vld [vmem:[%s4340_s7 + $0x20] sm:$0xff] }
0x1565   :  { %v4179_v24 = vpack.c.bf16 %v2138_v20, %v2137_v7 }
0x1567   :  { %3424 = vmatpush3.bf16.msra.mxu1 %v4179_v24 }
0x1568   :  { %3425 = vmatprep.subr.bf16.mxu1 %v3610_v4 }
0x156b   :  { %3427 = vmatpush3.bf16.msra.mxu1 %v4188_v30 }
0x156c   :  { %3250 = vmatprep.subr.mxu1 %v3609_v3 }
0x15b2   :  { %v1996_v32 = vpop.permute.xlu1 %1995 }
0x15b3   :  { %v1998_v33 = vmul.f32 %v4094_v39, %v1996_v32  ;;  %v2668_v39 = vld [vmem:[%s4341_s2 + $0x8] sm:$0xff] }
0x15b4   :  { %vm2669_vm15 = vcmp.lt.f32.partialorder %v2668_v39, 0.5 }
0x15b5   :  { %v2007_v34 = vrot.slane %v1998_v33, 6  ;;  %v2670_v42 = vsel %vm2669_vm15, 1, %v3614_v1  ;;  %vm2518_vm15 = vcmask 31744  }
0x15b6   :  { %v2111_v35 = vpop.permute.xlu0 %2110  ;;  %v2122_v27 = vpop.permute.xlu1 %2121 }
0x15b7   :  { %v2113_v38 = vmul.f32 %v4101_v36, %v2111_v35  ;;  %2008 = vrot.lane.b32.xlu1 %v2007_v34, %s3613_s19  ;;  %v2143_v36 = vld [vmem:[%s4342_s9 + $0x8] sm:$0xff] }
0x15b8   :  { %v4213_v44 = vpack.c.bf16 %v2143_v36, %v2142_v43  ;;  %v2147_v43 = vld [vmem:[%s4344_s10 + $0x8] sm:$0xff] }
0x15b9   :  { %v2124_v28 = vsel %vm2120_vm13, %v2113_v38, %v2122_v27  ;;  %vm2314_vm13 = vcmask 64512  }
0x15ba   :  { %2127 = vrot.lane.b32.xlu0 %v2124_v28, %s3612_s6  ;;  %3430 = vmatpush3.bf16.msra.mxu0 %v4213_v44 }
0x15bb   :  { %1889 = vrot.lane.b32.xlu1 %v4075_v16, %s3613_s19  ;;  %3431 = vmatprep.subr.bf16.mxu0 %v3610_v4 }
0x15be   :  { %3433 = vmatpush3.bf16.msra.mxu0 %v4263_v9 }
0x15bf   :  { %2310 = vperm.xlu1 %3472, %v2308_v40   ;;  %3440 = vmatprep.subr.bf16.mxu0 %v3610_v4 }
0x15c3   :  { %2672 = vperm.xlu1 %3472, %v2670_v42   ;;  %v2146_v42 = vld [vmem:[%s4344_s10] sm:$0xff] }
0x15c4   :  { %v3435_v36 = vpack.c.bf16 %v2147_v43, %v2146_v42 }
0x15c7   :  { %v512_v16 = vpop.permute.xlu0 %511  ;;  %v762_v45 = vpop.permute.xlu1 %761 }
0x15c8   :  { %vm513_vm4 = vcmp.eq.s32.totalorder %v512_v16, 1  ;;  %vm763_vm5 = vcmp.eq.s32.totalorder %v762_v45, 1  ;;  %v2148_v16 = vld [vmem:[%s4344_s10 + $0x10] sm:$0xff]  ;;  %v2149_v45 = vld [vmem:[%s4344_s10 + $0x18] sm:$0xff] }
0x15c9   :  { %v519_v1 = vsel %vm513_vm4, %v3845_v18, 0.0  ;;  %v769_v47 = vsel %vm763_vm5, %v3890_v12, 0.0 }
0x15ca   :  { %645 = vst.msk [vmem:[#allocation3 + $0x1] sm:$0x1] %vm388_vm2, %v519_v1  ;;  %895 = vst.msk [vmem:[#allocation3 + $0x2] sm:$0x1] %vm388_vm2, %v769_v47 }
0x15cb   :  { %651 = vst.msk [vmem:[#allocation3 + $0x8] sm:$0x2] %vm396_vm3, %v519_v1  ;;  %901 = vst.msk [vmem:[#allocation3 + $0x9] sm:$0x2] %vm396_vm3, %v769_v47  ;;  %v1012_v50 = vpop.permute.xlu0 %1011  ;;  %v1504_v51 = vpop.permute.xlu1 %1503  ;;  %v3438_v1 = vpack.c.bf16 %v2149_v45, %v2148_v16 }
0x15cc   :  { %vm1013_vm6 = vcmp.eq.s32.totalorder %v1012_v50, 1  ;;  %vm1505_vm9 = vcmp.eq.s32.totalorder %v1504_v51, 1 }
0x15cd   :  { %v1019_v48 = vsel %vm1013_vm6, %v3944_v6, 0.0  ;;  %v1511_v53 = vsel %vm1505_vm9, %v4022_v2, 0.0 }
0x15ce   :  { %1134 = vst.msk [vmem:[#allocation3 + $0x3] sm:$0x1] %vm388_vm2, %v1019_v48 }
0x15cf   :  { %1140 = vst.msk [vmem:[#allocation3 + $0xa] sm:$0x2] %vm396_vm3, %v1019_v48  ;;  %v1754_v18 = vpop.permute.xlu0 %1753  ;;  %v2004_v52 = vpop.permute.xlu1 %2003 }
0x15d0   :  { %vm1755_vm10 = vcmp.eq.s32.totalorder %v1754_v18, 1  ;;  %vm2005_vm11 = vcmp.eq.s32.totalorder %v2004_v52, 1 }
0x15d1   :  { %v1761_v54 = vsel %vm1755_vm10, %v4067_v61, 0.0 }
0x15d3   :  { %v386_v12 = vpop.permute.xlu0 %385  ;;  %v392_v46 = vpop.permute.xlu1 %391 }
0x15d4   :  { %389 = vst.msk [vmem:[#allocation3] sm:$0x1] %vm388_vm2, %v386_v12 }
0x15d5   :  { %397 = vst.msk [vmem:[#allocation3 + $0x7] sm:$0x2] %vm396_vm3, %v386_v12 }
0x15d6   :  { %395 = vst.msk [vmem:[#allocation3 + $0x7] sm:$0x1] %vm394_vm7, %v392_v46 }
0x15d7   :  { %399 = vst.msk [vmem:[#allocation3 + $0xe] sm:$0x2] %vm398_vm8, %v392_v46  ;;  %v648_v6 = vpop.permute.xlu0 %647  ;;  %v898_v49 = vpop.permute.xlu1 %897 }
0x15d8   :  { %650 = vst.msk [vmem:[#allocation3 + $0x6] sm:$0x1] %vm394_vm7, %v648_v6  ;;  %900 = vst.msk [vmem:[#allocation3 + $0x5] sm:$0x1] %vm394_vm7, %v898_v49 }
0x15d9   :  { %652 = vst.msk [vmem:[#allocation3 + $0xd] sm:$0x2] %vm398_vm8, %v648_v6  ;;  %902 = vst.msk [vmem:[#allocation3 + $0xc] sm:$0x2] %vm398_vm8, %v898_v49 }
0x15da   :  { %1887 = vst.msk [vmem:[#allocation3 + $0x6] sm:$0x1] %vm388_vm2, %v1761_v54  ;;  %1637 = vst.msk [vmem:[#allocation3 + $0x5] sm:$0x1] %vm388_vm2, %v1511_v53 }
0x15db   :  { %1893 = vst.msk [vmem:[#allocation3 + $0xd] sm:$0x2] %vm396_vm3, %v1761_v54  ;;  %1643 = vst.msk [vmem:[#allocation3 + $0xc] sm:$0x2] %vm396_vm3, %v1511_v53  ;;  %v1137_v55 = vpop.permute.xlu0 %1136  ;;  %v1387_v2 = vpop.permute.xlu1 %1386 }
0x15dc   :  { %1139 = vst.msk [vmem:[#allocation3 + $0x4] sm:$0x1] %vm394_vm7, %v1137_v55  ;;  %1389 = vst.msk [vmem:[#allocation3 + $0x3] sm:$0x1] %vm394_vm7, %v1387_v2 }
0x15dd   :  { %1141 = vst.msk [vmem:[#allocation3 + $0xb] sm:$0x2] %vm398_vm8, %v1137_v55  ;;  %1391 = vst.msk [vmem:[#allocation3 + $0xa] sm:$0x2] %vm398_vm8, %v1387_v2 }
0x15df   :  { %v1382_v61 = vpop.permute.xlu0 %1381 }
0x15e0   :  { %1384 = vst.msk [vmem:[#allocation3 + $0x4] sm:$0x1] %vm388_vm2, %v1382_v61 }
0x15e1   :  { %1390 = vst.msk [vmem:[#allocation3 + $0xb] sm:$0x2] %vm396_vm3, %v1382_v61 }
0x15e3   :  { %v1640_v57 = vpop.permute.xlu0 %1639 }
0x15e4   :  { %1642 = vst.msk [vmem:[#allocation3 + $0x2] sm:$0x1] %vm394_vm7, %v1640_v57 }
0x15e5   :  { %1644 = vst.msk [vmem:[#allocation3 + $0x9] sm:$0x2] %vm398_vm8, %v1640_v57 }
0x1629   :  { %v2009_v41 = vpop.permute.xlu1 %2008 }
0x162a   :  { %v2011_v58 = vsel %vm2005_vm11, %v2009_v41, 0.0 }
0x162b   :  { %2125 = vst.msk [vmem:[#allocation3 + $0x7] sm:$0x1] %vm388_vm2, %v2011_v58 }
0x162c   :  { %2131 = vst.msk [vmem:[#allocation3 + $0xe] sm:$0x2] %vm396_vm3, %v2011_v58  ;;  %v2128_v59 = vpop.permute.xlu0 %2127 }
0x162d   :  { %2130 = vst.msk [vmem:[#allocation3] sm:$0x1] %vm394_vm7, %v2128_v59  ;;  %v1890_v60 = vpop.permute.xlu1 %1889 }
0x162e   :  { %2132 = vst.msk [vmem:[#allocation3 + $0x7] sm:$0x2] %vm398_vm8, %v2128_v59  ;;  %1894 = vst.msk [vmem:[#allocation3 + $0x8] sm:$0x2] %vm398_vm8, %v1890_v60 }
0x162f   :  { %1892 = vst.msk [vmem:[#allocation3 + $0x1] sm:$0x1] %vm394_vm7, %v1890_v60 }
0x1635   :  { %v2520_v15 = vld [vmem:[#allocation3 + $0x8] sm:$0xff] }
0x1636   :  { %v2151_v63 = vld [vmem:[#allocation3] sm:$0xff] }
0x1637   :  { %3237 = vmatmul.mubr.msk.f32.vlgmr.msra.gmra.mrb[16].mxu1 %vm2158_vm12, %v2151_v63 }
0x1638   :  { %3252 = vmatprep.mubr.msk.f32.mxu1 %vm3611_vm0, %v3609_v3 }
0x163e   :  { %v2311_v19 = vpop.permute.xlu1 %2310 }
0x163f   :  { %vm2312_vm14 = vcmp.eq.s32.totalorder %v2311_v19, 1 }
0x170a   :  { %v2228_v13 = vpop.f32.mrb[16].mxu1 }
0x170b   :  { %v2229_v21 = vadd.f32 %v4270_v10, %v2228_v13  ;;  %v3238_v14 = vpop.f32.mrb[17].mxu1 }
0x170d   :  { %v2232_v23 = vmax.f32 %v2229_v21, 0.0 }
0x170f   :  { %3248 = vmatmul.mubr.msk.f32.vlgmr.msra.gmra.mrb[20].mxu0 %vm63_vm1, %v2232_v23  ;;  %3251 = vmatpush3.msra.mxu1 %v2232_v23 }
0x1710   :  { %3442 = vmatpush3.bf16.msra.mxu0 %v4159_v11  ;;  %3282 = vmatprep.mubr.msk.f32.mxu0 %vm3611_vm0, %v3609_v3 }
0x1711   :  { %3443 = vmatprep.subr.bf16.mxu0 %v3610_v4  ;;  %3434 = vmatprep.subr.bf16.mxu1 %v3610_v4 }
0x1714   :  { %3445 = vmatpush3.bf16.msra.mxu0 %v4169_v62 }
0x1715   :  { %3446 = vmatprep.subr.bf16.mxu0 %v3610_v4 }
0x1718   :  { %3448 = vmatpush3.bf16.msra.mxu0 %v4179_v24 }
0x1719   :  { %3449 = vmatprep.subr.bf16.mxu0 %v3610_v4 }
0x171c   :  { %3451 = vmatpush3.bf16.msra.mxu0 %v4188_v30 }
0x171d   :  { %3458 = vmatprep.subr.bf16.mxu0 %v3610_v4 }
0x171f   :  { %3283 = vmatmul.mubr.msk.f32.vlgmr.msra.gmra.mrb[22].mxu0 %vm2158_vm12, %v2520_v15 }
0x1720   :  { %3309 = vmatprep.mubr.msk.f32.mxu0 %vm3611_vm0, %v3609_v3  ;;  %3460 = vmatpush3.bf16.msra.mxu0 %v3435_v36 }
0x1721   :  { %3461 = vmatprep.subr.bf16.mxu0 %v3610_v4 }
0x1724   :  { %3463 = vmatpush3.bf16.msra.mxu0 %v3438_v1 }
0x17e2   :  { %v2302_v22 = vpop.f32.mrb[20].mxu0 }
0x17e3   :  { %v2313_v26 = vsel %vm2312_vm14, -1e+11, %v2302_v22  ;;  %v3249_v17 = vpop.f32.mrb[21].mxu0 }
0x17e4   :  { %v2315_v11 = vsel %vm2314_vm13, %v2313_v26, -inf }
0x17e5   :  { %v2316_v0 = vrot.slane %v2315_v11, 4 }
0x17e7   :  { %v2317_v56 = vmax.f32 %v2315_v11, %v2316_v0 }
0x17e9   :  { %v2318_v62 = vrot.slane %v2317_v56, 2 }
0x17eb   :  { %v2319_v7 = vmax.f32 %v2317_v56, %v2318_v62 }
0x17ed   :  { %v2320_v20 = vrot.slane %v2319_v7, 1 }
0x17ef   :  { %v2321_v24 = vmax.f32 %v2319_v7, %v2320_v20 }
0x17f1   :  { %v2322_v25 = vsub.f32 %v2313_v26, %v2321_v24 }
0x17f2   :  { %v2590_v29 = vpop.f32.mrb[22].mxu0 }
0x17f3   :  { %v2323_v30 = vmul.f32 1.442695, %v2322_v25  ;;  %v3284_v31 = vpop.f32.mrb[23].mxu0  ;;  %v2591_v48 = vadd.f32 %v4270_v10, %v2590_v29 }
0x17f5   :  { %3601 = vpow2.f32 %v2323_v30  ;;  %v2594_v18 = vmax.f32 %v2591_v48, 0.0 }
0x17ff   :  { %v3602_v32 = vpop.eup %3601 }
0x1800   :  { %v2325_v33 = vsel %vm2314_vm13, %v3602_v32, 0.0 }
0x1801   :  { %v2326_v34 = vrot.slane %v2325_v33, 4 }
0x1803   :  { %v2327_v35 = vadd.f32 %v2326_v34, %v2325_v33 }
0x1805   :  { %v2328_v37 = vrot.slane %v2327_v35, 2 }
0x1807   :  { %v2329_v38 = vadd.f32 %v2328_v37, %v2327_v35 }
0x1809   :  { %v2330_v27 = vrot.slane %v2329_v38, 1 }
0x180b   :  { %v2331_v28 = vadd.f32 %v2330_v27, %v2329_v38 }
0x180d   :  { %3603 = vrcp.f32 %v2331_v28 }
0x1817   :  { %v3604_v39 = vpop.eup %3603 }
0x1818   :  { %v2333_v40 = vmul.f32 %v3604_v39, %v3602_v32 }
0x181a   :  { %2334 = vxpose.xlu0.b32.start.end [1/1] (short) (narrow) %v2333_v40, 8 }
0x189a   :  { %v2350_v47 = vpop.trf.xlu0 }
0x189b   :  { %3253 = vmatmul.mubr.msk.f32.vlgmr.msra.gmra.mrb[18].mxu1 %vm2314_vm13, %v2350_v47 }
0x189c   :  { %3436 = vmatpush3.bf16.msra.mxu1 %v3435_v36  ;;  %3263 = vmatprep.mubr.msk.f32.mxu1 %vm3611_vm0, %v3609_v3 }
0x189d   :  { %3437 = vmatprep.subr.bf16.mxu1 %v3610_v4 }
0x18a0   :  { %3439 = vmatpush3.bf16.msra.mxu1 %v3438_v1 }
0x18a1   :  { %3452 = vmatprep.subr.bf16.mxu1 %v3610_v4 }
0x196e   :  { %v2435_v50 = vpop.f32.mrb[18].mxu1 }
0x196f   :  { %v3254_v51 = vpop.f32.mrb[19].mxu1  ;;  %3264 = vmatmul.mubr.msk.f32.vlgmr.msra.gmra.mrb[20].mxu1 %vm63_vm1, %v2435_v50 }
0x1970   :  { %3454 = vmatpush3.bf16.msra.mxu1 %v4213_v44  ;;  %3293 = vmatprep.mubr.msk.f32.mxu1 %vm3611_vm0, %v3609_v3  ;;  %v2915_v44 = vld [vmem:[%s4345_s11] ss:$0 sm:$0xff] }
0x1971   :  { %3455 = vmatprep.subr.bf16.mxu1 %v3610_v4  ;;  %v2673_v4 = vpop.permute.xlu1 %2672 }
0x1972   :  { %vm2674_vm2 = vcmp.eq.s32.totalorder %v2673_v4, 1 }
0x1974   :  { %3457 = vmatpush3.bf16.msra.mxu1 %v4263_v9 }
0x1975   :  { %3296 = vmatprep.subr.mxu1 %v3609_v3 }
0x1977   :  { %3294 = vmatmul.mubr.msk.f32.vlgmr.msra.gmra.mrb[22].mxu1 %vm63_vm1, %v2594_v18 }
0x1978   :  { %3297 = vmatpush3.msra.mxu1 %v2594_v18  ;;  %3298 = vmatprep.mubr.msk.f32.mxu1 %vm3611_vm0, %v3609_v3 }
0x1a42   :  { %v2514_v52 = vpop.f32.mrb[20].mxu1 }
0x1a43   :  { %v2515_v12 = vadd.f32 %v2915_v44, %v2514_v52  ;;  %v3265_v46 = vpop.f32.mrb[21].mxu1 }
0x1a45   :  { %2519 = vst.msk [vmem:[%s4346_s12] sm:$0xff] %vm2518_vm15, %v2515_v12 }
0x1a4a   :  { %v2664_v6 = vpop.f32.mrb[22].mxu1 }
0x1a4b   :  { %v2675_v49 = vsel %vm2674_vm2, -1e+11, %v2664_v6  ;;  %v3295_v53 = vpop.f32.mrb[23].mxu1 }
0x1a4c   :  { %v2676_v3 = vsel %vm2314_vm13, %v2675_v49, -inf }
0x1a4d   :  { %v2677_v54 = vrot.slane %v2676_v3, 4 }
0x1a4f   :  { %v2678_v55 = vmax.f32 %v2676_v3, %v2677_v54 }
0x1a51   :  { %v2679_v2 = vrot.slane %v2678_v55, 2 }
0x1a53   :  { %v2680_v61 = vmax.f32 %v2678_v55, %v2679_v2 }
0x1a55   :  { %v2681_v57 = vrot.slane %v2680_v61, 1 }
0x1a57   :  { %v2682_v41 = vmax.f32 %v2680_v61, %v2681_v57 }
0x1a59   :  { %v2683_v58 = vsub.f32 %v2675_v49, %v2682_v41 }
0x1a5b   :  { %v2684_v59 = vmul.f32 1.442695, %v2683_v58 }
0x1a5d   :  { %3605 = vpow2.f32 %v2684_v59 }
0x1a67   :  { %v3606_v60 = vpop.eup %3605 }
0x1a68   :  { %v2686_v63 = vsel %vm2314_vm13, %v3606_v60, 0.0 }
0x1a69   :  { %v2687_v5 = vrot.slane %v2686_v63, 4 }
0x1a6b   :  { %v2688_v8 = vadd.f32 %v2687_v5, %v2686_v63 }
0x1a6d   :  { %v2689_v9 = vrot.slane %v2688_v8, 2 }
0x1a6f   :  { %v2690_v10 = vadd.f32 %v2689_v9, %v2688_v8 }
0x1a71   :  { %v2691_v13 = vrot.slane %v2690_v10, 1 }
0x1a73   :  { %v2692_v21 = vadd.f32 %v2691_v13, %v2690_v10 }
0x1a75   :  { %3607 = vrcp.f32 %v2692_v21 }
0x1a7f   :  { %v3608_v14 = vpop.eup %3607 }
0x1a80   :  { %v2694_v23 = vmul.f32 %v3608_v14, %v3606_v60 }
0x1a82   :  { %2695 = vxpose.xlu1.b32.start.end [1/1] (short) (narrow) %v2694_v23, 8 }
0x1b02   :  { %v2711_v15 = vpop.trf.xlu1 }
0x1b03   :  { %3299 = vmatmul.mubr.msk.f32.vlgmr.msra.gmra.mrb[24].mxu1 %vm2314_vm13, %v2711_v15 }
0x1bd6   :  { %v2796_v19 = vpop.f32.mrb[24].mxu1 }
0x1bd7   :  { %v3300_v22 = vpop.f32.mrb[25].mxu1  ;;  %3310 = vmatmul.mubr.msk.f32.vlgmr.msra.gmra.mrb[24].mxu0 %vm63_vm1, %v2796_v19 }
0x1caa   :  { %v2869_v26 = vpop.f32.mrb[24].mxu0 }
0x1cab   :  { %v2870_v17 = vadd.f32 %v2915_v44, %v2869_v26  ;;  %v3311_v11 = vpop.f32.mrb[25].mxu0 }
0x1cad   :  { %2921 = vst.msk [vmem:[%s4346_s12 + $0x8] sm:$0xff] %vm2518_vm15, %v2870_v17 }

</bundles_post_ra>
